<compile_context>
chip_gen: v7x
topology: tpu7x:2x2x1
jax: 0.10.0
libtpu: 0.0.40
codegen_flags: <defaults>
</compile_context>

<pallas_src>
import jax
import jax.numpy as jnp
from jax.experimental import pallas as pl
from jax.experimental.pallas import tpu as pltpu

K_NBRS = 29  # K in get_nbr_info

_VMEM = pl.BlockSpec(memory_space=pltpu.MemorySpace.VMEM)


def _round_up(x, m):
    return ((x + m - 1) // m) * m


def _pick_tile(dim, unit, cap):
    """Largest multiple of `unit` (<= cap) that divides round_up(dim, unit)."""
    padded = _round_up(dim, unit)
    best = unit
    m = unit
    while m <= min(cap, padded):
        if padded % m == 0:
            best = m
        m += unit
    return best


# ----------------------------- Pallas kernels ------------------------------

def _matmul_kernel(a_ref, b_ref, o_ref, acc_ref):
    """bf16 MXU matmul tile, f32 accumulation across the K grid axis."""
    @pl.when(pl.program_id(2) == 0)
    def _init():
        acc_ref[...] = jnp.zeros_like(acc_ref)

    acc_ref[...] += jnp.dot(a_ref[...], b_ref[...],
                            preferred_element_type=jnp.float32)

    @pl.when(pl.program_id(2) == pl.num_programs(2) - 1)
    def _store():
        o_ref[...] = acc_ref[...]


def _bn_relu_kernel(x_ref, g_ref, b_ref, o_ref):
    """Training-mode BatchNorm2d (per-image, batch=1) + ReLU.

    Single pass: sum and sum-of-squares, var = E[x^2] - mean^2, rsqrt.
    Elementwise math stays in f32 (bf16 only at the MXU boundary).
    """
    x = x_ref[0]                                      # (M, C) — one image
    inv_m = 1.0 / x.shape[0]
    s1 = jnp.sum(x, axis=0, keepdims=True)
    s2 = jnp.sum(x * x, axis=0, keepdims=True)
    mean = s1 * inv_m
    var = jnp.maximum(s2 * inv_m - mean * mean, 0.0)
    inv = jax.lax.rsqrt(var + 1e-5)                   # BatchNorm2d eps
    o_ref[0] = jnp.maximum((x - mean) * (inv * g_ref[...]) + b_ref[...], 0.0)


def _maxpool_phase_kernel(ee_ref, eo_ref, oe_ref, oo_ref, o_ref):
    """MaxPool2d(3, stride=2, pad=1) from 4 stride-2 phase grids.

    Each phase ref is (1, Ho+1, Wo+1, C); output is (1, Ho, Wo, C).  The 9
    taps of a window are recovered from contiguous shifted slices, so no
    9x-expanded window stack ever touches HBM.
    """
    ho = o_ref.shape[1]
    wo = o_ref.shape[2]
    ee = ee_ref[0]
    eo = eo_ref[0]
    oe = oe_ref[0]
    oo = oo_ref[0]
    m = ee[:ho, :wo]
    m = jnp.maximum(m, ee[:ho, 1:wo + 1])
    m = jnp.maximum(m, ee[1:ho + 1, :wo])
    m = jnp.maximum(m, ee[1:ho + 1, 1:wo + 1])
    m = jnp.maximum(m, eo[:ho, :wo])
    m = jnp.maximum(m, eo[1:ho + 1, :wo])
    m = jnp.maximum(m, oe[:ho, :wo])
    m = jnp.maximum(m, oe[:ho, 1:wo + 1])
    m = jnp.maximum(m, oo[:ho, :wo])
    o_ref[0] = m


def _l1_dist_kernel(x_ref, f_ref, o_ref):
    """D[n] = sum_f |x[f] - feats[n, f]|  — lane-dense (1, Ntrain) row out."""
    d = jnp.sum(jnp.abs(f_ref[...] - x_ref[0]), axis=-1)   # (Ntrain,)
    o_ref[...] = d.reshape(1, 1, -1)


def _knn_frac_kernel(d_ref, mask_ref, sinv_ref, o_ref):
    """nr/dr for the exp(-d/s)-weighted KNN vote (d = top-K L1 distances)."""
    w = jnp.exp(-d_ref[...] * sinv_ref[...])                # (B, K) — EUP exp
    nr = jnp.sum(w * mask_ref[...], axis=-1, keepdims=True)
    dr = jnp.sum(w, axis=-1, keepdims=True)
    o_ref[...] = nr / dr                                    # (B, 1)


# --------------------------- kernel call wrappers ---------------------------

def pallas_matmul(a, b, tm=256, tn=256, tk=512):
    """C = A @ B on the MXU: A (M, K), B (K, N) -> f32 (M, N).

    Operands cast to bf16 (f32 accumulate via preferred_element_type); grid
    (M/bm, N/bn, K/bk) with a resident f32 accumulator tile.
    """
    M, K = a.shape
    Kb, N = b.shape
    assert K == Kb
    bm = _pick_tile(M, 16, tm)
    bn = _pick_tile(N, 128, tn)
    bk = _pick_tile(K, 128, tk)
    Mp, Kp, Np = _round_up(M, bm), _round_up(K, bk), _round_up(N, bn)
    a = a.astype(jnp.bfloat16)
    b = b.astype(jnp.bfloat16)
    if (Mp, Kp) != (M, K):
        a = jnp.pad(a, ((0, Mp - M), (0, Kp - K)))
    if (Kp, Np) != (K, N):
        b = jnp.pad(b, ((0, Kp - K), (0, Np - N)))
    out = pl.pallas_call(
        _matmul_kernel,
        out_shape=jax.ShapeDtypeStruct((Mp, Np), jnp.float32),
        grid_spec=pltpu.PrefetchScalarGridSpec(
            num_scalar_prefetch=0,
            grid=(Mp // bm, Np // bn, Kp // bk),
            in_specs=[pl.BlockSpec((bm, bk), lambda i, j, k: (i, k)),
                      pl.BlockSpec((bk, bn), lambda i, j, k: (k, j))],
            out_specs=pl.BlockSpec((bm, bn), lambda i, j, k: (i, j)),
            scratch_shapes=[pltpu.VMEM((bm, bn), jnp.float32)]),
        compiler_params=pltpu.CompilerParams(
            dimension_semantics=("parallel", "parallel", "arbitrary"),
            vmem_limit_bytes=32 * 1024 * 1024),
    )(a, b)
    if (Mp, Np) != (M, N):
        out = out[:M, :N]
    return out


def pallas_bn_relu(x_bmc, gamma, beta):
    """Per-image training-mode BN + ReLU; x is (B, H*W, C)."""
    # TODO(synk): for large H*W split into a gridded two-pass reduction so a
    #             single image's rows need not be VMEM-resident at once.
    B, M, C = x_bmc.shape
    return pl.pallas_call(
        _bn_relu_kernel,
        out_shape=jax.ShapeDtypeStruct((B, M, C), jnp.float32),
        grid_spec=pltpu.PrefetchScalarGridSpec(
            num_scalar_prefetch=0,
            grid=(B,),
            in_specs=[pl.BlockSpec((1, M, C), lambda b: (b, 0, 0)),
                      pl.BlockSpec((1, C), lambda b: (0, 0)),
                      pl.BlockSpec((1, C), lambda b: (0, 0))],
            out_specs=pl.BlockSpec((1, M, C), lambda b: (b, 0, 0))),
        compiler_params=pltpu.CompilerParams(
            dimension_semantics=("parallel",)),
    )(x_bmc, gamma.reshape(1, C), beta.reshape(1, C))


def pallas_maxpool_3x3_s2_p1(x_nhwc):
    """nn.MaxPool2d(kernel_size=3, stride=2, padding=1), NHWC, batched grid."""
    N, H, W, C = x_nhwc.shape
    Ho = (H - 1) // 2 + 1          # floor((H + 2*1 - 3)/2) + 1, odd sizes too
    Wo = (W - 1) // 2 + 1
    # Pad with -inf so the four stride-2 phase grids are all (Ho+1, Wo+1).
    xp = jnp.pad(x_nhwc,
                 ((0, 0), (1, 2 * Ho + 1 - H), (1, 2 * Wo + 1 - W), (0, 0)),
                 constant_values=-jnp.inf)
    ee = xp[:, 0::2, 0::2, :]
    eo = xp[:, 0::2, 1::2, :]
    oe = xp[:, 1::2, 0::2, :]
    oo = xp[:, 1::2, 1::2, :]
    phase_spec = pl.BlockSpec((1, Ho + 1, Wo + 1, C), lambda b: (b, 0, 0, 0))
    return pl.pallas_call(
        _maxpool_phase_kernel,
        out_shape=jax.ShapeDtypeStruct((N, Ho, Wo, C), jnp.float32),
        grid_spec=pltpu.PrefetchScalarGridSpec(
            num_scalar_prefetch=0,
            grid=(N,),
            in_specs=[phase_spec] * 4,
            out_specs=pl.BlockSpec((1, Ho, Wo, C), lambda b: (b, 0, 0, 0))),
        compiler_params=pltpu.CompilerParams(
            dimension_semantics=("parallel",)),
    )(ee, eo, oe, oo)


def pallas_l1_dist(x_bf, feats):
    """L1 distance matrix: (B, F) x (Ntrain, F) -> lane-dense (B, Ntrain)."""
    # TODO(synk): tile the Ntrain axis (with +inf masking of the pad) once the
    #             train-embedding set no longer fits a single VMEM block.
    B, F = x_bf.shape
    Ntr, _ = feats.shape
    out = pl.pallas_call(
        _l1_dist_kernel,
        out_shape=jax.ShapeDtypeStruct((B, 1, Ntr), jnp.float32),
        grid_spec=pltpu.PrefetchScalarGridSpec(
            num_scalar_prefetch=0,
            grid=(B,),
            in_specs=[pl.BlockSpec((1, 1, F), lambda b: (b, 0, 0)),
                      pl.BlockSpec((Ntr, F), lambda b: (0, 0))],  # resident
            out_specs=pl.BlockSpec((1, 1, Ntr), lambda b: (b, 0, 0))),
        compiler_params=pltpu.CompilerParams(
            dimension_semantics=("parallel",)),
    )(x_bf.reshape(B, 1, F), feats)
    return out.reshape(B, Ntr)


def pallas_knn_frac(d_knn, mask, s_inv):
    """frac = sum_{label==pred} exp(-d/s) / sum exp(-d/s), all queries at once."""
    B, _ = d_knn.shape
    return pl.pallas_call(
        _knn_frac_kernel,
        out_shape=jax.ShapeDtypeStruct((B, 1), jnp.float32),
        in_specs=[_VMEM, _VMEM, _VMEM],
        out_specs=_VMEM,
    )(d_knn, mask, s_inv)


# ------------------------------- glue (JAX) ---------------------------------

def _im2col(x_nhwc, kh, kw, stride, pad):
    """Patches ordered (cin, dh, dw) per row — matches torch conv weight flatten."""
    N, H, W, C = x_nhwc.shape
    xp = jnp.pad(x_nhwc, ((0, 0), (pad, pad), (pad, pad), (0, 0)))
    Ho = (H + 2 * pad - kh) // stride + 1
    Wo = (W + 2 * pad - kw) // stride + 1
    cols = [xp[:, dh:dh + stride * Ho:stride, dw:dw + stride * Wo:stride, :]
            for dh in range(kh) for dw in range(kw)]
    p = jnp.stack(cols, axis=3)                    # (N, Ho, Wo, kh*kw, C)
    p = jnp.transpose(p, (0, 1, 2, 4, 3))          # (N, Ho, Wo, C, kh*kw)
    return p.reshape(N * Ho * Wo, C * kh * kw), Ho, Wo


def _conv_wmat(w):  # torch layout (Cout, Cin, kh, kw) -> (Cin*kh*kw, Cout)
    return w.reshape(w.shape[0], -1).T


def init_params(key):
    ks = jax.random.split(key, 3)

    def kaiming(k, shape):  # nn.init.kaiming_normal_ defaults (fan_in, gain=sqrt(2))
        fan_in = shape[1] * shape[2] * shape[3]
        return jax.random.normal(k, shape, jnp.float32) * jnp.sqrt(2.0 / fan_in)

    # Conv weights are reshaped to matmul layout and cast to bf16 once here —
    # they are model constants, no per-image repack/pad work.
    p = {
        # features[:4] : conv0 / norm0 / relu0 / pool0   (in_channels=1, init=64)
        'conv0_wm': _conv_wmat(kaiming(ks[0], (64, 1, 7, 7))).astype(jnp.bfloat16),
        'norm0_g': jnp.ones((64,), jnp.float32),
        'norm0_b': jnp.zeros((64,), jnp.float32),
        # denseblock1.denselayer1 (growth=32, bn_size=4)
        'norm1_g': jnp.ones((64,), jnp.float32),
        'norm1_b': jnp.zeros((64,), jnp.float32),
        'conv1_wm': _conv_wmat(kaiming(ks[1], (128, 64, 1, 1))).astype(jnp.bfloat16),
        'norm2_g': jnp.ones((128,), jnp.float32),
        'norm2_b': jnp.zeros((128,), jnp.float32),
        'conv2_wm': _conv_wmat(kaiming(ks[2], (32, 128, 3, 3))).astype(jnp.bfloat16),
    }
    return p


def feature_prefix_pd4(x_nchw, p):
    """get_nbr_info feature path for pd==4: features[:4] + denseblock1[0].

    Batched over images; BN statistics stay per-image (grid axis), matching
    the PyTorch per-image loop where each image is a batch of one.
    """
    B = x_nchw.shape[0]
    x = jnp.transpose(x_nchw, (0, 2, 3, 1)).astype(jnp.float32)   # NCHW -> NHWC
    # conv0: 7x7 stride 2 pad 3, no bias
    patches, Ho, Wo = _im2col(x, 7, 7, 2, 3)
    # TODO(synk): conv0 has K = Cin*49 = 49 padded to 128 on the MXU; a direct
    #             VPU conv (or merging output pixels into K) would lift K util.
    y = pallas_matmul(patches, p['conv0_wm'])                     # (B*Ho*Wo, 64)
    y = pallas_bn_relu(y.reshape(B, Ho * Wo, 64),
                       p['norm0_g'], p['norm0_b'])                # norm0 + relu0
    y = pallas_maxpool_3x3_s2_p1(y.reshape(B, Ho, Wo, 64))        # pool0
    _, Hp, Wp, Cin = y.shape
    xin = y.reshape(B, Hp * Wp, Cin)

    # denseblock1.denselayer1: norm1/relu1/conv1(1x1)/norm2/relu2/conv2(3x3)
    h = pallas_bn_relu(xin, p['norm1_g'], p['norm1_b'])
    h = pallas_matmul(h.reshape(B * Hp * Wp, Cin), p['conv1_wm'])  # (B*HW, 128)
    h = pallas_bn_relu(h.reshape(B, Hp * Wp, 128),
                       p['norm2_g'], p['norm2_b'])
    patches2, _, _ = _im2col(h.reshape(B, Hp, Wp, 128), 3, 3, 1, 1)
    newf = pallas_matmul(patches2, p['conv2_wm'])                  # (B*HW, 32)

    # torch.cat([x, new_features], dim=1) -> 96 channels; the later flatten in
    # get_nbr_info is over NCHW order -> channel-major per image.
    feat_hwc = jnp.concatenate([xin.reshape(B * Hp * Wp, Cin), newf], axis=-1)
    feat = jnp.transpose(feat_hwc.reshape(B, Hp, Wp, Cin + 32), (0, 3, 1, 2))
    return feat.reshape(B, -1)                                     # (B, F)


@jax.jit
def custom_densenet_forward(imgs_nchw, p, train_feats, train_labels):
    """forward(): per-image KNN vote, batched across the PyTorch image loop."""
    xf = feature_prefix_pd4(imgs_nchw, p)               # test_feat_1d, (B, F)
    d = pallas_l1_dist(xf, train_feats)                 # D_ij, (B, Ntrain)
    vals, idx = jax.lax.top_k(-d, K_NBRS)               # torch.topk(-D, K)
    d_knn = -vals                                       # K smallest distances
    s = jnp.median(d_knn, axis=-1, keepdims=True)       # torch.median (K odd)
    lab_knn = train_labels[idx]                         # (B, K)
    # torch.mode over binary labels with odd K == majority vote
    # TODO(synk): general multi-class mode (toy labels are binary).
    pred_cls = jnp.where(
        2 * jnp.sum(lab_knn, axis=-1, keepdims=True) > K_NBRS, 1, 0
    ).astype(train_labels.dtype)                        # (B, 1)
    mask = (lab_knn == pred_cls).astype(jnp.float32)    # (B, K)
    # exp(-d/s) reuses the already-computed top-K L1 distances (identical to
    # re-running l1_norm per neighbour); 1/s is precomputed and eps-guarded.
    s_inv = 1.0 / jnp.maximum(s, 1e-12)
    frac = pallas_knn_frac(d_knn, mask, s_inv)          # (B, 1)
    return jnp.concatenate([frac, 1.0 - frac], axis=1)  # (B, 2)


# ---------------------------------- main -------------------------------------

if __name__ == "__main__":
    key = jax.random.PRNGKey(0)
    k_img, k_par, k_feat, k_lab = jax.random.split(key, 4)

    # small test problem: B=2, in_channels=1, 32x32 images (pd=4 path)
    imgs = jax.random.normal(k_img, (2, 1, 32, 32), jnp.float32)       # NCHW
    params = init_params(k_par)

    # synthetic stand-in for info_dict (pickle file): F = 96 channels * 8 * 8
    F = 96 * 8 * 8
    train_feats = jax.random.normal(k_feat, (40, F), jnp.float32)      # info_dict['feats'][idx]
    train_labels = jax.random.bernoulli(k_lab, 0.5, (40,)).astype(jnp.int32)

    out = custom_densenet_forward(imgs, params, train_feats, train_labels)
    jax.block_until_ready(out)
    assert out.shape == (2, 2) and out.dtype == jnp.float32
    assert bool(jnp.all(jnp.isfinite(out)))
    print("KERNEL_OK")
</pallas_src>

<mosaic_0001>
module attributes {stable_mosaic.version = 11 : i64} {
  func.func @_matmul_kernel(%arg0: i32, %arg1: i32, %arg2: i32, %arg3: memref<256x128xbf16, #tpu.memory_space<vmem>>, %arg4: memref<128x128xbf16, #tpu.memory_space<vmem>>, %arg5: memref<256x128xf32, #tpu.memory_space<vmem>>, %arg6: memref<256x128xf32, #tpu.memory_space<vmem>>) attributes {dimension_semantics = [#tpu.dimension_semantics<parallel>, #tpu.dimension_semantics<parallel>, #tpu.dimension_semantics<arbitrary>], iteration_bounds = array<i64: 2, 1, 1>, scalar_prefetch = 0 : i64, scratch_operands = 1 : i64, tpu.core_type = #tpu.core_type<tc>, window_params = [{transform_indices = @transform_0, window_bounds = array<i64: 256, 128>}, {transform_indices = @transform_1, window_bounds = array<i64: 128, 128>}, {transform_indices = @transform_2, window_bounds = array<i64: 256, 128>}]} {
    %c0_i32 = arith.constant 0 : i32
    %0 = arith.cmpi eq, %arg2, %c0_i32 : i32
    %1 = arith.extui %0 : i1 to i32
    %c0_i32_0 = arith.constant 0 : i32
    %2 = arith.cmpi ne, %1, %c0_i32_0 : i32
    scf.if %2 {
      %cst_10 = arith.constant 0.000000e+00 : f32
      %12 = vector.broadcast %cst_10 : f32 to vector<256x128xf32>
      %c0_11 = arith.constant 0 : index
      %c0_12 = arith.constant 0 : index
      %13 = vector.load %arg6[%c0_11, %c0_12] : memref<256x128xf32, #tpu.memory_space<vmem>>, vector<256x128xf32>
      tpu.vector_store %arg6[%c0_11, %c0_12], %12 {strides = array<i32>} : memref<256x128xf32, #tpu.memory_space<vmem>>, vector<256x128xf32>,
    } else {
    }
    %c0 = arith.constant 0 : index
    %c0_1 = arith.constant 0 : index
    %3 = vector.load %arg6[%c0, %c0_1] : memref<256x128xf32, #tpu.memory_space<vmem>>, vector<256x128xf32>
    %c0_2 = arith.constant 0 : index
    %c0_3 = arith.constant 0 : index
    %4 = vector.load %arg3[%c0_2, %c0_3] : memref<256x128xbf16, #tpu.memory_space<vmem>>, vector<256x128xbf16>
    %c0_4 = arith.constant 0 : index
    %c0_5 = arith.constant 0 : index
    %5 = vector.load %arg4[%c0_4, %c0_5] : memref<128x128xbf16, #tpu.memory_space<vmem>>, vector<128x128xbf16>
    %cst = arith.constant dense<0.000000e+00> : vector<256x128xf32>
    %6 = tpu.matmul %4, %5, %cst {dimension_numbers = #tpu.dot_dimension_numbers<[1], [0], [0], [1], [0, 0, 1, 1], [], []>} : vector<256x128xbf16>, vector<128x128xbf16>, vector<256x128xf32> -> vector<256x128xf32>
    %7 = arith.addf %3, %6 : vector<256x128xf32>
    %c0_6 = arith.constant 0 : index
    %c0_7 = arith.constant 0 : index
    %8 = vector.load %arg6[%c0_6, %c0_7] : memref<256x128xf32, #tpu.memory_space<vmem>>, vector<256x128xf32>
    tpu.vector_store %arg6[%c0_6, %c0_7], %7 {strides = array<i32>} : memref<256x128xf32, #tpu.memory_space<vmem>>, vector<256x128xf32>,
    %c0_i32_8 = arith.constant 0 : i32
    %9 = arith.cmpi eq, %arg2, %c0_i32_8 : i32
    %10 = arith.extui %9 : i1 to i32
    %c0_i32_9 = arith.constant 0 : i32
    %11 = arith.cmpi ne, %10, %c0_i32_9 : i32
    scf.if %11 {
      %c0_10 = arith.constant 0 : index
      %c0_11 = arith.constant 0 : index
      %12 = vector.load %arg6[%c0_10, %c0_11] : memref<256x128xf32, #tpu.memory_space<vmem>>, vector<256x128xf32>
      %c0_12 = arith.constant 0 : index
      %c0_13 = arith.constant 0 : index
      %13 = vector.load %arg5[%c0_12, %c0_13] : memref<256x128xf32, #tpu.memory_space<vmem>>, vector<256x128xf32>
      tpu.vector_store %arg5[%c0_12, %c0_13], %12 {strides = array<i32>} : memref<256x128xf32, #tpu.memory_space<vmem>>, vector<256x128xf32>,
    } else {
    }
    return
  }
  func.func @transform_0(%arg0: i32, %arg1: i32, %arg2: i32) -> (i32, i32) {
    %c0_i32 = arith.constant 0 : i32
    return %arg0, %arg2 : i32, i32
  }
  func.func @transform_1(%arg0: i32, %arg1: i32, %arg2: i32) -> (i32, i32) {
    %c0_i32 = arith.constant 0 : i32
    return %arg2, %arg1 : i32, i32
  }
  func.func @transform_2(%arg0: i32, %arg1: i32, %arg2: i32) -> (i32, i32) {
    %c0_i32 = arith.constant 0 : i32
    return %arg0, %arg1 : i32, i32
  }
}

module attributes {stable_mosaic.version = 11 : i64} {
  func.func @_bn_relu_kernel(%arg0: i32, %arg1: memref<1x256x64xf32, #tpu.memory_space<vmem>>, %arg2: memref<1x64xf32, #tpu.memory_space<vmem>>, %arg3: memref<1x64xf32, #tpu.memory_space<vmem>>, %arg4: memref<1x256x64xf32, #tpu.memory_space<vmem>>) attributes {dimension_semantics = [#tpu.dimension_semantics<parallel>], iteration_bounds = array<i64: 2>, scalar_prefetch = 0 : i64, scratch_operands = 0 : i64, tpu.core_type = #tpu.core_type<tc>, window_params = [{transform_indices = @transform_0, window_bounds = array<i64: 1, 256, 64>}, {pipeline_mode = #tpu.pipeline_mode<synchronous>, transform_indices = @transform_1, window_bounds = array<i64: 1, 64>}, {pipeline_mode = #tpu.pipeline_mode<synchronous>, transform_indices = @transform_2, window_bounds = array<i64: 1, 64>}, {transform_indices = @transform_3, window_bounds = array<i64: 1, 256, 64>}]} {
    %c0 = arith.constant 0 : index
    %c0_0 = arith.constant 0 : index
    %c0_1 = arith.constant 0 : index
    %0 = vector.load %arg1[%c0, %c0_0, %c0_1] : memref<1x256x64xf32, #tpu.memory_space<vmem>>, vector<1x256x64xf32>
    %1 = vector.shape_cast %0 : vector<1x256x64xf32> to vector<256x64xf32>
    %cst = arith.constant dense<0.000000e+00> : vector<64xf32>
    %2 = vector.multi_reduction <add>, %1, %cst [0] : vector<256x64xf32> to vector<64xf32>
    %3 = vector.shape_cast %2 : vector<64xf32> to vector<1x64xf32>
    %4 = arith.mulf %1, %1 : vector<256x64xf32>
    %cst_2 = arith.constant dense<0.000000e+00> : vector<64xf32>
    %5 = vector.multi_reduction <add>, %4, %cst_2 [0] : vector<256x64xf32> to vector<64xf32>
    %6 = vector.shape_cast %5 : vector<64xf32> to vector<1x64xf32>
    %cst_3 = arith.constant 3.906250e-03 : f32
    %7 = vector.broadcast %cst_3 : f32 to vector<1x64xf32>
    %8 = arith.mulf %3, %7 : vector<1x64xf32>
    %cst_4 = arith.constant 3.906250e-03 : f32
    %9 = vector.broadcast %cst_4 : f32 to vector<1x64xf32>
    %10 = arith.mulf %6, %9 : vector<1x64xf32>
    %11 = arith.mulf %8, %8 : vector<1x64xf32>
    %12 = arith.subf %10, %11 : vector<1x64xf32>
    %cst_5 = arith.constant 0.000000e+00 : f32
    %13 = vector.broadcast %cst_5 : f32 to vector<1x64xf32>
    %14 = arith.maximumf %12, %13 : vector<1x64xf32>
    %cst_6 = arith.constant 9.99999974E-6 : f32
    %15 = vector.broadcast %cst_6 : f32 to vector<1x64xf32>
    %16 = arith.addf %14, %15 : vector<1x64xf32>
    %17 = math.rsqrt %16 : vector<1x64xf32>
    %18 = vector.broadcast %8 : vector<1x64xf32> to vector<256x64xf32>
    %19 = arith.subf %1, %18 : vector<256x64xf32>
    %c0_7 = arith.constant 0 : index
    %c0_8 = arith.constant 0 : index
    %20 = vector.load %arg2[%c0_7, %c0_8] : memref<1x64xf32, #tpu.memory_space<vmem>>, vector<1x64xf32>
    %21 = arith.mulf %17, %20 : vector<1x64xf32>
    %22 = vector.broadcast %21 : vector<1x64xf32> to vector<256x64xf32>
    %23 = arith.mulf %19, %22 : vector<256x64xf32>
    %c0_9 = arith.constant 0 : index
    %c0_10 = arith.constant 0 : index
    %24 = vector.load %arg3[%c0_9, %c0_10] : memref<1x64xf32, #tpu.memory_space<vmem>>, vector<1x64xf32>
    %25 = vector.broadcast %24 : vector<1x64xf32> to vector<256x64xf32>
    %26 = arith.addf %23, %25 : vector<256x64xf32>
    %cst_11 = arith.constant 0.000000e+00 : f32
    %27 = vector.broadcast %cst_11 : f32 to vector<256x64xf32>
    %28 = arith.maximumf %26, %27 : vector<256x64xf32>
    %c0_12 = arith.constant 0 : index
    %c0_13 = arith.constant 0 : index
    %c0_14 = arith.constant 0 : index
    %29 = vector.load %arg4[%c0_12, %c0_13, %c0_14] : memref<1x256x64xf32, #tpu.memory_space<vmem>>, vector<1x256x64xf32>
    %30 = vector.shape_cast %29 : vector<1x256x64xf32> to vector<256x64xf32>
    %31 = vector.shape_cast %28 : vector<256x64xf32> to vector<1x256x64xf32>
    tpu.vector_store %arg4[%c0_12, %c0_13, %c0_14], %31 {strides = array<i32>} : memref<1x256x64xf32, #tpu.memory_space<vmem>>, vector<1x256x64xf32>,
    return
  }
  func.func @transform_0(%arg0: i32) -> (i32, i32, i32) {
    %c0_i32 = arith.constant 0 : i32
    %c0_i32_0 = arith.constant 0 : i32
    %c0_i32_1 = arith.constant 0 : i32
    return %arg0, %c0_i32, %c0_i32_0 : i32, i32, i32
  }
  func.func @transform_1(%arg0: i32) -> (i32, i32) {
    %c0_i32 = arith.constant 0 : i32
    %c0_i32_0 = arith.constant 0 : i32
    %c0_i32_1 = arith.constant 0 : i32
    return %c0_i32, %c0_i32_0 : i32, i32
  }
  func.func @transform_2(%arg0: i32) -> (i32, i32) {
    %c0_i32 = arith.constant 0 : i32
    %c0_i32_0 = arith.constant 0 : i32
    %c0_i32_1 = arith.constant 0 : i32
    return %c0_i32, %c0_i32_0 : i32, i32
  }
  func.func @transform_3(%arg0: i32) -> (i32, i32, i32) {
    %c0_i32 = arith.constant 0 : i32
    %c0_i32_0 = arith.constant 0 : i32
    %c0_i32_1 = arith.constant 0 : i32
    return %arg0, %c0_i32, %c0_i32_0 : i32, i32, i32
  }
}

module attributes {stable_mosaic.version = 11 : i64} {
  func.func @_maxpool_phase_kernel(%arg0: i32, %arg1: memref<1x9x9x64xf32, #tpu.memory_space<vmem>>, %arg2: memref<1x9x9x64xf32, #tpu.memory_space<vmem>>, %arg3: memref<1x9x9x64xf32, #tpu.memory_space<vmem>>, %arg4: memref<1x9x9x64xf32, #tpu.memory_space<vmem>>, %arg5: memref<1x8x8x64xf32, #tpu.memory_space<vmem>>) attributes {dimension_semantics = [#tpu.dimension_semantics<parallel>], iteration_bounds = array<i64: 2>, scalar_prefetch = 0 : i64, scratch_operands = 0 : i64, tpu.core_type = #tpu.core_type<tc>, window_params = [{transform_indices = @transform_0, window_bounds = array<i64: 1, 9, 9, 64>}, {transform_indices = @transform_1, window_bounds = array<i64: 1, 9, 9, 64>}, {transform_indices = @transform_2, window_bounds = array<i64: 1, 9, 9, 64>}, {transform_indices = @transform_3, window_bounds = array<i64: 1, 9, 9, 64>}, {transform_indices = @transform_4, window_bounds = array<i64: 1, 8, 8, 64>}]} {
    %c0 = arith.constant 0 : index
    %c0_0 = arith.constant 0 : index
    %c0_1 = arith.constant 0 : index
    %c0_2 = arith.constant 0 : index
    %0 = vector.load %arg1[%c0, %c0_0, %c0_1, %c0_2] : memref<1x9x9x64xf32, #tpu.memory_space<vmem>>, vector<1x9x9x64xf32>
    %1 = vector.shape_cast %0 : vector<1x9x9x64xf32> to vector<9x9x64xf32>
    %c0_3 = arith.constant 0 : index
    %c0_4 = arith.constant 0 : index
    %c0_5 = arith.constant 0 : index
    %c0_6 = arith.constant 0 : index
    %2 = vector.load %arg2[%c0_3, %c0_4, %c0_5, %c0_6] : memref<1x9x9x64xf32, #tpu.memory_space<vmem>>, vector<1x9x9x64xf32>
    %3 = vector.shape_cast %2 : vector<1x9x9x64xf32> to vector<9x9x64xf32>
    %c0_7 = arith.constant 0 : index
    %c0_8 = arith.constant 0 : index
    %c0_9 = arith.constant 0 : index
    %c0_10 = arith.constant 0 : index
    %4 = vector.load %arg3[%c0_7, %c0_8, %c0_9, %c0_10] : memref<1x9x9x64xf32, #tpu.memory_space<vmem>>, vector<1x9x9x64xf32>
    %5 = vector.shape_cast %4 : vector<1x9x9x64xf32> to vector<9x9x64xf32>
    %c0_11 = arith.constant 0 : index
    %c0_12 = arith.constant 0 : index
    %c0_13 = arith.constant 0 : index
    %c0_14 = arith.constant 0 : index
    %6 = vector.load %arg4[%c0_11, %c0_12, %c0_13, %c0_14] : memref<1x9x9x64xf32, #tpu.memory_space<vmem>>, vector<1x9x9x64xf32>
    %7 = vector.shape_cast %6 : vector<1x9x9x64xf32> to vector<9x9x64xf32>
    %8 = vector.extract_strided_slice %1 {offsets = [0, 0, 0], sizes = [8, 8, 64], strides = [1, 1, 1]} : vector<9x9x64xf32> to vector<8x8x64xf32>
    %9 = vector.extract_strided_slice %1 {offsets = [0, 1, 0], sizes = [8, 8, 64], strides = [1, 1, 1]} : vector<9x9x64xf32> to vector<8x8x64xf32>
    %10 = arith.maximumf %8, %9 : vector<8x8x64xf32>
    %11 = vector.extract_strided_slice %1 {offsets = [1, 0, 0], sizes = [8, 8, 64], strides = [1, 1, 1]} : vector<9x9x64xf32> to vector<8x8x64xf32>
    %12 = arith.maximumf %10, %11 : vector<8x8x64xf32>
    %13 = vector.extract_strided_slice %1 {offsets = [1, 1, 0], sizes = [8, 8, 64], strides = [1, 1, 1]} : vector<9x9x64xf32> to vector<8x8x64xf32>
    %14 = arith.maximumf %12, %13 : vector<8x8x64xf32>
    %15 = vector.extract_strided_slice %3 {offsets = [0, 0, 0], sizes = [8, 8, 64], strides = [1, 1, 1]} : vector<9x9x64xf32> to vector<8x8x64xf32>
    %16 = arith.maximumf %14, %15 : vector<8x8x64xf32>
    %17 = vector.extract_strided_slice %3 {offsets = [1, 0, 0], sizes = [8, 8, 64], strides = [1, 1, 1]} : vector<9x9x64xf32> to vector<8x8x64xf32>
    %18 = arith.maximumf %16, %17 : vector<8x8x64xf32>
    %19 = vector.extract_strided_slice %5 {offsets = [0, 0, 0], sizes = [8, 8, 64], strides = [1, 1, 1]} : vector<9x9x64xf32> to vector<8x8x64xf32>
    %20 = arith.maximumf %18, %19 : vector<8x8x64xf32>
    %21 = vector.extract_strided_slice %5 {offsets = [0, 1, 0], sizes = [8, 8, 64], strides = [1, 1, 1]} : vector<9x9x64xf32> to vector<8x8x64xf32>
    %22 = arith.maximumf %20, %21 : vector<8x8x64xf32>
    %23 = vector.extract_strided_slice %7 {offsets = [0, 0, 0], sizes = [8, 8, 64], strides = [1, 1, 1]} : vector<9x9x64xf32> to vector<8x8x64xf32>
    %24 = arith.maximumf %22, %23 : vector<8x8x64xf32>
    %c0_15 = arith.constant 0 : index
    %c0_16 = arith.constant 0 : index
    %c0_17 = arith.constant 0 : index
    %c0_18 = arith.constant 0 : index
    %25 = vector.load %arg5[%c0_15, %c0_16, %c0_17, %c0_18] : memref<1x8x8x64xf32, #tpu.memory_space<vmem>>, vector<1x8x8x64xf32>
    %26 = vector.shape_cast %25 : vector<1x8x8x64xf32> to vector<8x8x64xf32>
    %27 = vector.shape_cast %24 : vector<8x8x64xf32> to vector<1x8x8x64xf32>
    tpu.vector_store %arg5[%c0_15, %c0_16, %c0_17, %c0_18], %27 {strides = array<i32>} : memref<1x8x8x64xf32, #tpu.memory_space<vmem>>, vector<1x8x8x64xf32>,
    return
  }
  func.func @transform_0(%arg0: i32) -> (i32, i32, i32, i32) {
    %c0_i32 = arith.constant 0 : i32
    %c0_i32_0 = arith.constant 0 : i32
    %c0_i32_1 = arith.constant 0 : i32
    %c0_i32_2 = arith.constant 0 : i32
    return %arg0, %c0_i32, %c0_i32_0, %c0_i32_1 : i32, i32, i32, i32
  }
  func.func @transform_1(%arg0: i32) -> (i32, i32, i32, i32) {
    %c0_i32 = arith.constant 0 : i32
    %c0_i32_0 = arith.constant 0 : i32
    %c0_i32_1 = arith.constant 0 : i32
    %c0_i32_2 = arith.constant 0 : i32
    return %arg0, %c0_i32, %c0_i32_0, %c0_i32_1 : i32, i32, i32, i32
  }
  func.func @transform_2(%arg0: i32) -> (i32, i32, i32, i32) {
    %c0_i32 = arith.constant 0 : i32
    %c0_i32_0 = arith.constant 0 : i32
    %c0_i32_1 = arith.constant 0 : i32
    %c0_i32_2 = arith.constant 0 : i32
    return %arg0, %c0_i32, %c0_i32_0, %c0_i32_1 : i32, i32, i32, i32
  }
  func.func @transform_3(%arg0: i32) -> (i32, i32, i32, i32) {
    %c0_i32 = arith.constant 0 : i32
    %c0_i32_0 = arith.constant 0 : i32
    %c0_i32_1 = arith.constant 0 : i32
    %c0_i32_2 = arith.constant 0 : i32
    return %arg0, %c0_i32, %c0_i32_0, %c0_i32_1 : i32, i32, i32, i32
  }
  func.func @transform_4(%arg0: i32) -> (i32, i32, i32, i32) {
    %c0_i32 = arith.constant 0 : i32
    %c0_i32_0 = arith.constant 0 : i32
    %c0_i32_1 = arith.constant 0 : i32
    %c0_i32_2 = arith.constant 0 : i32
    return %arg0, %c0_i32, %c0_i32_0, %c0_i32_1 : i32, i32, i32, i32
  }
}

module attributes {stable_mosaic.version = 11 : i64} {
  func.func @_bn_relu_kernel(%arg0: i32, %arg1: memref<1x64x64xf32, #tpu.memory_space<vmem>>, %arg2: memref<1x64xf32, #tpu.memory_space<vmem>>, %arg3: memref<1x64xf32, #tpu.memory_space<vmem>>, %arg4: memref<1x64x64xf32, #tpu.memory_space<vmem>>) attributes {dimension_semantics = [#tpu.dimension_semantics<parallel>], iteration_bounds = array<i64: 2>, scalar_prefetch = 0 : i64, scratch_operands = 0 : i64, tpu.core_type = #tpu.core_type<tc>, window_params = [{transform_indices = @transform_0, window_bounds = array<i64: 1, 64, 64>}, {pipeline_mode = #tpu.pipeline_mode<synchronous>, transform_indices = @transform_1, window_bounds = array<i64: 1, 64>}, {pipeline_mode = #tpu.pipeline_mode<synchronous>, transform_indices = @transform_2, window_bounds = array<i64: 1, 64>}, {transform_indices = @transform_3, window_bounds = array<i64: 1, 64, 64>}]} {
    %c0 = arith.constant 0 : index
    %c0_0 = arith.constant 0 : index
    %c0_1 = arith.constant 0 : index
    %0 = vector.load %arg1[%c0, %c0_0, %c0_1] : memref<1x64x64xf32, #tpu.memory_space<vmem>>, vector<1x64x64xf32>
    %1 = vector.shape_cast %0 : vector<1x64x64xf32> to vector<64x64xf32>
    %cst = arith.constant dense<0.000000e+00> : vector<64xf32>
    %2 = vector.multi_reduction <add>, %1, %cst [0] : vector<64x64xf32> to vector<64xf32>
    %3 = vector.shape_cast %2 : vector<64xf32> to vector<1x64xf32>
    %4 = arith.mulf %1, %1 : vector<64x64xf32>
    %cst_2 = arith.constant dense<0.000000e+00> : vector<64xf32>
    %5 = vector.multi_reduction <add>, %4, %cst_2 [0] : vector<64x64xf32> to vector<64xf32>
    %6 = vector.shape_cast %5 : vector<64xf32> to vector<1x64xf32>
    %cst_3 = arith.constant 1.562500e-02 : f32
    %7 = vector.broadcast %cst_3 : f32 to vector<1x64xf32>
    %8 = arith.mulf %3, %7 : vector<1x64xf32>
    %cst_4 = arith.constant 1.562500e-02 : f32
    %9 = vector.broadcast %cst_4 : f32 to vector<1x64xf32>
    %10 = arith.mulf %6, %9 : vector<1x64xf32>
    %11 = arith.mulf %8, %8 : vector<1x64xf32>
    %12 = arith.subf %10, %11 : vector<1x64xf32>
    %cst_5 = arith.constant 0.000000e+00 : f32
    %13 = vector.broadcast %cst_5 : f32 to vector<1x64xf32>
    %14 = arith.maximumf %12, %13 : vector<1x64xf32>
    %cst_6 = arith.constant 9.99999974E-6 : f32
    %15 = vector.broadcast %cst_6 : f32 to vector<1x64xf32>
    %16 = arith.addf %14, %15 : vector<1x64xf32>
    %17 = math.rsqrt %16 : vector<1x64xf32>
    %18 = vector.broadcast %8 : vector<1x64xf32> to vector<64x64xf32>
    %19 = arith.subf %1, %18 : vector<64x64xf32>
    %c0_7 = arith.constant 0 : index
    %c0_8 = arith.constant 0 : index
    %20 = vector.load %arg2[%c0_7, %c0_8] : memref<1x64xf32, #tpu.memory_space<vmem>>, vector<1x64xf32>
    %21 = arith.mulf %17, %20 : vector<1x64xf32>
    %22 = vector.broadcast %21 : vector<1x64xf32> to vector<64x64xf32>
    %23 = arith.mulf %19, %22 : vector<64x64xf32>
    %c0_9 = arith.constant 0 : index
    %c0_10 = arith.constant 0 : index
    %24 = vector.load %arg3[%c0_9, %c0_10] : memref<1x64xf32, #tpu.memory_space<vmem>>, vector<1x64xf32>
    %25 = vector.broadcast %24 : vector<1x64xf32> to vector<64x64xf32>
    %26 = arith.addf %23, %25 : vector<64x64xf32>
    %cst_11 = arith.constant 0.000000e+00 : f32
    %27 = vector.broadcast %cst_11 : f32 to vector<64x64xf32>
    %28 = arith.maximumf %26, %27 : vector<64x64xf32>
    %c0_12 = arith.constant 0 : index
    %c0_13 = arith.constant 0 : index
    %c0_14 = arith.constant 0 : index
    %29 = vector.load %arg4[%c0_12, %c0_13, %c0_14] : memref<1x64x64xf32, #tpu.memory_space<vmem>>, vector<1x64x64xf32>
    %30 = vector.shape_cast %29 : vector<1x64x64xf32> to vector<64x64xf32>
    %31 = vector.shape_cast %28 : vector<64x64xf32> to vector<1x64x64xf32>
    tpu.vector_store %arg4[%c0_12, %c0_13, %c0_14], %31 {strides = array<i32>} : memref<1x64x64xf32, #tpu.memory_space<vmem>>, vector<1x64x64xf32>,
    return
  }
  func.func @transform_0(%arg0: i32) -> (i32, i32, i32) {
    %c0_i32 = arith.constant 0 : i32
    %c0_i32_0 = arith.constant 0 : i32
    %c0_i32_1 = arith.constant 0 : i32
    return %arg0, %c0_i32, %c0_i32_0 : i32, i32, i32
  }
  func.func @transform_1(%arg0: i32) -> (i32, i32) {
    %c0_i32 = arith.constant 0 : i32
    %c0_i32_0 = arith.constant 0 : i32
    %c0_i32_1 = arith.constant 0 : i32
    return %c0_i32, %c0_i32_0 : i32, i32
  }
  func.func @transform_2(%arg0: i32) -> (i32, i32) {
    %c0_i32 = arith.constant 0 : i32
    %c0_i32_0 = arith.constant 0 : i32
    %c0_i32_1 = arith.constant 0 : i32
    return %c0_i32, %c0_i32_0 : i32, i32
  }
  func.func @transform_3(%arg0: i32) -> (i32, i32, i32) {
    %c0_i32 = arith.constant 0 : i32
    %c0_i32_0 = arith.constant 0 : i32
    %c0_i32_1 = arith.constant 0 : i32
    return %arg0, %c0_i32, %c0_i32_0 : i32, i32, i32
  }
}

module attributes {stable_mosaic.version = 11 : i64} {
  func.func @_matmul_kernel(%arg0: i32, %arg1: i32, %arg2: i32, %arg3: memref<128x128xbf16, #tpu.memory_space<vmem>>, %arg4: memref<128x128xbf16, #tpu.memory_space<vmem>>, %arg5: memref<128x128xf32, #tpu.memory_space<vmem>>, %arg6: memref<128x128xf32, #tpu.memory_space<vmem>>) attributes {dimension_semantics = [#tpu.dimension_semantics<parallel>, #tpu.dimension_semantics<parallel>, #tpu.dimension_semantics<arbitrary>], iteration_bounds = array<i64: 1, 1, 1>, scalar_prefetch = 0 : i64, scratch_operands = 1 : i64, tpu.core_type = #tpu.core_type<tc>, window_params = [{transform_indices = @transform_0, window_bounds = array<i64: 128, 128>}, {transform_indices = @transform_1, window_bounds = array<i64: 128, 128>}, {transform_indices = @transform_2, window_bounds = array<i64: 128, 128>}]} {
    %c0_i32 = arith.constant 0 : i32
    %0 = arith.cmpi eq, %arg2, %c0_i32 : i32
    %1 = arith.extui %0 : i1 to i32
    %c0_i32_0 = arith.constant 0 : i32
    %2 = arith.cmpi ne, %1, %c0_i32_0 : i32
    scf.if %2 {
      %cst_10 = arith.constant 0.000000e+00 : f32
      %12 = vector.broadcast %cst_10 : f32 to vector<128x128xf32>
      %c0_11 = arith.constant 0 : index
      %c0_12 = arith.constant 0 : index
      %13 = vector.load %arg6[%c0_11, %c0_12] : memref<128x128xf32, #tpu.memory_space<vmem>>, vector<128x128xf32>
      tpu.vector_store %arg6[%c0_11, %c0_12], %12 {strides = array<i32>} : memref<128x128xf32, #tpu.memory_space<vmem>>, vector<128x128xf32>,
    } else {
    }
    %c0 = arith.constant 0 : index
    %c0_1 = arith.constant 0 : index
    %3 = vector.load %arg6[%c0, %c0_1] : memref<128x128xf32, #tpu.memory_space<vmem>>, vector<128x128xf32>
    %c0_2 = arith.constant 0 : index
    %c0_3 = arith.constant 0 : index
    %4 = vector.load %arg3[%c0_2, %c0_3] : memref<128x128xbf16, #tpu.memory_space<vmem>>, vector<128x128xbf16>
    %c0_4 = arith.constant 0 : index
    %c0_5 = arith.constant 0 : index
    %5 = vector.load %arg4[%c0_4, %c0_5] : memref<128x128xbf16, #tpu.memory_space<vmem>>, vector<128x128xbf16>
    %cst = arith.constant dense<0.000000e+00> : vector<128x128xf32>
    %6 = tpu.matmul %4, %5, %cst {dimension_numbers = #tpu.dot_dimension_numbers<[1], [0], [0], [1], [0, 0, 1, 1], [], []>} : vector<128x128xbf16>, vector<128x128xbf16>, vector<128x128xf32> -> vector<128x128xf32>
    %7 = arith.addf %3, %6 : vector<128x128xf32>
    %c0_6 = arith.constant 0 : index
    %c0_7 = arith.constant 0 : index
    %8 = vector.load %arg6[%c0_6, %c0_7] : memref<128x128xf32, #tpu.memory_space<vmem>>, vector<128x128xf32>
    tpu.vector_store %arg6[%c0_6, %c0_7], %7 {strides = array<i32>} : memref<128x128xf32, #tpu.memory_space<vmem>>, vector<128x128xf32>,
    %c0_i32_8 = arith.constant 0 : i32
    %9 = arith.cmpi eq, %arg2, %c0_i32_8 : i32
    %10 = arith.extui %9 : i1 to i32
    %c0_i32_9 = arith.constant 0 : i32
    %11 = arith.cmpi ne, %10, %c0_i32_9 : i32
    scf.if %11 {
      %c0_10 = arith.constant 0 : index
      %c0_11 = arith.constant 0 : index
      %12 = vector.load %arg6[%c0_10, %c0_11] : memref<128x128xf32, #tpu.memory_space<vmem>>, vector<128x128xf32>
      %c0_12 = arith.constant 0 : index
      %c0_13 = arith.constant 0 : index
      %13 = vector.load %arg5[%c0_12, %c0_13] : memref<128x128xf32, #tpu.memory_space<vmem>>, vector<128x128xf32>
      tpu.vector_store %arg5[%c0_12, %c0_13], %12 {strides = array<i32>} : memref<128x128xf32, #tpu.memory_space<vmem>>, vector<128x128xf32>,
    } else {
    }
    return
  }
  func.func @transform_0(%arg0: i32, %arg1: i32, %arg2: i32) -> (i32, i32) {
    %c0_i32 = arith.constant 0 : i32
    return %arg0, %arg2 : i32, i32
  }
  func.func @transform_1(%arg0: i32, %arg1: i32, %arg2: i32) -> (i32, i32) {
    %c0_i32 = arith.constant 0 : i32
    return %arg2, %arg1 : i32, i32
  }
  func.func @transform_2(%arg0: i32, %arg1: i32, %arg2: i32) -> (i32, i32) {
    %c0_i32 = arith.constant 0 : i32
    return %arg0, %arg1 : i32, i32
  }
}

module attributes {stable_mosaic.version = 11 : i64} {
  func.func @_bn_relu_kernel(%arg0: i32, %arg1: memref<1x64x128xf32, #tpu.memory_space<vmem>>, %arg2: memref<1x128xf32, #tpu.memory_space<vmem>>, %arg3: memref<1x128xf32, #tpu.memory_space<vmem>>, %arg4: memref<1x64x128xf32, #tpu.memory_space<vmem>>) attributes {dimension_semantics = [#tpu.dimension_semantics<parallel>], iteration_bounds = array<i64: 2>, scalar_prefetch = 0 : i64, scratch_operands = 0 : i64, tpu.core_type = #tpu.core_type<tc>, window_params = [{transform_indices = @transform_0, window_bounds = array<i64: 1, 64, 128>}, {pipeline_mode = #tpu.pipeline_mode<synchronous>, transform_indices = @transform_1, window_bounds = array<i64: 1, 128>}, {pipeline_mode = #tpu.pipeline_mode<synchronous>, transform_indices = @transform_2, window_bounds = array<i64: 1, 128>}, {transform_indices = @transform_3, window_bounds = array<i64: 1, 64, 128>}]} {
    %c0 = arith.constant 0 : index
    %c0_0 = arith.constant 0 : index
    %c0_1 = arith.constant 0 : index
    %0 = vector.load %arg1[%c0, %c0_0, %c0_1] : memref<1x64x128xf32, #tpu.memory_space<vmem>>, vector<1x64x128xf32>
    %1 = vector.shape_cast %0 : vector<1x64x128xf32> to vector<64x128xf32>
    %cst = arith.constant dense<0.000000e+00> : vector<128xf32>
    %2 = vector.multi_reduction <add>, %1, %cst [0] : vector<64x128xf32> to vector<128xf32>
    %3 = vector.shape_cast %2 : vector<128xf32> to vector<1x128xf32>
    %4 = arith.mulf %1, %1 : vector<64x128xf32>
    %cst_2 = arith.constant dense<0.000000e+00> : vector<128xf32>
    %5 = vector.multi_reduction <add>, %4, %cst_2 [0] : vector<64x128xf32> to vector<128xf32>
    %6 = vector.shape_cast %5 : vector<128xf32> to vector<1x128xf32>
    %cst_3 = arith.constant 1.562500e-02 : f32
    %7 = vector.broadcast %cst_3 : f32 to vector<1x128xf32>
    %8 = arith.mulf %3, %7 : vector<1x128xf32>
    %cst_4 = arith.constant 1.562500e-02 : f32
    %9 = vector.broadcast %cst_4 : f32 to vector<1x128xf32>
    %10 = arith.mulf %6, %9 : vector<1x128xf32>
    %11 = arith.mulf %8, %8 : vector<1x128xf32>
    %12 = arith.subf %10, %11 : vector<1x128xf32>
    %cst_5 = arith.constant 0.000000e+00 : f32
    %13 = vector.broadcast %cst_5 : f32 to vector<1x128xf32>
    %14 = arith.maximumf %12, %13 : vector<1x128xf32>
    %cst_6 = arith.constant 9.99999974E-6 : f32
    %15 = vector.broadcast %cst_6 : f32 to vector<1x128xf32>
    %16 = arith.addf %14, %15 : vector<1x128xf32>
    %17 = math.rsqrt %16 : vector<1x128xf32>
    %18 = vector.broadcast %8 : vector<1x128xf32> to vector<64x128xf32>
    %19 = arith.subf %1, %18 : vector<64x128xf32>
    %c0_7 = arith.constant 0 : index
    %c0_8 = arith.constant 0 : index
    %20 = vector.load %arg2[%c0_7, %c0_8] : memref<1x128xf32, #tpu.memory_space<vmem>>, vector<1x128xf32>
    %21 = arith.mulf %17, %20 : vector<1x128xf32>
    %22 = vector.broadcast %21 : vector<1x128xf32> to vector<64x128xf32>
    %23 = arith.mulf %19, %22 : vector<64x128xf32>
    %c0_9 = arith.constant 0 : index
    %c0_10 = arith.constant 0 : index
    %24 = vector.load %arg3[%c0_9, %c0_10] : memref<1x128xf32, #tpu.memory_space<vmem>>, vector<1x128xf32>
    %25 = vector.broadcast %24 : vector<1x128xf32> to vector<64x128xf32>
    %26 = arith.addf %23, %25 : vector<64x128xf32>
    %cst_11 = arith.constant 0.000000e+00 : f32
    %27 = vector.broadcast %cst_11 : f32 to vector<64x128xf32>
    %28 = arith.maximumf %26, %27 : vector<64x128xf32>
    %c0_12 = arith.constant 0 : index
    %c0_13 = arith.constant 0 : index
    %c0_14 = arith.constant 0 : index
    %29 = vector.load %arg4[%c0_12, %c0_13, %c0_14] : memref<1x64x128xf32, #tpu.memory_space<vmem>>, vector<1x64x128xf32>
    %30 = vector.shape_cast %29 : vector<1x64x128xf32> to vector<64x128xf32>
    %31 = vector.shape_cast %28 : vector<64x128xf32> to vector<1x64x128xf32>
    tpu.vector_store %arg4[%c0_12, %c0_13, %c0_14], %31 {strides = array<i32>} : memref<1x64x128xf32, #tpu.memory_space<vmem>>, vector<1x64x128xf32>,
    return
  }
  func.func @transform_0(%arg0: i32) -> (i32, i32, i32) {
    %c0_i32 = arith.constant 0 : i32
    %c0_i32_0 = arith.constant 0 : i32
    %c0_i32_1 = arith.constant 0 : i32
    return %arg0, %c0_i32, %c0_i32_0 : i32, i32, i32
  }
  func.func @transform_1(%arg0: i32) -> (i32, i32) {
    %c0_i32 = arith.constant 0 : i32
    %c0_i32_0 = arith.constant 0 : i32
    %c0_i32_1 = arith.constant 0 : i32
    return %c0_i32, %c0_i32_0 : i32, i32
  }
  func.func @transform_2(%arg0: i32) -> (i32, i32) {
    %c0_i32 = arith.constant 0 : i32
    %c0_i32_0 = arith.constant 0 : i32
    %c0_i32_1 = arith.constant 0 : i32
    return %c0_i32, %c0_i32_0 : i32, i32
  }
  func.func @transform_3(%arg0: i32) -> (i32, i32, i32) {
    %c0_i32 = arith.constant 0 : i32
    %c0_i32_0 = arith.constant 0 : i32
    %c0_i32_1 = arith.constant 0 : i32
    return %arg0, %c0_i32, %c0_i32_0 : i32, i32, i32
  }
}

module attributes {stable_mosaic.version = 11 : i64} {
  func.func @_matmul_kernel(%arg0: i32, %arg1: i32, %arg2: i32, %arg3: memref<128x384xbf16, #tpu.memory_space<vmem>>, %arg4: memref<384x128xbf16, #tpu.memory_space<vmem>>, %arg5: memref<128x128xf32, #tpu.memory_space<vmem>>, %arg6: memref<128x128xf32, #tpu.memory_space<vmem>>) attributes {dimension_semantics = [#tpu.dimension_semantics<parallel>, #tpu.dimension_semantics<parallel>, #tpu.dimension_semantics<arbitrary>], iteration_bounds = array<i64: 1, 1, 3>, scalar_prefetch = 0 : i64, scratch_operands = 1 : i64, tpu.core_type = #tpu.core_type<tc>, window_params = [{transform_indices = @transform_0, window_bounds = array<i64: 128, 384>}, {transform_indices = @transform_1, window_bounds = array<i64: 384, 128>}, {transform_indices = @transform_2, window_bounds = array<i64: 128, 128>}]} {
    %c0_i32 = arith.constant 0 : i32
    %0 = arith.cmpi eq, %arg2, %c0_i32 : i32
    %1 = arith.extui %0 : i1 to i32
    %c0_i32_0 = arith.constant 0 : i32
    %2 = arith.cmpi ne, %1, %c0_i32_0 : i32
    scf.if %2 {
      %cst_9 = arith.constant 0.000000e+00 : f32
      %12 = vector.broadcast %cst_9 : f32 to vector<128x128xf32>
      %c0_10 = arith.constant 0 : index
      %c0_11 = arith.constant 0 : index
      %13 = vector.load %arg6[%c0_10, %c0_11] : memref<128x128xf32, #tpu.memory_space<vmem>>, vector<128x128xf32>
      tpu.vector_store %arg6[%c0_10, %c0_11], %12 {strides = array<i32>} : memref<128x128xf32, #tpu.memory_space<vmem>>, vector<128x128xf32>,
    } else {
    }
    %c0 = arith.constant 0 : index
    %c0_1 = arith.constant 0 : index
    %3 = vector.load %arg6[%c0, %c0_1] : memref<128x128xf32, #tpu.memory_space<vmem>>, vector<128x128xf32>
    %c0_2 = arith.constant 0 : index
    %c0_3 = arith.constant 0 : index
    %4 = vector.load %arg3[%c0_2, %c0_3] : memref<128x384xbf16, #tpu.memory_space<vmem>>, vector<128x384xbf16>
    %c0_4 = arith.constant 0 : index
    %c0_5 = arith.constant 0 : index
    %5 = vector.load %arg4[%c0_4, %c0_5] : memref<384x128xbf16, #tpu.memory_space<vmem>>, vector<384x128xbf16>
    %cst = arith.constant dense<0.000000e+00> : vector<128x128xf32>
    %6 = tpu.matmul %4, %5, %cst {dimension_numbers = #tpu.dot_dimension_numbers<[1], [0], [0], [1], [0, 0, 1, 1], [], []>} : vector<128x384xbf16>, vector<384x128xbf16>, vector<128x128xf32> -> vector<128x128xf32>
    %7 = arith.addf %3, %6 : vector<128x128xf32>
    %c0_6 = arith.constant 0 : index
    %c0_7 = arith.constant 0 : index
    %8 = vector.load %arg6[%c0_6, %c0_7] : memref<128x128xf32, #tpu.memory_space<vmem>>, vector<128x128xf32>
    tpu.vector_store %arg6[%c0_6, %c0_7], %7 {strides = array<i32>} : memref<128x128xf32, #tpu.memory_space<vmem>>, vector<128x128xf32>,
    %c2_i32 = arith.constant 2 : i32
    %9 = arith.cmpi eq, %arg2, %c2_i32 : i32
    %10 = arith.extui %9 : i1 to i32
    %c0_i32_8 = arith.constant 0 : i32
    %11 = arith.cmpi ne, %10, %c0_i32_8 : i32
    scf.if %11 {
      %c0_9 = arith.constant 0 : index
      %c0_10 = arith.constant 0 : index
      %12 = vector.load %arg6[%c0_9, %c0_10] : memref<128x128xf32, #tpu.memory_space<vmem>>, vector<128x128xf32>
      %c0_11 = arith.constant 0 : index
      %c0_12 = arith.constant 0 : index
      %13 = vector.load %arg5[%c0_11, %c0_12] : memref<128x128xf32, #tpu.memory_space<vmem>>, vector<128x128xf32>
      tpu.vector_store %arg5[%c0_11, %c0_12], %12 {strides = array<i32>} : memref<128x128xf32, #tpu.memory_space<vmem>>, vector<128x128xf32>,
    } else {
    }
    return
  }
  func.func @transform_0(%arg0: i32, %arg1: i32, %arg2: i32) -> (i32, i32) {
    %c0_i32 = arith.constant 0 : i32
    return %arg0, %arg2 : i32, i32
  }
  func.func @transform_1(%arg0: i32, %arg1: i32, %arg2: i32) -> (i32, i32) {
    %c0_i32 = arith.constant 0 : i32
    return %arg2, %arg1 : i32, i32
  }
  func.func @transform_2(%arg0: i32, %arg1: i32, %arg2: i32) -> (i32, i32) {
    %c0_i32 = arith.constant 0 : i32
    return %arg0, %arg1 : i32, i32
  }
}

module attributes {stable_mosaic.version = 11 : i64} {
  func.func @_l1_dist_kernel(%arg0: i32, %arg1: memref<1x1x6144xf32, #tpu.memory_space<vmem>>, %arg2: memref<40x6144xf32, #tpu.memory_space<vmem>>, %arg3: memref<1x1x40xf32, #tpu.memory_space<vmem>>) attributes {dimension_semantics = [#tpu.dimension_semantics<parallel>], iteration_bounds = array<i64: 2>, scalar_prefetch = 0 : i64, scratch_operands = 0 : i64, tpu.core_type = #tpu.core_type<tc>, window_params = [{transform_indices = @transform_0, window_bounds = array<i64: 1, 1, 6144>}, {pipeline_mode = #tpu.pipeline_mode<synchronous>, transform_indices = @transform_1, window_bounds = array<i64: 40, 6144>}, {transform_indices = @transform_2, window_bounds = array<i64: 1, 1, 40>}]} {
    %c0 = arith.constant 0 : index
    %c0_0 = arith.constant 0 : index
    %0 = vector.load %arg2[%c0, %c0_0] : memref<40x6144xf32, #tpu.memory_space<vmem>>, vector<40x6144xf32>
    %c0_1 = arith.constant 0 : index
    %c0_2 = arith.constant 0 : index
    %c0_3 = arith.constant 0 : index
    %1 = vector.load %arg1[%c0_1, %c0_2, %c0_3] : memref<1x1x6144xf32, #tpu.memory_space<vmem>>, vector<1x1x6144xf32>
    %2 = vector.shape_cast %1 : vector<1x1x6144xf32> to vector<1x6144xf32>
    %3 = vector.broadcast %2 : vector<1x6144xf32> to vector<40x6144xf32>
    %4 = arith.subf %0, %3 : vector<40x6144xf32>
    %5 = math.absf %4 : vector<40x6144xf32>
    %cst = arith.constant dense<0.000000e+00> : vector<40xf32>
    %6 = vector.multi_reduction <add>, %5, %cst [1] : vector<40x6144xf32> to vector<40xf32>
    %7 = vector.shape_cast %6 : vector<40xf32> to vector<1x1x40xf32>
    %c0_4 = arith.constant 0 : index
    %c0_5 = arith.constant 0 : index
    %c0_6 = arith.constant 0 : index
    %8 = vector.load %arg3[%c0_4, %c0_5, %c0_6] : memref<1x1x40xf32, #tpu.memory_space<vmem>>, vector<1x1x40xf32>
    tpu.vector_store %arg3[%c0_4, %c0_5, %c0_6], %7 {strides = array<i32>} : memref<1x1x40xf32, #tpu.memory_space<vmem>>, vector<1x1x40xf32>,
    return
  }
  func.func @transform_0(%arg0: i32) -> (i32, i32, i32) {
    %c0_i32 = arith.constant 0 : i32
    %c0_i32_0 = arith.constant 0 : i32
    %c0_i32_1 = arith.constant 0 : i32
    return %arg0, %c0_i32, %c0_i32_0 : i32, i32, i32
  }
  func.func @transform_1(%arg0: i32) -> (i32, i32) {
    %c0_i32 = arith.constant 0 : i32
    %c0_i32_0 = arith.constant 0 : i32
    %c0_i32_1 = arith.constant 0 : i32
    return %c0_i32, %c0_i32_0 : i32, i32
  }
  func.func @transform_2(%arg0: i32) -> (i32, i32, i32) {
    %c0_i32 = arith.constant 0 : i32
    %c0_i32_0 = arith.constant 0 : i32
    %c0_i32_1 = arith.constant 0 : i32
    return %arg0, %c0_i32, %c0_i32_0 : i32, i32, i32
  }
}

module attributes {stable_mosaic.version = 11 : i64} {
  func.func @_knn_frac_kernel(%arg0: memref<2x29xf32, #tpu.memory_space<vmem>>, %arg1: memref<2x29xf32, #tpu.memory_space<vmem>>, %arg2: memref<2x1xf32, #tpu.memory_space<vmem>>, %arg3: memref<2x1xf32, #tpu.memory_space<vmem>>) attributes {dimension_semantics = [], scalar_prefetch = 0 : i64, scratch_operands = 0 : i64, tpu.core_type = #tpu.core_type<tc>} {
    %c0 = arith.constant 0 : index
    %c0_0 = arith.constant 0 : index
    %0 = vector.load %arg0[%c0, %c0_0] : memref<2x29xf32, #tpu.memory_space<vmem>>, vector<2x29xf32>
    %cst = arith.constant 0.000000e+00 : f32
    %1 = vector.broadcast %cst : f32 to vector<2x29xf32>
    %2 = arith.subf %1, %0 : vector<2x29xf32>
    %c0_1 = arith.constant 0 : index
    %c0_2 = arith.constant 0 : index
    %3 = vector.load %arg2[%c0_1, %c0_2] : memref<2x1xf32, #tpu.memory_space<vmem>>, vector<2x1xf32>
    %4 = vector.broadcast %3 : vector<2x1xf32> to vector<2x29xf32>
    %5 = arith.mulf %2, %4 : vector<2x29xf32>
    %6 = math.exp %5 : vector<2x29xf32>
    %c0_3 = arith.constant 0 : index
    %c0_4 = arith.constant 0 : index
    %7 = vector.load %arg1[%c0_3, %c0_4] : memref<2x29xf32, #tpu.memory_space<vmem>>, vector<2x29xf32>
    %8 = arith.mulf %6, %7 : vector<2x29xf32>
    %cst_5 = arith.constant dense<0.000000e+00> : vector<2xf32>
    %9 = vector.multi_reduction <add>, %8, %cst_5 [1] : vector<2x29xf32> to vector<2xf32>
    %10 = vector.shape_cast %9 : vector<2xf32> to vector<2x1xf32>
    %cst_6 = arith.constant dense<0.000000e+00> : vector<2xf32>
    %11 = vector.multi_reduction <add>, %6, %cst_6 [1] : vector<2x29xf32> to vector<2xf32>
    %12 = vector.shape_cast %11 : vector<2xf32> to vector<2x1xf32>
    %13 = arith.divf %10, %12 : vector<2x1xf32>
    %c0_7 = arith.constant 0 : index
    %c0_8 = arith.constant 0 : index
    %14 = vector.load %arg3[%c0_7, %c0_8] : memref<2x1xf32, #tpu.memory_space<vmem>>, vector<2x1xf32>
    tpu.vector_store %arg3[%c0_7, %c0_8], %13 {strides = array<i32>} : memref<2x1xf32, #tpu.memory_space<vmem>>, vector<2x1xf32>,
    return
  }
}

</mosaic_0001>

<bundles_post_ra>
// kernel: custom_densenet_forward.10
= control target key start
LH: loop header
LB: loop body
LE: loop exit
PB: predicated region body
PF: predicated region fallthrough
CT: control target
= control target key end

     0   :  { %8 = vsyncpa [#allocation3], 0  ;;  %s1409_s0 = inlined_call_operand.vmem [shape: f32[2,256,64], index: 0, kind: input, shape index: {}]   ;;  %s1410_s1 = inlined_call_operand.hbm [shape: f32[1,64], index: 1, kind: input, shape index: {}]   ;;  %s1411_s2 = inlined_call_operand.hbm [shape: f32[1,64], index: 2, kind: input, shape index: {}]   ;;  %s1412_s3 = inlined_call_operand.vmem [shape: f32[2,256,64], index: 3, kind: output, shape index: {}]  }
   0x1   :  { %9 = vsyncpa [#allocation5], 0  ;;  %s800_s12 = smov 0  }
   0x2 LB: > { %s806_s13 = sadd.s32 4294967295, %s776_s12   ;;  %p659_p0 = scmp.ge.s32.totalorder %s776_s12, 1  ;;  %s776_s12 = sphi %s800_s12, %s15_s12  }
   0x3   : > { %p114_p1 = scmp.lt.s32.totalorder %s776_s12, 3  ;;  %p1413_p2 = scmp.eq.s32.totalorder %s806_s13, 0 }
   0x4   : > { %s778_s15 = smov [#allocation2]   ;;  %s779_s17 = smov [#allocation4]  }
   0x5   : > { %p811_p3 = pnand %p659_p0, %p114_p1  ;;  %s127_s16 = sshll.u32 %s778_s15, 4  ;;  %s128_s16 = int_to_ptr.vmem [resolvable:$true] %s127_s16 }
   0x6   : > { %s138_s18 = sshll.u32 %s779_s17, 4  ;;  %s706_s22 = scalar_lea.hbm %s1410_s1, 16  ;;  %s823_s18 = int_to_ptr.vmem [resolvable:$true] %s138_s18 }
   0x7   : > { %s1415_s14 = scalar_select %p811_p3, 1, 0 }
   0x8   : > { %p683_p4 = pneg %p811_p3  ;;  %p707_p6 = scmp.ne.s32.totalorder %s1410_s1, %s706_s22 }
   0x9   : > { %p713_p10 = scmp.lt.u32.totalorder %s706_s22, %s1410_s1 }
   0xa   : > { %p819_p5 = pnand %p1413_p2, %p683_p4 }
   0xc   : > { %p708_p7 = pneg %p819_p5 }
   0xe   : > { %p709_p8 = pnand %p708_p7, %p707_p6 }
  0x10   : > { %p710_p9 = pneg %p709_p8 }
  0x12   : > { %p715_p11 = pnand %p713_p10, %p710_p9 }
  0x14   : > { %718 = shalt.err (!%p715_p11)
}
  0x15   : > { %s719_s27 = scalar_lea.vmem %s128_s16, 16  ;;  %s726_s28 = scalar_lea.vmem %s128_s16, 32 }
  0x16   : > { %p720_p12 = scmp.ne.s32.totalorder %s128_s16, %s719_s27  ;;  %p727_p1 = scmp.lt.s32.totalorder %s128_s16, %s128_s16 }
  0x17   : > { %p728_p4 = scmp.lt.s32.totalorder %s726_s28, %s719_s27 }
  0x18   : > { %p722_p13 = pnand %p720_p12, %p708_p7 }
  0x19   : > { %p729_p2 = por %p728_p4, %p727_p1 }
  0x1a   : > { %p723_p0 = pneg %p722_p13 }
  0x1c   : > { %p730_p3 = pnand %p729_p2, %p723_p0 }
  0x1e   : > { %733 = shalt.err (!%p730_p3)
}
  0x1f   : > { %686 = dma.hbm_to_vmem [thread:$0]  (!%p819_p5), %s1410_s1, 16, %s128_s16, [#allocation3]  }
  0x20   : > { %s734_s6 = scalar_lea.hbm %s1411_s2, 16 }
  0x21   : > { %p735_p6 = scmp.ne.s32.totalorder %s1411_s2, %s734_s6  ;;  %p741_p3 = scmp.lt.u32.totalorder %s734_s6, %s1411_s2 }
  0x23   : > { %p737_p8 = pnand %p735_p6, %p708_p7 }
  0x25   : > { %p738_p2 = pneg %p737_p8 }
  0x27   : > { %p743_p9 = pnand %p741_p3, %p738_p2 }
  0x29   : > { %746 = shalt.err (!%p743_p9)
}
  0x2a   : > { %s747_s11 = scalar_lea.vmem %s823_s18, 16  ;;  %s754_s15 = scalar_lea.vmem %s823_s18, 32 }
  0x2b   : > { %p748_p10 = scmp.ne.s32.totalorder %s823_s18, %s747_s11  ;;  %p755_p13 = scmp.lt.s32.totalorder %s823_s18, %s823_s18 }
  0x2c   : > { %p756_p0 = scmp.lt.s32.totalorder %s754_s15, %s747_s11 }
  0x2d   : > { %p750_p11 = pnand %p748_p10, %p708_p7 }
  0x2e   : > { %p757_p1 = por %p756_p0, %p755_p13 }
  0x2f   : > { %p751_p12 = pneg %p750_p11 }
  0x31   : > { %p758_p4 = pnand %p757_p1, %p751_p12 }
  0x33   : > { %761 = shalt.err (!%p758_p4)
}
  0x34   : > { %689 = dma.hbm_to_vmem [thread:$0]  (!%p819_p5), %s1411_s2, 16, %s823_s18, [#allocation5]  }
  0x35   : > { %p1417_p6 = scmp.ne.s32.totalorder %s1415_s14, 0 }
  0x36   : > { %p1418_p7 = scmp.eq.s32.totalorder (!%p1417_p6), %s806_s13, 0 }
  0x37   : > { %159 = sbr.rel (%p1417_p6) target bundleno = 209 (0xd1), region = 32 }
  0x3e   : > { %767 = dma.done.wait (%p1418_p7), [#allocation3], 16   ;;  %p1419_p8 = pmov %p1418_p7 }
  0x3f   : > { %p1420_p2 = pmov %p1418_p7 }
  0x40   : > { %769 = vsyncadd (%p1419_p8), [#allocation3], 4294967280 }
  0x41   : > { %771 = dma.done.wait (%p1420_p2), [#allocation5], 16   ;;  %p1421_p3 = pmov %p1420_p2 }
  0x42   : > { %p187_p9 = scmp.lt.s32.totalorder %s806_s13, 1  ;;  %vm229_vm0 = vcmask 523264  }
  0x43   : > { %773 = vsyncadd (%p1421_p3), [#allocation5], 4294967280 }
  0x44   : > { %s1423_s13 = smov (!%p187_p9, %s806_s13), 1 }
  0x45   : > { %s673_s14 = sshll.u32 %s1423_s13, 8 }
  0x46   : > { %s893_s20 = scalar_lea.vmem %s1409_s0, %s673_s14  ;;  %s1240_s23 = scalar_lea.vmem %s1412_s3, %s673_s14 }
  0x47   : > { %v896_v0 = vld [vmem:[%s893_s20] sm:$0xff]  ;;  %v899_v1 = vld [vmem:[%s893_s20 + $0x8] sm:$0xff]  ;;  %v902_v2 = vld [vmem:[%s893_s20 + $0x10] sm:$0xff] }
  0x48   : > { %v905_v3 = vld [vmem:[%s893_s20 + $0x18] sm:$0xff]  ;;  %v230_v4 = vsel %vm229_vm0, %v896_v0, 0.0  ;;  %v231_v5 = vsel %vm229_vm0, %v899_v1, 0.0  ;;  %v233_v6 = vsel %vm229_vm0, %v902_v2, 0.0  ;;  %v914_v7 = vld [vmem:[%s893_s20 + $0x20] sm:$0xff]  ;;  %v919_v10 = vld [vmem:[%s893_s20 + $0x28] sm:$0xff]  ;;  %v299_v29 = vmul.f32 %v896_v0, %v896_v0 }
  0x49   : > { %v232_v8 = vadd.f32 %v231_v5, %v230_v4  ;;  %v235_v9 = vsel %vm229_vm0, %v905_v3, 0.0  ;;  %v237_v12 = vsel %vm229_vm0, %v914_v7, 0.0  ;;  %v924_v13 = vld [vmem:[%s893_s20 + $0x30] sm:$0xff]  ;;  %v239_v15 = vsel %vm229_vm0, %v919_v10, 0.0  ;;  %v929_v16 = vld [vmem:[%s893_s20 + $0x38] sm:$0xff]  ;;  %v934_v19 = vld [vmem:[%s893_s20 + $0x40] sm:$0xff] }
  0x4a   : > { %v241_v18 = vsel %vm229_vm0, %v924_v13, 0.0  ;;  %v243_v21 = vsel %vm229_vm0, %v929_v16, 0.0  ;;  %v939_v22 = vld [vmem:[%s893_s20 + $0x48] sm:$0xff]  ;;  %v245_v24 = vsel %vm229_vm0, %v934_v19, 0.0  ;;  %v944_v25 = vld [vmem:[%s893_s20 + $0x50] sm:$0xff]  ;;  %v947_v27 = vld [vmem:[%s893_s20 + $0x58] sm:$0xff]  ;;  %v300_v30 = vmul.f32 %v899_v1, %v899_v1 }
  0x4b   : > { %v234_v11 = vadd.f32 %v233_v6, %v232_v8  ;;  %v247_v28 = vsel %vm229_vm0, %v939_v22, 0.0  ;;  %v301_v31 = vmul.f32 %v902_v2, %v902_v2  ;;  %v249_v33 = vsel %vm229_vm0, %v944_v25, 0.0  ;;  %v962_v35 = vld [vmem:[%s893_s20 + $0x60] sm:$0xff]  ;;  %v972_v42 = vld [vmem:[%s893_s20 + $0x68] sm:$0xff]  ;;  %v980_v48 = vld [vmem:[%s893_s20 + $0x70] sm:$0xff] }
  0x4c   : > { %v302_v34 = vmul.f32 %v905_v3, %v905_v3  ;;  %v251_v37 = vsel %vm229_vm0, %v947_v27, 0.0  ;;  %v303_v38 = vmul.f32 %v914_v7, %v914_v7  ;;  %v331_v39 = vsel %vm229_vm0, %v299_v29, 0.0  ;;  %v988_v54 = vld [vmem:[%s893_s20 + $0x78] sm:$0xff]  ;;  %v996_v60 = vld [vmem:[%s893_s20 + $0x80] sm:$0xff]  ;;  %v1004_v6 = vld [vmem:[%s893_s20 + $0x88] sm:$0xff] }
  0x4d   : > { %v236_v14 = vadd.f32 %v235_v9, %v234_v11  ;;  %v332_v40 = vsel %vm229_vm0, %v300_v30, 0.0  ;;  %v334_v41 = vsel %vm229_vm0, %v301_v31, 0.0  ;;  %v253_v45 = vsel %vm229_vm0, %v962_v35, 0.0 }
  0x4e   : > { %v333_v44 = vadd.f32 %v332_v40, %v331_v39  ;;  %v304_v46 = vmul.f32 %v919_v10, %v919_v10  ;;  %v336_v47 = vsel %vm229_vm0, %v302_v34, 0.0  ;;  %v255_v51 = vsel %vm229_vm0, %v972_v42, 0.0  ;;  %v1036_v39 = vld [vmem:[%s893_s20 + $0xa8] sm:$0xff] }
  0x4f   : > { %v238_v17 = vadd.f32 %v237_v12, %v236_v14  ;;  %v305_v52 = vmul.f32 %v924_v13, %v924_v13  ;;  %v338_v53 = vsel %vm229_vm0, %v303_v38, 0.0  ;;  %v257_v57 = vsel %vm229_vm0, %v980_v48, 0.0 }
  0x50   : > { %v335_v50 = vadd.f32 %v334_v41, %v333_v44  ;;  %v306_v58 = vmul.f32 %v929_v16, %v929_v16  ;;  %v340_v59 = vsel %vm229_vm0, %v304_v46, 0.0  ;;  %v259_v63 = vsel %vm229_vm0, %v988_v54, 0.0  ;;  %v1044_v46 = vld [vmem:[%s893_s20 + $0xb0] sm:$0xff] }
  0x51   : > { %v240_v20 = vadd.f32 %v239_v15, %v238_v17  ;;  %v307_v4 = vmul.f32 %v934_v19, %v934_v19  ;;  %v342_v5 = vsel %vm229_vm0, %v305_v52, 0.0  ;;  %v261_v11 = vsel %vm229_vm0, %v996_v60, 0.0  ;;  %v1012_v15 = vld [vmem:[%s893_s20 + $0x90] sm:$0xff] }
  0x52   : > { %v337_v56 = vadd.f32 %v336_v47, %v335_v50  ;;  %v308_v12 = vmul.f32 %v939_v22, %v939_v22  ;;  %v344_v14 = vsel %vm229_vm0, %v306_v58, 0.0  ;;  %v265_v29 = vsel %vm229_vm0, %v1012_v15, 0.0 }
  0x53   : > { %v242_v23 = vadd.f32 %v241_v18, %v240_v20  ;;  %v263_v20 = vsel %vm229_vm0, %v1004_v6, 0.0  ;;  %v310_v30 = vmul.f32 %v947_v27, %v947_v27  ;;  %v312_v44 = vmul.f32 %v972_v42, %v972_v42 }
  0x54   : > { %v339_v62 = vadd.f32 %v338_v53, %v337_v56  ;;  %v348_v31 = vsel %vm229_vm0, %v308_v12, 0.0  ;;  %v271_v50 = vsel %vm229_vm0, %v1036_v39, 0.0  ;;  %v1052_v53 = vld [vmem:[%s893_s20 + $0xb8] sm:$0xff]  ;;  %v314_v58 = vmul.f32 %v988_v54, %v988_v54 }
  0x55   : > { %v244_v26 = vadd.f32 %v243_v21, %v242_v23  ;;  %v309_v21 = vmul.f32 %v944_v25, %v944_v25  ;;  %v346_v23 = vsel %vm229_vm0, %v307_v4, 0.0  ;;  %v275_v4 = vsel %vm229_vm0, %v1052_v53, 0.0 }
  0x56   : > { %v341_v9 = vadd.f32 %v340_v59, %v339_v62  ;;  %v356_v59 = vsel %vm229_vm0, %v312_v44, 0.0 }
  0x57   : > { %v246_v32 = vadd.f32 %v245_v24, %v244_v26  ;;  %v1020_v24 = vld [vmem:[%s893_s20 + $0x98] sm:$0xff]  ;;  %v350_v38 = vsel %vm229_vm0, %v309_v21, 0.0 }
  0x58   : > { %v343_v18 = vadd.f32 %v342_v5, %v341_v9  ;;  %v315_v5 = vmul.f32 %v996_v60, %v996_v60  ;;  %v1068_v9 = vld [vmem:[%s893_s20 + $0xc8] sm:$0xff] }
  0x59   : > { %v248_v36 = vadd.f32 %v247_v28, %v246_v32  ;;  %v1028_v32 = vld [vmem:[%s893_s20 + $0xa0] sm:$0xff] }
  0x5a   : > { %v345_v28 = vadd.f32 %v344_v14, %v343_v18  ;;  %v360_v18 = vsel %vm229_vm0, %v314_v58, 0.0  ;;  %v319_v44 = vmul.f32 %v1028_v32, %v1028_v32 }
  0x5b   : > { %v250_v43 = vadd.f32 %v249_v33, %v248_v36  ;;  %v267_v36 = vsel %vm229_vm0, %v1020_v24, 0.0 }
  0x5c   : > { %v347_v34 = vadd.f32 %v346_v23, %v345_v28  ;;  %v317_v28 = vmul.f32 %v1012_v15, %v1012_v15 }
  0x5d   : > { %v252_v49 = vadd.f32 %v251_v37, %v250_v43  ;;  %v311_v37 = vmul.f32 %v962_v35, %v962_v35  ;;  %v269_v43 = vsel %vm229_vm0, %v1028_v32, 0.0 }
  0x5e   : > { %v349_v41 = vadd.f32 %v348_v31, %v347_v34 }
  0x5f   : > { %v254_v55 = vadd.f32 %v253_v45, %v252_v49  ;;  %v352_v45 = vsel %vm229_vm0, %v310_v30, 0.0  ;;  %v354_v52 = vsel %vm229_vm0, %v311_v37, 0.0  ;;  %v1084_v30 = vld [vmem:[%s893_s20 + $0xd8] sm:$0xff] }
  0x60   : > { %v351_v49 = vadd.f32 %v350_v38, %v349_v41  ;;  %v1092_v38 = vld [vmem:[%s893_s20 + $0xe0] sm:$0xff] }
  0x61   : > { %v256_v61 = vadd.f32 %v255_v51, %v254_v55  ;;  %v313_v51 = vmul.f32 %v980_v48, %v980_v48 }
  0x62   : > { %v353_v56 = vadd.f32 %v352_v45, %v351_v49  ;;  %v366_v45 = vsel %vm229_vm0, %v317_v28, 0.0 }
  0x63   : > { %v258_v8 = vadd.f32 %v257_v57, %v256_v61  ;;  %v273_v57 = vsel %vm229_vm0, %v1044_v46, 0.0  ;;  %v1060_v61 = vld [vmem:[%s893_s20 + $0xc0] sm:$0xff] }
  0x64   : > { %v277_v14 = vsel %vm229_vm0, %v1060_v61, 0.0 }
  0x65   : > { %v260_v17 = vadd.f32 %v259_v63, %v258_v8  ;;  %v355_v63 = vadd.f32 %v354_v52, %v353_v56  ;;  %v358_v8 = vsel %vm229_vm0, %v313_v51, 0.0  ;;  %v285_v51 = vsel %vm229_vm0, %v1092_v38, 0.0  ;;  %v1108_v56 = vld [vmem:[%s893_s20 + $0xf0] sm:$0xff] }
  0x66   : > { %v320_v52 = vmul.f32 %v1036_v39, %v1036_v39 }
  0x67   : > { %v262_v26 = vadd.f32 %v261_v11, %v260_v17  ;;  %v357_v12 = vadd.f32 %v356_v59, %v355_v63  ;;  %v316_v17 = vmul.f32 %v1004_v6, %v1004_v6  ;;  %v370_v63 = vsel %vm229_vm0, %v319_v44, 0.0 }
  0x68   : > { %v326_v44 = vmul.f32 %v1084_v30, %v1084_v30 }
  0x69   : > { %v264_v33 = vadd.f32 %v263_v20, %v262_v26  ;;  %v1076_v20 = vld [vmem:[%s893_s20 + $0xd0] sm:$0xff]  ;;  %v359_v23 = vadd.f32 %v358_v8, %v357_v12  ;;  %v279_v26 = vsel %vm229_vm0, %v1068_v9, 0.0  ;;  %v364_v37 = vsel %vm229_vm0, %v316_v17, 0.0 }
  0x6a   : > { %v281_v34 = vsel %vm229_vm0, %v1076_v20, 0.0  ;;  %v322_v12 = vmul.f32 %v1052_v53, %v1052_v53 }
  0x6b   : > { %v266_v40 = vadd.f32 %v265_v29, %v264_v33  ;;  %v362_v29 = vsel %vm229_vm0, %v315_v5, 0.0  ;;  %v361_v33 = vadd.f32 %v360_v18, %v359_v23  ;;  %v323_v23 = vmul.f32 %v1060_v61, %v1060_v61 }
  0x6d   : > { %v268_v47 = vadd.f32 %v267_v36, %v266_v40  ;;  %v318_v36 = vmul.f32 %v1020_v24, %v1020_v24  ;;  %v363_v41 = vadd.f32 %v362_v29, %v361_v33  ;;  %v376_v33 = vsel %vm229_vm0, %v322_v12, 0.0 }
  0x6f   : > { %v270_v55 = vadd.f32 %v269_v43, %v268_v47  ;;  %v283_v43 = vsel %vm229_vm0, %v1084_v30, 0.0  ;;  %v1100_v47 = vld [vmem:[%s893_s20 + $0xe8] sm:$0xff] }
  0x70   : > { %v287_v59 = vsel %vm229_vm0, %v1100_v47, 0.0 }
  0x71   : > { %v272_v62 = vadd.f32 %v271_v50, %v270_v55  ;;  %v365_v50 = vadd.f32 %v364_v37, %v363_v41  ;;  %v368_v55 = vsel %vm229_vm0, %v318_v36, 0.0  ;;  %v325_v37 = vmul.f32 %v1076_v20, %v1076_v20 }
  0x73   : > { %v274_v11 = vadd.f32 %v273_v57, %v272_v62  ;;  %v367_v58 = vadd.f32 %v366_v45, %v365_v50  ;;  %v321_v62 = vmul.f32 %v1044_v46, %v1044_v46  ;;  %v327_v50 = vmul.f32 %v1092_v38, %v1092_v38 }
  0x75   : > { %v276_v21 = vadd.f32 %v275_v4, %v274_v11  ;;  %v1116_v4 = vld [vmem:[%s893_s20 + $0xf8] sm:$0xff]  ;;  %v369_v8 = vadd.f32 %v368_v55, %v367_v58  ;;  %v289_v11 = vsel %vm229_vm0, %v1108_v56, 0.0  ;;  %v384_v58 = vsel %vm229_vm0, %v326_v44, 0.0 }
  0x77   : > { %v278_v31 = vadd.f32 %v277_v14, %v276_v21  ;;  %v372_v14 = vsel %vm229_vm0, %v320_v52, 0.0  ;;  %v371_v18 = vadd.f32 %v370_v63, %v369_v8  ;;  %v291_v21 = vsel %vm229_vm0, %v1116_v4, 0.0 }
  0x78   : > { %v386_v63 = vsel %vm229_vm0, %v327_v50, 0.0 }
  0x79   : > { %v280_v40 = vadd.f32 %v279_v26, %v278_v31  ;;  %v374_v26 = vsel %vm229_vm0, %v321_v62, 0.0  ;;  %v373_v29 = vadd.f32 %v372_v14, %v371_v18  ;;  %v324_v31 = vmul.f32 %v1068_v9, %v1068_v9 }
  0x7a   : > { %v329_v62 = vmul.f32 %v1108_v56, %v1108_v56 }
  0x7b   : > { %v282_v49 = vadd.f32 %v281_v34, %v280_v40  ;;  %v375_v36 = vadd.f32 %v374_v26, %v373_v29  ;;  %v378_v40 = vsel %vm229_vm0, %v323_v23, 0.0  ;;  %v380_v45 = vsel %vm229_vm0, %v324_v31, 0.0 }
  0x7d   : > { %v284_v57 = vadd.f32 %v283_v43, %v282_v49  ;;  %v377_v43 = vadd.f32 %v376_v33, %v375_v36 }
  0x7f   : > { %v286_v5 = vadd.f32 %v285_v51, %v284_v57  ;;  %v379_v49 = vadd.f32 %v378_v40, %v377_v43  ;;  %v382_v51 = vsel %vm229_vm0, %v325_v37, 0.0  ;;  %v328_v57 = vmul.f32 %v1100_v47, %v1100_v47 }
  0x81   : > { %v288_v17 = vadd.f32 %v287_v59, %v286_v5  ;;  %v381_v55 = vadd.f32 %v380_v45, %v379_v49  ;;  %v388_v12 = vsel %vm229_vm0, %v328_v57, 0.0 }
  0x83   : > { %v290_v28 = vadd.f32 %v289_v11, %v288_v17  ;;  %v383_v59 = vadd.f32 %v382_v51, %v381_v55  ;;  %v330_v11 = vmul.f32 %v1116_v4, %v1116_v4  ;;  %v390_v17 = vsel %vm229_vm0, %v329_v62, 0.0 }
  0x85   : > { %v292_v34 = vadd.f32 %v291_v21, %v290_v28  ;;  %v385_v8 = vadd.f32 %v384_v58, %v383_v59  ;;  %v392_v23 = vsel %vm229_vm0, %v330_v11, 0.0  ;;  %v439_v11 = vld [vmem:[#allocation2] sm:$0x1] }
  0x87   : > { %v293_v41 = vrot.slane %v292_v34, 4  ;;  %v387_v14 = vadd.f32 %v386_v63, %v385_v8 }
  0x89   : > { %v294_v52 = vadd.f32 %v293_v41, %v292_v34  ;;  %v389_v21 = vadd.f32 %v388_v12, %v387_v14 }
  0x8b   : > { %v295_v5 = vrot.slane %v294_v52, 2  ;;  %v391_v26 = vadd.f32 %v390_v17, %v389_v21 }
  0x8d   : > { %v296_v18 = vadd.f32 %v295_v5, %v294_v52  ;;  %v393_v29 = vadd.f32 %v392_v23, %v391_v26  ;;  %v441_v52 = vlaneseq }
  0x8f   : > { %v297_v28 = vrot.slane %v296_v18, 1  ;;  %v394_v31 = vrot.slane %v393_v29, 4  ;;  %v442_v55 = vshrl.u32 %v441_v52, 7 }
  0x91   : > { %v298_v33 = vadd.f32 %v297_v28, %v296_v18  ;;  %v395_v34 = vadd.f32 %v394_v31, %v393_v29  ;;  %v443_v58 = vsub.s32 0, %v442_v55  ;;  %v1213_v31 = vld [vmem:[#allocation4] ss:$0 sm:$0xff] }
  0x93   : > { %v396_v36 = vrot.slane %v395_v34, 2  ;;  %v1151_v40 = vmul.f32 0.00390625, %v298_v33 }
  0x95   : > { %v397_v37 = vadd.f32 %v396_v36, %v395_v34  ;;  %v402_v44 = vmul.f32 %v1151_v40, %v1151_v40  ;;  %v407_v57 = vsub.f32 %v896_v0, %v1151_v40  ;;  %v408_v59 = vsub.f32 %v899_v1, %v1151_v40 }
  0x96   : > { %v409_v62 = vsub.f32 %v902_v2, %v1151_v40  ;;  %v410_v63 = vsub.f32 %v905_v3, %v1151_v40  ;;  %v411_v5 = vsub.f32 %v914_v7, %v1151_v40  ;;  %v412_v8 = vsub.f32 %v919_v10, %v1151_v40 }
  0x97   : > { %v398_v41 = vrot.slane %v397_v37, 1  ;;  %v413_v0 = vsub.f32 %v924_v13, %v1151_v40  ;;  %v414_v12 = vsub.f32 %v929_v16, %v1151_v40  ;;  %v415_v1 = vsub.f32 %v934_v19, %v1151_v40 }
  0x98   : > { %v416_v2 = vsub.f32 %v939_v22, %v1151_v40  ;;  %v417_v3 = vsub.f32 %v944_v25, %v1151_v40  ;;  %v418_v7 = vsub.f32 %v947_v27, %v1151_v40  ;;  %v419_v10 = vsub.f32 %v962_v35, %v1151_v40 }
  0x99   : > { %v399_v43 = vadd.f32 %v398_v41, %v397_v37  ;;  %v420_v13 = vsub.f32 %v972_v42, %v1151_v40  ;;  %v421_v16 = vsub.f32 %v980_v48, %v1151_v40  ;;  %v422_v19 = vsub.f32 %v988_v54, %v1151_v40 }
  0x9a   : > { %v423_v22 = vsub.f32 %v996_v60, %v1151_v40  ;;  %v424_v25 = vsub.f32 %v1004_v6, %v1151_v40  ;;  %v425_v35 = vsub.f32 %v1012_v15, %v1151_v40  ;;  %v426_v42 = vsub.f32 %v1020_v24, %v1151_v40 }
  0x9b   : > { %v401_v45 = vmul.f32 0.00390625, %v399_v43  ;;  %v427_v17 = vsub.f32 %v1028_v32, %v1151_v40  ;;  %v428_v48 = vsub.f32 %v1036_v39, %v1151_v40  ;;  %v429_v54 = vsub.f32 %v1044_v46, %v1151_v40 }
  0x9c   : > { %v430_v18 = vsub.f32 %v1052_v53, %v1151_v40  ;;  %v431_v21 = vsub.f32 %v1060_v61, %v1151_v40  ;;  %v432_v26 = vsub.f32 %v1068_v9, %v1151_v40  ;;  %v433_v28 = vsub.f32 %v1076_v20, %v1151_v40 }
  0x9d   : > { %v403_v49 = vsub.f32 %v401_v45, %v402_v44  ;;  %v434_v29 = vsub.f32 %v1084_v30, %v1151_v40  ;;  %v435_v33 = vsub.f32 %v1092_v38, %v1151_v40  ;;  %v436_v34 = vsub.f32 %v1100_v47, %v1151_v40 }
  0x9e   : > { %v437_v36 = vsub.f32 %v1108_v56, %v1151_v40  ;;  %v438_v37 = vsub.f32 %v1116_v4, %v1151_v40 }
  0x9f   : > { %v404_v50 = vmax.f32 %v403_v49, 0.0 }
  0xa1   : > { %v405_v51 = vadd.f32 1e-05, %v404_v50 }
  0xa3   : > { %704 = vrsqrt.f32 %v405_v51 }
  0xad   : > { %v705_v14 = vpop.eup %704 }
  0xae   : > { %v440_v27 = vmul.f32 %v705_v14, %v439_v11 }
  0xb0   : > { %v1205_v23 = vrot.slane %v440_v27, %v443_v58 }
  0xb2   : > { %v445_v41 = vmul.f32 %v1205_v23, %v407_v57  ;;  %v446_v43 = vmul.f32 %v1205_v23, %v408_v59  ;;  %v447_v44 = vmul.f32 %v1205_v23, %v409_v62  ;;  %v448_v45 = vmul.f32 %v1205_v23, %v410_v63 }
  0xb3   : > { %v449_v49 = vmul.f32 %v1205_v23, %v411_v5  ;;  %v450_v50 = vmul.f32 %v1205_v23, %v412_v8  ;;  %v451_v51 = vmul.f32 %v1205_v23, %v413_v0  ;;  %v452_v52 = vmul.f32 %v1205_v23, %v414_v12 }
  0xb4   : > { %v484_v55 = vadd.f32 %v1213_v31, %v445_v41  ;;  %v485_v58 = vadd.f32 %v1213_v31, %v446_v43  ;;  %v486_v57 = vadd.f32 %v1213_v31, %v447_v44  ;;  %v487_v59 = vadd.f32 %v1213_v31, %v448_v45 }
  0xb5   : > { %v488_v62 = vadd.f32 %v1213_v31, %v449_v49  ;;  %v489_v63 = vadd.f32 %v1213_v31, %v450_v50  ;;  %v490_v5 = vadd.f32 %v1213_v31, %v451_v51  ;;  %v491_v8 = vadd.f32 %v1213_v31, %v452_v52 }
  0xb6   : > { %v516_v11 = vmax.f32 %v484_v55, 0.0  ;;  %v517_v0 = vmax.f32 %v485_v58, 0.0  ;;  %v518_v12 = vmax.f32 %v486_v57, 0.0  ;;  %v519_v14 = vmax.f32 %v487_v59, 0.0 }
  0xb7   : > { %v520_v27 = vmax.f32 %v488_v62, 0.0  ;;  %v521_v41 = vmax.f32 %v489_v63, 0.0  ;;  %v522_v43 = vmax.f32 %v490_v5, 0.0  ;;  %v523_v44 = vmax.f32 %v491_v8, 0.0 }
  0xb8   : > { %548 = vst.msk [vmem:[%s1240_s23] sm:$0xff] %vm229_vm0, %v516_v11  ;;  %549 = vst.msk [vmem:[%s1240_s23 + $0x8] sm:$0xff] %vm229_vm0, %v517_v0  ;;  %v453_v45 = vmul.f32 %v1205_v23, %v415_v1  ;;  %v454_v49 = vmul.f32 %v1205_v23, %v416_v2  ;;  %v455_v50 = vmul.f32 %v1205_v23, %v417_v3 }
  0xb9   : > { %550 = vst.msk [vmem:[%s1240_s23 + $0x10] sm:$0xff] %vm229_vm0, %v518_v12  ;;  %551 = vst.msk [vmem:[%s1240_s23 + $0x18] sm:$0xff] %vm229_vm0, %v519_v14  ;;  %v456_v51 = vmul.f32 %v1205_v23, %v418_v7  ;;  %v457_v52 = vmul.f32 %v1205_v23, %v419_v10  ;;  %v458_v55 = vmul.f32 %v1205_v23, %v420_v13 }
  0xba   : > { %552 = vst.msk [vmem:[%s1240_s23 + $0x20] sm:$0xff] %vm229_vm0, %v520_v27  ;;  %553 = vst.msk [vmem:[%s1240_s23 + $0x28] sm:$0xff] %vm229_vm0, %v521_v41  ;;  %v459_v1 = vmul.f32 %v1205_v23, %v421_v16  ;;  %v460_v2 = vmul.f32 %v1205_v23, %v422_v19  ;;  %v492_v3 = vadd.f32 %v1213_v31, %v453_v45 }
  0xbb   : > { %554 = vst.msk [vmem:[%s1240_s23 + $0x30] sm:$0xff] %vm229_vm0, %v522_v43  ;;  %555 = vst.msk [vmem:[%s1240_s23 + $0x38] sm:$0xff] %vm229_vm0, %v523_v44  ;;  %v493_v7 = vadd.f32 %v1213_v31, %v454_v49  ;;  %v494_v58 = vadd.f32 %v1213_v31, %v455_v50  ;;  %v495_v57 = vadd.f32 %v1213_v31, %v456_v51 }
  0xbc   : > { %v496_v10 = vadd.f32 %v1213_v31, %v457_v52  ;;  %v497_v13 = vadd.f32 %v1213_v31, %v458_v55  ;;  %v498_v16 = vadd.f32 %v1213_v31, %v459_v1  ;;  %v499_v19 = vadd.f32 %v1213_v31, %v460_v2 }
  0xbd   : > { %v524_v59 = vmax.f32 %v492_v3, 0.0  ;;  %v525_v62 = vmax.f32 %v493_v7, 0.0  ;;  %v526_v63 = vmax.f32 %v494_v58, 0.0  ;;  %v527_v5 = vmax.f32 %v495_v57, 0.0 }
  0xbe   : > { %v528_v8 = vmax.f32 %v496_v10, 0.0  ;;  %v529_v11 = vmax.f32 %v497_v13, 0.0  ;;  %v530_v0 = vmax.f32 %v498_v16, 0.0  ;;  %v531_v12 = vmax.f32 %v499_v19, 0.0 }
  0xbf   : > { %556 = vst.msk [vmem:[%s1240_s23 + $0x40] sm:$0xff] %vm229_vm0, %v524_v59  ;;  %557 = vst.msk [vmem:[%s1240_s23 + $0x48] sm:$0xff] %vm229_vm0, %v525_v62  ;;  %v461_v14 = vmul.f32 %v1205_v23, %v423_v22  ;;  %v462_v27 = vmul.f32 %v1205_v23, %v424_v25  ;;  %v463_v41 = vmul.f32 %v1205_v23, %v425_v35 }
  0xc0   : > { %558 = vst.msk [vmem:[%s1240_s23 + $0x50] sm:$0xff] %vm229_vm0, %v526_v63  ;;  %559 = vst.msk [vmem:[%s1240_s23 + $0x58] sm:$0xff] %vm229_vm0, %v527_v5  ;;  %v464_v43 = vmul.f32 %v1205_v23, %v426_v42  ;;  %v465_v60 = vmul.f32 %v1205_v23, %v427_v17  ;;  %v466_v6 = vmul.f32 %v1205_v23, %v428_v48 }
  0xc1   : > { %560 = vst.msk [vmem:[%s1240_s23 + $0x60] sm:$0xff] %vm229_vm0, %v528_v8  ;;  %561 = vst.msk [vmem:[%s1240_s23 + $0x68] sm:$0xff] %vm229_vm0, %v529_v11  ;;  %v467_v15 = vmul.f32 %v1205_v23, %v429_v54  ;;  %v468_v24 = vmul.f32 %v1205_v23, %v430_v18  ;;  %v500_v22 = vadd.f32 %v1213_v31, %v461_v14 }
  0xc2   : > { %562 = vst.msk [vmem:[%s1240_s23 + $0x70] sm:$0xff] %vm229_vm0, %v530_v0  ;;  %563 = vst.msk [vmem:[%s1240_s23 + $0x78] sm:$0xff] %vm229_vm0, %v531_v12  ;;  %v501_v32 = vadd.f32 %v1213_v31, %v462_v27  ;;  %v502_v39 = vadd.f32 %v1213_v31, %v463_v41  ;;  %v503_v25 = vadd.f32 %v1213_v31, %v464_v43 }
  0xc3   : > { %v504_v46 = vadd.f32 %v1213_v31, %v465_v60  ;;  %v505_v35 = vadd.f32 %v1213_v31, %v466_v6  ;;  %v506_v53 = vadd.f32 %v1213_v31, %v467_v15  ;;  %v507_v42 = vadd.f32 %v1213_v31, %v468_v24 }
  0xc4   : > { %v532_v17 = vmax.f32 %v500_v22, 0.0  ;;  %v533_v48 = vmax.f32 %v501_v32, 0.0  ;;  %v534_v54 = vmax.f32 %v502_v39, 0.0  ;;  %v535_v18 = vmax.f32 %v503_v25, 0.0 }
  0xc5   : > { %v536_v44 = vmax.f32 %v504_v46, 0.0  ;;  %v537_v45 = vmax.f32 %v505_v35, 0.0  ;;  %v538_v49 = vmax.f32 %v506_v53, 0.0  ;;  %v539_v50 = vmax.f32 %v507_v42, 0.0 }
  0xc6   : > { %564 = vst.msk [vmem:[%s1240_s23 + $0x80] sm:$0xff] %vm229_vm0, %v532_v17  ;;  %565 = vst.msk [vmem:[%s1240_s23 + $0x88] sm:$0xff] %vm229_vm0, %v533_v48  ;;  %v469_v51 = vmul.f32 %v1205_v23, %v431_v21  ;;  %v470_v52 = vmul.f32 %v1205_v23, %v432_v26  ;;  %v471_v55 = vmul.f32 %v1205_v23, %v433_v28 }
  0xc7   : > { %566 = vst.msk [vmem:[%s1240_s23 + $0x90] sm:$0xff] %vm229_vm0, %v534_v54  ;;  %567 = vst.msk [vmem:[%s1240_s23 + $0x98] sm:$0xff] %vm229_vm0, %v535_v18  ;;  %v472_v1 = vmul.f32 %v1205_v23, %v434_v29  ;;  %v473_v61 = vmul.f32 %v1205_v23, %v435_v33  ;;  %v474_v9 = vmul.f32 %v1205_v23, %v436_v34 }
  0xc8   : > { %568 = vst.msk [vmem:[%s1240_s23 + $0xa0] sm:$0xff] %vm229_vm0, %v536_v44  ;;  %569 = vst.msk [vmem:[%s1240_s23 + $0xa8] sm:$0xff] %vm229_vm0, %v537_v45  ;;  %v475_v20 = vmul.f32 %v1205_v23, %v437_v36  ;;  %v476_v30 = vmul.f32 %v1205_v23, %v438_v37  ;;  %v508_v21 = vadd.f32 %v1213_v31, %v469_v51 }
  0xc9   : > { %570 = vst.msk [vmem:[%s1240_s23 + $0xb0] sm:$0xff] %vm229_vm0, %v538_v49  ;;  %571 = vst.msk [vmem:[%s1240_s23 + $0xb8] sm:$0xff] %vm229_vm0, %v539_v50  ;;  %v509_v38 = vadd.f32 %v1213_v31, %v470_v52  ;;  %v510_v47 = vadd.f32 %v1213_v31, %v471_v55  ;;  %v511_v26 = vadd.f32 %v1213_v31, %v472_v1 }
  0xca   : > { %v512_v56 = vadd.f32 %v1213_v31, %v473_v61  ;;  %v513_v28 = vadd.f32 %v1213_v31, %v474_v9  ;;  %v514_v4 = vadd.f32 %v1213_v31, %v475_v20  ;;  %v515_v40 = vadd.f32 %v1213_v31, %v476_v30 }
  0xcb   : > { %v540_v23 = vmax.f32 %v508_v21, 0.0  ;;  %v541_v29 = vmax.f32 %v509_v38, 0.0  ;;  %v542_v33 = vmax.f32 %v510_v47, 0.0  ;;  %v543_v34 = vmax.f32 %v511_v26, 0.0 }
  0xcc   : > { %v544_v36 = vmax.f32 %v512_v56, 0.0  ;;  %v545_v37 = vmax.f32 %v513_v28, 0.0  ;;  %v546_v2 = vmax.f32 %v514_v4, 0.0  ;;  %v547_v3 = vmax.f32 %v515_v40, 0.0 }
  0xcd   : > { %572 = vst.msk [vmem:[%s1240_s23 + $0xc0] sm:$0xff] %vm229_vm0, %v540_v23  ;;  %573 = vst.msk [vmem:[%s1240_s23 + $0xc8] sm:$0xff] %vm229_vm0, %v541_v29 }
  0xce   : > { %574 = vst.msk [vmem:[%s1240_s23 + $0xd0] sm:$0xff] %vm229_vm0, %v542_v33  ;;  %575 = vst.msk [vmem:[%s1240_s23 + $0xd8] sm:$0xff] %vm229_vm0, %v543_v34 }
  0xcf   : > { %576 = vst.msk [vmem:[%s1240_s23 + $0xe0] sm:$0xff] %vm229_vm0, %v544_v36  ;;  %577 = vst.msk [vmem:[%s1240_s23 + $0xe8] sm:$0xff] %vm229_vm0, %v545_v37 }
  0xd0   : > { %578 = vst.msk [vmem:[%s1240_s23 + $0xf0] sm:$0xff] %vm229_vm0, %v546_v2  ;;  %579 = vst.msk [vmem:[%s1240_s23 + $0xf8] sm:$0xff] %vm229_vm0, %v547_v3 }
  0xd1 PF: > { %s15_s12 = sadd.s32 1, %s776_s12  }
  0xd2   : > { %p12_p5 = scmp.ge.s32.totalorder %s15_s12, 4  }
  0xd4   :  { %14 = sbr.rel (!%p12_p5) target bundleno = 2 (0x2), region = 71 }
  0xdb   :  { %601 = vsyncpa [#allocation3], 1 }
  0xdc   :  { %603 = vsyncpa [#allocation3 + $0x1], 1 }
  0xdd   :  { %604 = vsyncpa [#allocation5], 1 }

// kernel: custom_densenet_forward.9
= control target key start
LH: loop header
LB: loop body
LE: loop exit
PB: predicated region body
PF: predicated region fallthrough
CT: control target
= control target key end

     0   :  { %s1081_s9 = smov 0   ;;  %s1083_s10 = smov 0   ;;  %s1194_s0 = inlined_call_operand.vmem [shape: bf16[512,128], index: 0, kind: input, shape index: {}]   ;;  %s1195_s1 = inlined_call_operand.vmem [shape: bf16[128,128], index: 1, kind: input, shape index: {}]   ;;  %s1196_s2 = inlined_call_operand.vmem [shape: f32[512,128], index: 2, kind: output, shape index: {}]  }
   0x1   :  { %s1085_s11 = smov 0  }
   0x2 LB: > { %s31_s12 = sadd.s32 1, %s1060_s10  ;;  %p875_p0 = scmp.ge.s32.totalorder %s1064_s11, 1  ;;  %s1064_s11 = sphi %s1085_s11, %s12_s11   ;;  %s1060_s10 = sphi %s1083_s10, %s1198_s10   ;;  %s1056_s9 = sphi %s1081_s9, %s1197_s9  }
   0x3   : > { %p33_p1 = scmp.ge.s32.totalorder %s31_s12, 2  ;;  %p155_p2 = scmp.lt.s32.totalorder %s1064_s11, 3 }
   0x5   : > { %s1200_s12 = smov (%p33_p1, %s31_s12), 0  ;;  %p156_p3 = pnand %p875_p0, %p155_p2 }
   0x6   : > { %v1018_v0 = vld [vmem:[%s1195_s1] sm:$0xff] (!%p156_p3)   ;;  %s876_s15 = sshll.u32 (!%p156_p3), %s1056_s9, 5  ;;  %v1019_v1 = vld [vmem:[%s1195_s1 + $0x8] sm:$0xff] (!%p156_p3)   ;;  %v1020_v2 = vld [vmem:[%s1195_s1 + $0x10] sm:$0xff] (!%p156_p3)  }
   0x7   : > { %159 = sbr.rel (%p156_p3) target bundleno = 279 (0x117), region = 28  ;;  %p192_p4 = scmp.lt.s32.totalorder (!%p156_p3), %s876_s15, 63  ;;  %930 = vmatprep.subr.bf16.mxu0 (!%p156_p3), %v1018_v0  ;;  %978 = vmatprep.subr.bf16.mxu1 (!%p156_p3), %v1018_v0  ;;  %v1021_v3 = vld [vmem:[%s1195_s1 + $0x18] sm:$0xff] (!%p156_p3)   ;;  %v1022_v6 = vld [vmem:[%s1195_s1 + $0x20] sm:$0xff] (!%p156_p3)   ;;  %v1023_v7 = vld [vmem:[%s1195_s1 + $0x28] sm:$0xff] (!%p156_p3)  }
   0x8   : > { %931 = vmatpush3.bf16.msra.mxu0 (!%p156_p3), %v1018_v0  ;;  %986 = vmatpush3.bf16.msra.mxu1 (!%p156_p3), %v1018_v0  ;;  %v1024_v8 = vld [vmem:[%s1195_s1 + $0x30] sm:$0xff] (!%p156_p3)   ;;  %v1025_v9 = vld [vmem:[%s1195_s1 + $0x38] sm:$0xff] (!%p156_p3)  }
   0x9   : > { %932 = vmatprep.subr.bf16.mxu0 (!%p156_p3), %v1019_v1  ;;  %979 = vmatprep.subr.bf16.mxu1 (!%p156_p3), %v1019_v1 }
   0xc   : > { %933 = vmatpush3.bf16.msra.mxu0 (!%p156_p3), %v1019_v1  ;;  %987 = vmatpush3.bf16.msra.mxu1 (!%p156_p3), %v1019_v1 }
   0xd   : > { %934 = vmatprep.subr.bf16.mxu0 (!%p156_p3), %v1020_v2  ;;  %980 = vmatprep.subr.bf16.mxu1 (!%p156_p3), %v1020_v2 }
   0xe   : > { %s1202_s15 = smov (!%p192_p4, %s876_s15), 63 }
   0xf   : > { %s877_s20 = sshll.u32 %s1202_s15, 2  ;;  %s879_s6 = sshll.u32 %s1202_s15, 3 }
  0x10   : > { %s1114_s23 = scalar_lea.vmem %s1194_s0, %s877_s20  ;;  %935 = vmatpush3.bf16.msra.mxu0 %v1020_v2  ;;  %988 = vmatpush3.bf16.msra.mxu1 %v1020_v2  ;;  %s1151_s9 = scalar_lea.vmem %s1196_s2, %s879_s6 }
  0x11   : > { %v1026_v4 = vld [vmem:[%s1114_s23] sm:$0xff]   ;;  %936 = vmatprep.subr.bf16.mxu0 %v1021_v3  ;;  %981 = vmatprep.subr.bf16.mxu1 %v1021_v3  ;;  %v1028_v10 = vld [vmem:[%s1114_s23 + $0x8] sm:$0xff]   ;;  %v1030_v12 = vld [vmem:[%s1114_s23 + $0x10] sm:$0xff]  }
  0x12   : > { %v1027_v5 = vld [vmem:[%s1114_s23 + $0x40] sm:$0xff]   ;;  %946 = vmatprep.mubr.bf16.mxu0 %v1026_v4  ;;  %v1029_v11 = vld [vmem:[%s1114_s23 + $0x48] sm:$0xff]   ;;  %v1031_v13 = vld [vmem:[%s1114_s23 + $0x50] sm:$0xff]  }
  0x13   : > { %962 = vmatprep.mubr.bf16.mxu1 %v1027_v5  ;;  %v1032_v14 = vld [vmem:[%s1114_s23 + $0x18] sm:$0xff]   ;;  %v1034_v16 = vld [vmem:[%s1114_s23 + $0x20] sm:$0xff]   ;;  %v1036_v18 = vld [vmem:[%s1114_s23 + $0x28] sm:$0xff]  }
  0x14   : > { %937 = vmatpush3.bf16.msra.mxu0 %v1021_v3  ;;  %989 = vmatpush3.bf16.msra.mxu1 %v1021_v3  ;;  %v1033_v15 = vld [vmem:[%s1114_s23 + $0x58] sm:$0xff]   ;;  %v1035_v17 = vld [vmem:[%s1114_s23 + $0x60] sm:$0xff]   ;;  %v1037_v19 = vld [vmem:[%s1114_s23 + $0x68] sm:$0xff]  }
  0x15   : > { %938 = vmatprep.subr.bf16.mxu0 %v1022_v6  ;;  %982 = vmatprep.subr.bf16.mxu1 %v1022_v6  ;;  %v1038_v20 = vld [vmem:[%s1114_s23 + $0x30] sm:$0xff]   ;;  %v1040_v22 = vld [vmem:[%s1114_s23 + $0x38] sm:$0xff]  }
  0x16   : > { %v1039_v21 = vld [vmem:[%s1114_s23 + $0x70] sm:$0xff]   ;;  %v1041_v23 = vld [vmem:[%s1114_s23 + $0x78] sm:$0xff]  }
  0x18   : > { %939 = vmatpush3.bf16.msra.mxu0 %v1022_v6  ;;  %990 = vmatpush3.bf16.msra.mxu1 %v1022_v6 }
  0x19   : > { %940 = vmatprep.subr.bf16.mxu0 %v1023_v7  ;;  %983 = vmatprep.subr.bf16.mxu1 %v1023_v7 }
  0x1c   : > { %941 = vmatpush3.bf16.msra.mxu0 %v1023_v7  ;;  %991 = vmatpush3.bf16.msra.mxu1 %v1023_v7 }
  0x1d   : > { %942 = vmatprep.subr.bf16.mxu0 %v1024_v8  ;;  %984 = vmatprep.subr.bf16.mxu1 %v1024_v8 }
  0x20   : > { %943 = vmatpush3.bf16.msra.mxu0 %v1024_v8  ;;  %992 = vmatpush3.bf16.msra.mxu1 %v1024_v8 }
  0x21   : > { %944 = vmatprep.subr.bf16.mxu0 %v1025_v9  ;;  %985 = vmatprep.subr.bf16.mxu1 %v1025_v9 }
  0x24   : > { %945 = vmatpush3.bf16.msra.mxu0 %v1025_v9  ;;  %993 = vmatpush3.bf16.msra.mxu1 %v1025_v9 }
  0x27   : > { %947 = vmatmul.mubr.bf16.vlgmr.msra.gmra.mrb[0].mxu0 %v1028_v10  ;;  %963 = vmatmul.mubr.bf16.vlgmr.msra.gmra.mrb[0].mxu1 %v1029_v11 }
  0x28   : > { %950 = vmatprep.mubr.bf16.mxu0 %v1030_v12  ;;  %966 = vmatprep.mubr.bf16.mxu1 %v1031_v13 }
  0x2f   : > { %951 = vmatmul.mubr.bf16.gmra.mrb[4].mxu0 %v1032_v14  ;;  %967 = vmatmul.mubr.bf16.gmra.mrb[4].mxu1 %v1033_v15 }
  0x30   : > { %954 = vmatprep.mubr.bf16.mxu0 %v1034_v16  ;;  %970 = vmatprep.mubr.bf16.mxu1 %v1035_v17 }
  0x37   : > { %955 = vmatmul.mubr.bf16.gmra.mrb[8].mxu0 %v1036_v18  ;;  %971 = vmatmul.mubr.bf16.gmra.mrb[8].mxu1 %v1037_v19 }
  0x38   : > { %958 = vmatprep.mubr.bf16.mxu0 %v1038_v20  ;;  %974 = vmatprep.mubr.bf16.mxu1 %v1039_v21 }
  0x3f   : > { %959 = vmatmul.mubr.bf16.gmra.mrb[12].mxu0 %v1040_v22  ;;  %975 = vmatmul.mubr.bf16.gmra.mrb[12].mxu1 %v1041_v23 }
  0xfa   : > { %v948_v24 = vpop.f32.mrb[0].mxu0  ;;  %v964_v25 = vpop.f32.mrb[0].mxu1 }
  0xfb   : > { %741 = vst [vmem:[%s1151_s9 + $0x10] sm:$0xff] %v948_v24  ;;  %757 = vst [vmem:[%s1151_s9 + $0x90] sm:$0xff] %v964_v25  ;;  %v513_v26 = vpop.f32.mrb[1].mxu0  ;;  %v577_v27 = vpop.f32.mrb[1].mxu1 }
  0xfc   : > { %739 = vst [vmem:[%s1151_s9] sm:$0xff] %v513_v26  ;;  %755 = vst [vmem:[%s1151_s9 + $0x80] sm:$0xff] %v577_v27  ;;  %v949_v28 = vpop.f32.mrb[2].mxu0  ;;  %v965_v29 = vpop.f32.mrb[2].mxu1 }
  0xfd   : > { %742 = vst [vmem:[%s1151_s9 + $0x18] sm:$0xff] %v949_v28  ;;  %758 = vst [vmem:[%s1151_s9 + $0x98] sm:$0xff] %v965_v29  ;;  %v516_v30 = vpop.f32.mrb[3].mxu0  ;;  %v580_v31 = vpop.f32.mrb[3].mxu1 }
  0xfe   : > { %740 = vst [vmem:[%s1151_s9 + $0x8] sm:$0xff] %v516_v30  ;;  %756 = vst [vmem:[%s1151_s9 + $0x88] sm:$0xff] %v580_v31 }
 0x102   : > { %v952_v32 = vpop.f32.mrb[4].mxu0  ;;  %v968_v33 = vpop.f32.mrb[4].mxu1 }
 0x103   : > { %745 = vst [vmem:[%s1151_s9 + $0x30] sm:$0xff] %v952_v32  ;;  %761 = vst [vmem:[%s1151_s9 + $0xb0] sm:$0xff] %v968_v33  ;;  %v529_v34 = vpop.f32.mrb[5].mxu0  ;;  %v593_v35 = vpop.f32.mrb[5].mxu1 }
 0x104   : > { %743 = vst [vmem:[%s1151_s9 + $0x20] sm:$0xff] %v529_v34  ;;  %759 = vst [vmem:[%s1151_s9 + $0xa0] sm:$0xff] %v593_v35  ;;  %v953_v36 = vpop.f32.mrb[6].mxu0  ;;  %v969_v37 = vpop.f32.mrb[6].mxu1 }
 0x105   : > { %746 = vst [vmem:[%s1151_s9 + $0x38] sm:$0xff] %v953_v36  ;;  %762 = vst [vmem:[%s1151_s9 + $0xb8] sm:$0xff] %v969_v37  ;;  %v532_v38 = vpop.f32.mrb[7].mxu0  ;;  %v596_v39 = vpop.f32.mrb[7].mxu1 }
 0x106   : > { %744 = vst [vmem:[%s1151_s9 + $0x28] sm:$0xff] %v532_v38  ;;  %760 = vst [vmem:[%s1151_s9 + $0xa8] sm:$0xff] %v596_v39 }
 0x10a   : > { %v956_v40 = vpop.f32.mrb[8].mxu0  ;;  %v972_v41 = vpop.f32.mrb[8].mxu1 }
 0x10b   : > { %749 = vst [vmem:[%s1151_s9 + $0x50] sm:$0xff] %v956_v40  ;;  %765 = vst [vmem:[%s1151_s9 + $0xd0] sm:$0xff] %v972_v41  ;;  %v545_v42 = vpop.f32.mrb[9].mxu0  ;;  %v609_v43 = vpop.f32.mrb[9].mxu1 }
 0x10c   : > { %747 = vst [vmem:[%s1151_s9 + $0x40] sm:$0xff] %v545_v42  ;;  %763 = vst [vmem:[%s1151_s9 + $0xc0] sm:$0xff] %v609_v43  ;;  %v957_v44 = vpop.f32.mrb[10].mxu0  ;;  %v973_v45 = vpop.f32.mrb[10].mxu1 }
 0x10d   : > { %750 = vst [vmem:[%s1151_s9 + $0x58] sm:$0xff] %v957_v44  ;;  %766 = vst [vmem:[%s1151_s9 + $0xd8] sm:$0xff] %v973_v45  ;;  %v548_v46 = vpop.f32.mrb[11].mxu0  ;;  %v612_v47 = vpop.f32.mrb[11].mxu1 }
 0x10e   : > { %748 = vst [vmem:[%s1151_s9 + $0x48] sm:$0xff] %v548_v46  ;;  %764 = vst [vmem:[%s1151_s9 + $0xc8] sm:$0xff] %v612_v47 }
 0x112   : > { %v960_v48 = vpop.f32.mrb[12].mxu0  ;;  %v976_v49 = vpop.f32.mrb[12].mxu1 }
 0x113   : > { %753 = vst [vmem:[%s1151_s9 + $0x70] sm:$0xff] %v960_v48  ;;  %769 = vst [vmem:[%s1151_s9 + $0xf0] sm:$0xff] %v976_v49  ;;  %v561_v50 = vpop.f32.mrb[13].mxu0  ;;  %v625_v51 = vpop.f32.mrb[13].mxu1 }
 0x114   : > { %751 = vst [vmem:[%s1151_s9 + $0x60] sm:$0xff] %v561_v50  ;;  %767 = vst [vmem:[%s1151_s9 + $0xe0] sm:$0xff] %v625_v51  ;;  %v961_v52 = vpop.f32.mrb[14].mxu0  ;;  %v977_v53 = vpop.f32.mrb[14].mxu1 }
 0x115   : > { %754 = vst [vmem:[%s1151_s9 + $0x78] sm:$0xff] %v961_v52  ;;  %770 = vst [vmem:[%s1151_s9 + $0xf8] sm:$0xff] %v977_v53  ;;  %v564_v54 = vpop.f32.mrb[15].mxu0  ;;  %v628_v55 = vpop.f32.mrb[15].mxu1 }
 0x116   : > { %752 = vst [vmem:[%s1151_s9 + $0x68] sm:$0xff] %v564_v54  ;;  %768 = vst [vmem:[%s1151_s9 + $0xe8] sm:$0xff] %v628_v55 }
 0x117 PF: > { %s12_s11 = sadd.s32 1, %s1064_s11   ;;  %s1197_s9 = smov %s1060_s10 }
 0x118   : > { %p9_p5 = scmp.ge.s32.totalorder %s12_s11, 4   ;;  %s1198_s10 = smov %s1200_s12 }
 0x11a   :  { %11 = sbr.rel (!%p9_p5) target bundleno = 2 (0x2), region = 69 }

// kernel: custom_densenet_forward.11
= control target key start
LH: loop header
LB: loop body
LE: loop exit
PB: predicated region body
PF: predicated region fallthrough
CT: control target
= control target key end

     0   :  { %s632_s15 = smov 0   ;;  %s787_s0 = inlined_call_operand.vmem [shape: f32[2,9,9,64], index: 0, kind: input, shape index: {}]   ;;  %s788_s1 = inlined_call_operand.vmem [shape: f32[2,9,9,64], index: 1, kind: input, shape index: {}]   ;;  %s789_s2 = inlined_call_operand.vmem [shape: f32[2,9,9,64], index: 2, kind: input, shape index: {}]   ;;  %s790_s3 = inlined_call_operand.vmem [shape: f32[2,9,9,64], index: 3, kind: input, shape index: {}]   ;;  %s791_s4 = inlined_call_operand.vmem [shape: f32[2,8,8,64], index: 4, kind: output, shape index: {}]  }
   0x1 LB: > { %s576_s16 = sadd.s32 4294967295, %s605_s15   ;;  %p580_p0 = scmp.ge.s32.totalorder %s605_s15, 1  ;;  %s605_s15 = sphi %s632_s15, %s14_s15  }
   0x2   : > { %p192_p1 = scmp.lt.s32.totalorder %s605_s15, 3 }
   0x4   : > { %p193_p2 = pnand %p580_p0, %p192_p1 }
   0x5   : > { %p233_p3 = scmp.lt.s32.totalorder (!%p193_p2), %s576_s16, 1  ;;  %vm325_vm0 = vcmask (!%p193_p2), 1046528   ;;  %vm476_vm1 = vcmask (!%p193_p2), 523264  }
   0x6   : > { %196 = sbr.rel (%p193_p2) target bundleno = 58 (0x3a), region = 36 }
   0xd   : > { %s793_s16 = smov (!%p233_p3, %s576_s16), 1 }
   0xe   : > { %s643_s17 = smul.u32 144, %s793_s16  ;;  %s589_s30 = sshll.u32 %s793_s16, 6 }
   0xf   : > { %s737_s7 = scalar_lea.vmem %s791_s4, %s589_s30 }
  0x10   : > { %s649_s20 = scalar_lea.vmem %s787_s0, %s643_s17  ;;  %s655_s23 = scalar_lea.vmem %s789_s2, %s643_s17 }
  0x11   : > { %v258_v0 = vld [vmem:[%s649_s20] sm:$0xff]  ;;  %v259_v1 = vld [vmem:[%s649_s20 + $0x8] sm:$0x1]  ;;  %v260_v2 = vld [vmem:[%s649_s20 + $0x10] sm:$0xff]  ;;  %s673_s26 = scalar_lea.vmem %s788_s1, %s643_s17  ;;  %s718_s29 = scalar_lea.vmem %s790_s3, %s643_s17 }
  0x12   : > { %v261_v3 = vld [vmem:[%s649_s20 + $0x18] sm:$0x1]  ;;  %v326_v4 = vrot.slane %v258_v0, 1  ;;  %v327_v5 = vrot.slane %v259_v1, 1  ;;  %v662_v6 = vld [vmem:[%s655_s23] sm:$0xff]  ;;  %v329_v8 = vrot.slane %v260_v2, 1 }
  0x13   : > { %v286_v7 = vld [vmem:[%s655_s23 + $0x8] sm:$0x1]  ;;  %v330_v9 = vrot.slane %v261_v3, 1  ;;  %v428_v11 = vrot.slane %v662_v6, 1  ;;  %v262_v13 = vld [vmem:[%s649_s20 + $0x20] sm:$0xff]  ;;  %v677_v17 = vld [vmem:[%s655_s23 + $0x10] sm:$0xff] }
  0x14   : > { %v328_v10 = vsel %vm325_vm0, %v326_v4, %v327_v5  ;;  %v429_v12 = vrot.slane %v286_v7, 1  ;;  %v263_v14 = vld [vmem:[%s649_s20 + $0x28] sm:$0x1]  ;;  %v288_v18 = vld [vmem:[%s655_s23 + $0x18] sm:$0x1]  ;;  %v332_v19 = vrot.slane %v262_v13, 1 }
  0x15   : > { %v331_v15 = vsel %vm325_vm0, %v329_v8, %v330_v9  ;;  %v358_v16 = vmax.f32 %v258_v0, %v328_v10  ;;  %v333_v20 = vrot.slane %v263_v14, 1  ;;  %v431_v23 = vrot.slane %v677_v17, 1  ;;  %v264_v25 = vld [vmem:[%s649_s20 + $0x30] sm:$0xff]  ;;  %v265_v26 = vld [vmem:[%s649_s20 + $0x38] sm:$0x1]  ;;  %v688_v29 = vld [vmem:[%s655_s23 + $0x20] sm:$0xff] }
  0x16   : > { %v359_v21 = vmax.f32 %v260_v2, %v331_v15  ;;  %v681_v22 = vsel %vm325_vm0, %v428_v11, %v429_v12  ;;  %v432_v24 = vrot.slane %v288_v18, 1  ;;  %v290_v30 = vld [vmem:[%s655_s23 + $0x28] sm:$0x1]  ;;  %v335_v31 = vrot.slane %v264_v25, 1  ;;  %v276_v33 = vld [vmem:[%s673_s26] sm:$0xff]  ;;  %v277_v40 = vld [vmem:[%s673_s26 + $0x10] sm:$0xff] }
  0x17   : > { %v366_v27 = vmax.f32 %v358_v16, %v260_v2  ;;  %v334_v28 = vsel %vm325_vm0, %v332_v19, %v333_v20  ;;  %v336_v32 = vrot.slane %v265_v26, 1  ;;  %v434_v37 = vrot.slane %v688_v29, 1  ;;  %v266_v38 = vld [vmem:[%s649_s20 + $0x40] sm:$0xff]  ;;  %v267_v39 = vld [vmem:[%s649_s20 + $0x48] sm:$0x1]  ;;  %v701_v44 = vld [vmem:[%s655_s23 + $0x30] sm:$0xff] }
  0x18   : > { %v360_v34 = vmax.f32 %v262_v13, %v334_v28  ;;  %v367_v35 = vmax.f32 %v359_v21, %v262_v13  ;;  %v693_v36 = vsel %vm325_vm0, %v431_v23, %v432_v24  ;;  %v435_v43 = vrot.slane %v290_v30, 1  ;;  %v292_v45 = vld [vmem:[%s655_s23 + $0x38] sm:$0x1]  ;;  %v268_v51 = vld [vmem:[%s649_s20 + $0x50] sm:$0xff]  ;;  %v278_v53 = vld [vmem:[%s673_s26 + $0x20] sm:$0xff] }
  0x19   : > { %v380_v41 = vmax.f32 %v366_v27, %v331_v15  ;;  %v337_v42 = vsel %vm325_vm0, %v335_v31, %v336_v32  ;;  %v338_v46 = vrot.slane %v266_v38, 1  ;;  %v339_v50 = vrot.slane %v267_v39, 1  ;;  %v269_v57 = vld [vmem:[%s649_s20 + $0x58] sm:$0x1]  ;;  %v293_v62 = vld [vmem:[%s655_s23 + $0x40] sm:$0xff]  ;;  %v279_v1 = vld [vmem:[%s673_s26 + $0x30] sm:$0xff] }
  0x1a   : > { %v381_v47 = vmax.f32 %v367_v35, %v334_v28  ;;  %v361_v48 = vmax.f32 %v264_v25, %v337_v42  ;;  %v368_v49 = vmax.f32 %v360_v34, %v264_v25  ;;  %v707_v54 = vsel %vm325_vm0, %v434_v37, %v435_v43  ;;  %v294_v63 = vld [vmem:[%s655_s23 + $0x48] sm:$0x1]  ;;  %v270_v14 = vld [vmem:[%s649_s20 + $0x60] sm:$0xff]  ;;  %v295_v28 = vld [vmem:[%s655_s23 + $0x50] sm:$0xff] }
  0x1b   : > { %v388_v52 = vmax.f32 %v380_v41, %v276_v33  ;;  %v437_v55 = vrot.slane %v701_v44, 1  ;;  %v438_v56 = vrot.slane %v292_v45, 1  ;;  %v340_v60 = vsel %vm325_vm0, %v338_v46, %v339_v50  ;;  %v301_v15 = vld [vmem:[%s718_s29] sm:$0xff]  ;;  %v271_v23 = vld [vmem:[%s649_s20 + $0x68] sm:$0x1]  ;;  %v272_v33 = vld [vmem:[%s649_s20 + $0x70] sm:$0xff] }
  0x1c   : > { %v389_v58 = vmax.f32 %v381_v47, %v277_v40  ;;  %v382_v59 = vmax.f32 %v368_v49, %v337_v42  ;;  %v369_v61 = vmax.f32 %v361_v48, %v266_v38  ;;  %v362_v2 = vmax.f32 %v266_v38, %v340_v60  ;;  %v280_v19 = vld [vmem:[%s673_s26 + $0x40] sm:$0xff]  ;;  %v273_v43 = vld [vmem:[%s649_s20 + $0x78] sm:$0x1]  ;;  %v304_v45 = vld [vmem:[%s718_s29 + $0x30] sm:$0xff] }
  0x1d   : > { %v396_v0 = vmax.f32 %v388_v52, %v277_v40  ;;  %v439_v3 = vsel %vm325_vm0, %v437_v55, %v438_v56  ;;  %v341_v4 = vrot.slane %v268_v51, 1  ;;  %v342_v9 = vrot.slane %v269_v57, 1  ;;  %v303_v35 = vld [vmem:[%s718_s29 + $0x20] sm:$0xff] }
  0x1e   : > { %v397_v5 = vmax.f32 %v389_v58, %v278_v53  ;;  %v390_v7 = vmax.f32 %v382_v59, %v278_v53  ;;  %v383_v8 = vmax.f32 %v369_v61, %v340_v60  ;;  %v370_v11 = vmax.f32 %v362_v2, %v268_v51  ;;  %v274_v53 = vld [vmem:[%s649_s20 + $0x80] sm:$0xff]  ;;  %v298_v61 = vld [vmem:[%s655_s23 + $0x68] sm:$0x1] }
  0x1f   : > { %v404_v10 = vmax.f32 %v396_v0, %v662_v6  ;;  %v440_v12 = vrot.slane %v293_v62, 1  ;;  %v441_v13 = vrot.slane %v294_v63, 1  ;;  %v343_v21 = vsel %vm325_vm0, %v341_v4, %v342_v9  ;;  %v302_v6 = vld [vmem:[%s718_s29 + $0x10] sm:$0xff]  ;;  %v305_v58 = vld [vmem:[%s718_s29 + $0x40] sm:$0xff] }
  0x20   : > { %v405_v16 = vmax.f32 %v397_v5, %v677_v17  ;;  %v398_v18 = vmax.f32 %v390_v7, %v279_v1  ;;  %v391_v20 = vmax.f32 %v383_v8, %v279_v1  ;;  %v363_v25 = vmax.f32 %v268_v51, %v343_v21  ;;  %v297_v60 = vld [vmem:[%s655_s23 + $0x60] sm:$0xff] }
  0x21   : > { %v460_v24 = vmax.f32 %v404_v10, %v681_v22  ;;  %v384_v26 = vmax.f32 %v370_v11, %v343_v21  ;;  %v442_v27 = vsel %vm325_vm0, %v440_v12, %v441_v13  ;;  %v296_v22 = vld [vmem:[%s655_s23 + $0x58] sm:$0x1]  ;;  %v344_v32 = vrot.slane %v270_v14, 1  ;;  %v282_v1 = vld [vmem:[%s673_s26 + $0x60] sm:$0xff] }
  0x22   : > { %v461_v17 = vmax.f32 %v405_v16, %v693_v36  ;;  %v406_v30 = vmax.f32 %v398_v18, %v688_v29  ;;  %v399_v31 = vmax.f32 %v391_v20, %v280_v19  ;;  %v345_v38 = vrot.slane %v271_v23, 1  ;;  %v281_v29 = vld [vmem:[%s673_s26 + $0x50] sm:$0xff]  ;;  %v300_v16 = vld [vmem:[%s655_s23 + $0x78] sm:$0x1] }
  0x23   : > { %v468_v34 = vmax.f32 %v460_v24, %v301_v15  ;;  %v392_v37 = vmax.f32 %v384_v26, %v280_v19  ;;  %v371_v39 = vmax.f32 %v363_v25, %v270_v14  ;;  %v443_v42 = vrot.slane %v295_v28, 1  ;;  %v299_v15 = vld [vmem:[%s655_s23 + $0x70] sm:$0xff]  ;;  %v284_v25 = vld [vmem:[%s673_s26 + $0x80] sm:$0xff] }
  0x24   : > { %v469_v40 = vmax.f32 %v461_v17, %v302_v6  ;;  %v462_v41 = vmax.f32 %v406_v30, %v707_v54  ;;  %v407_v36 = vmax.f32 %v399_v31, %v701_v44  ;;  %v346_v47 = vsel %vm325_vm0, %v344_v32, %v345_v38  ;;  %v275_v54 = vld [vmem:[%s649_s20 + $0x88] sm:$0x1]  ;;  %v306_v19 = vld [vmem:[%s718_s29 + $0x50] sm:$0xff]  ;;  %v307_v31 = vld [vmem:[%s718_s29 + $0x60] sm:$0xff] }
  0x25   : > { %477 = vst.msk [vmem:[%s737_s7] sm:$0xff] %vm476_vm1, %v468_v34  ;;  %v400_v46 = vmax.f32 %v392_v37, %v281_v29  ;;  %v444_v48 = vrot.slane %v296_v22, 1  ;;  %v347_v49 = vrot.slane %v272_v33, 1  ;;  %v364_v51 = vmax.f32 %v270_v14, %v346_v47  ;;  %v283_v20 = vld [vmem:[%s673_s26 + $0x70] sm:$0xff] }
  0x26   : > { %478 = vst.msk [vmem:[%s737_s7 + $0x8] sm:$0xff] %vm476_vm1, %v469_v40  ;;  %v470_v50 = vmax.f32 %v462_v41, %v303_v35  ;;  %v463_v44 = vmax.f32 %v407_v36, %v439_v3  ;;  %v385_v52 = vmax.f32 %v371_v39, %v346_v47  ;;  %v348_v56 = vrot.slane %v273_v43, 1  ;;  %v308_v37 = vld [vmem:[%s718_s29 + $0x70] sm:$0xff] }
  0x27   : > { %v408_v55 = vmax.f32 %v400_v46, %v293_v62  ;;  %v372_v63 = vmax.f32 %v364_v51, %v272_v33  ;;  %v376_v3 = vrot.slane %v274_v53, 1  ;;  %v377_v4 = vrot.slane %v275_v54, 1 }
  0x28   : > { %479 = vst.msk [vmem:[%s737_s7 + $0x10] sm:$0xff] %vm476_vm1, %v470_v50  ;;  %v471_v57 = vmax.f32 %v463_v44, %v304_v45  ;;  %v393_v59 = vmax.f32 %v385_v52, %v281_v29  ;;  %v349_v2 = vsel %vm325_vm0, %v347_v49, %v348_v56  ;;  %v445_v5 = vsel %vm325_vm0, %v443_v42, %v444_v48 }
  0x29   : > { %v464_v0 = vmax.f32 %v408_v55, %v442_v27  ;;  %v365_v7 = vmax.f32 %v272_v33, %v349_v2  ;;  %v386_v8 = vmax.f32 %v372_v63, %v349_v2  ;;  %v446_v10 = vrot.slane %v297_v60, 1 }
  0x2a   : > { %480 = vst.msk [vmem:[%s737_s7 + $0x18] sm:$0xff] %vm476_vm1, %v471_v57  ;;  %v401_v62 = vmax.f32 %v393_v59, %v282_v1  ;;  %v447_v11 = vrot.slane %v298_v61, 1  ;;  %v378_v12 = vsel %vm325_vm0, %v376_v3, %v377_v4  ;;  %v449_v26 = vrot.slane %v299_v15, 1 }
  0x2b   : > { %v472_v9 = vmax.f32 %v464_v0, %v305_v58  ;;  %v394_v14 = vmax.f32 %v386_v8, %v282_v1  ;;  %v373_v18 = vmax.f32 %v365_v7, %v274_v53  ;;  %v450_v27 = vrot.slane %v300_v16, 1 }
  0x2c   : > { %v409_v13 = vmax.f32 %v401_v62, %v295_v28  ;;  %v448_v6 = vsel %vm325_vm0, %v446_v10, %v447_v11 }
  0x2d   : > { %481 = vst.msk [vmem:[%s737_s7 + $0x20] sm:$0xff] %vm476_vm1, %v472_v9  ;;  %v402_v23 = vmax.f32 %v394_v14, %v283_v20  ;;  %v387_v24 = vmax.f32 %v373_v18, %v378_v12  ;;  %v451_v33 = vsel %vm325_vm0, %v449_v26, %v450_v27 }
  0x2e   : > { %v465_v21 = vmax.f32 %v409_v13, %v445_v5 }
  0x2f   : > { %v410_v17 = vmax.f32 %v402_v23, %v297_v60  ;;  %v395_v30 = vmax.f32 %v387_v24, %v283_v20 }
  0x30   : > { %v473_v28 = vmax.f32 %v465_v21, %v306_v19 }
  0x31   : > { %v466_v22 = vmax.f32 %v410_v17, %v448_v6  ;;  %v403_v32 = vmax.f32 %v395_v30, %v284_v25 }
  0x32   : > { %482 = vst.msk [vmem:[%s737_s7 + $0x28] sm:$0xff] %vm476_vm1, %v473_v28 }
  0x33   : > { %v474_v34 = vmax.f32 %v466_v22, %v307_v31  ;;  %v411_v35 = vmax.f32 %v403_v32, %v299_v15 }
  0x35   : > { %483 = vst.msk [vmem:[%s737_s7 + $0x30] sm:$0xff] %vm476_vm1, %v474_v34  ;;  %v467_v38 = vmax.f32 %v411_v35, %v451_v33 }
  0x37   : > { %v475_v39 = vmax.f32 %v467_v38, %v308_v37 }
  0x39   : > { %484 = vst.msk [vmem:[%s737_s7 + $0x38] sm:$0xff] %vm476_vm1, %v475_v39 }
  0x3a PF: > { %s14_s15 = sadd.s32 1, %s605_s15  }
  0x3b   : > { %p11_p4 = scmp.ge.s32.totalorder %s14_s15, 4  }
  0x3d   :  { %13 = sbr.rel (!%p11_p4) target bundleno = 1 (0x1), region = 75 }

// kernel: custom_densenet_forward.12
= control target key start
LH: loop header
LB: loop body
LE: loop exit
PB: predicated region body
PF: predicated region fallthrough
CT: control target
= control target key end

     0   :  { %s397_s12 = smov 0   ;;  %s493_s0 = inlined_call_operand.vmem [shape: f32[2,64,64], index: 0, kind: input, shape index: {}]   ;;  %s494_s1 = inlined_call_operand.vmem [shape: f32[1,64], index: 1, kind: input, shape index: {}]   ;;  %s495_s2 = inlined_call_operand.vmem [shape: f32[1,64], index: 2, kind: input, shape index: {}]   ;;  %s496_s3 = inlined_call_operand.vmem [shape: f32[2,64,64], index: 3, kind: output, shape index: {}]  }
   0x1 LB: > { %s345_s13 = sadd.s32 4294967295, %s375_s12   ;;  %p349_p0 = scmp.ge.s32.totalorder %s375_s12, 1  ;;  %s375_s12 = sphi %s397_s12, %s13_s12  }
   0x2   : > { %p137_p1 = scmp.lt.s32.totalorder %s375_s12, 3 }
   0x4   : > { %p138_p2 = pnand %p349_p0, %p137_p1 }
   0x5   : > { %p161_p3 = scmp.lt.s32.totalorder (!%p138_p2), %s345_s13, 1  ;;  %vm179_vm0 = vcmask (!%p138_p2), 523264  }
   0x6   : > { %141 = sbr.rel (%p138_p2) target bundleno = 80 (0x50), region = 32 }
   0xd   : > { %s498_s13 = smov (!%p161_p3, %s345_s13), 1 }
   0xe   : > { %s357_s14 = sshll.u32 %s498_s13, 6 }
   0xf   : > { %s165_s17 = scalar_lea.vmem %s493_s0, %s357_s14  ;;  %s170_s24 = scalar_lea.vmem %s496_s3, %s357_s14 }
  0x10   : > { %v413_v0 = vld [vmem:[%s165_s17] sm:$0xff]  ;;  %v415_v1 = vld [vmem:[%s165_s17 + $0x8] sm:$0xff]  ;;  %v417_v2 = vld [vmem:[%s165_s17 + $0x10] sm:$0xff] }
  0x11   : > { %v419_v3 = vld [vmem:[%s165_s17 + $0x18] sm:$0xff]  ;;  %v180_v4 = vsel %vm179_vm0, %v413_v0, 0.0  ;;  %v181_v5 = vsel %vm179_vm0, %v415_v1, 0.0  ;;  %v183_v6 = vsel %vm179_vm0, %v417_v2, 0.0  ;;  %v201_v7 = vmul.f32 %v413_v0, %v413_v0  ;;  %v429_v8 = vld [vmem:[%s165_s17 + $0x20] sm:$0xff]  ;;  %v437_v13 = vld [vmem:[%s165_s17 + $0x28] sm:$0xff] }
  0x12   : > { %v182_v9 = vadd.f32 %v181_v5, %v180_v4  ;;  %v185_v10 = vsel %vm179_vm0, %v419_v3, 0.0  ;;  %v202_v11 = vmul.f32 %v415_v1, %v415_v1  ;;  %v203_v12 = vmul.f32 %v417_v2, %v417_v2  ;;  %v447_v20 = vld [vmem:[%s165_s17 + $0x30] sm:$0xff]  ;;  %v178_v27 = vld [vmem:[%s165_s17 + $0x38] sm:$0xff] }
  0x13   : > { %v204_v15 = vmul.f32 %v419_v3, %v419_v3  ;;  %v187_v16 = vsel %vm179_vm0, %v429_v8, 0.0  ;;  %v205_v17 = vmul.f32 %v429_v8, %v429_v8  ;;  %v209_v18 = vsel %vm179_vm0, %v201_v7, 0.0 }
  0x14   : > { %v184_v14 = vadd.f32 %v183_v6, %v182_v9  ;;  %v210_v19 = vsel %vm179_vm0, %v202_v11, 0.0  ;;  %v212_v23 = vsel %vm179_vm0, %v203_v12, 0.0  ;;  %v189_v24 = vsel %vm179_vm0, %v437_v13, 0.0  ;;  %v245_v6 = vld [vmem:[%s494_s1] sm:$0x1] }
  0x15   : > { %v211_v22 = vadd.f32 %v210_v19, %v209_v18  ;;  %v206_v25 = vmul.f32 %v437_v13, %v437_v13  ;;  %v214_v26 = vsel %vm179_vm0, %v204_v15, 0.0  ;;  %v191_v30 = vsel %vm179_vm0, %v447_v20, 0.0 }
  0x16   : > { %v186_v21 = vadd.f32 %v185_v10, %v184_v14  ;;  %v207_v31 = vmul.f32 %v447_v20, %v447_v20  ;;  %v216_v32 = vsel %vm179_vm0, %v205_v17, 0.0  ;;  %v193_v35 = vsel %vm179_vm0, %v178_v27, 0.0 }
  0x17   : > { %v213_v29 = vadd.f32 %v212_v23, %v211_v22  ;;  %v208_v36 = vmul.f32 %v178_v27, %v178_v27  ;;  %v218_v37 = vsel %vm179_vm0, %v206_v25, 0.0  ;;  %v247_v4 = vlaneseq }
  0x18   : > { %v188_v28 = vadd.f32 %v187_v16, %v186_v21  ;;  %v220_v40 = vsel %vm179_vm0, %v207_v31, 0.0 }
  0x19   : > { %v215_v34 = vadd.f32 %v214_v26, %v213_v29  ;;  %v222_v43 = vsel %vm179_vm0, %v208_v36, 0.0  ;;  %v248_v5 = vshrl.u32 %v247_v4, 7 }
  0x1a   : > { %v190_v33 = vadd.f32 %v189_v24, %v188_v28 }
  0x1b   : > { %v217_v39 = vadd.f32 %v216_v32, %v215_v34  ;;  %v249_v7 = vsub.s32 0, %v248_v5 }
  0x1c   : > { %v192_v38 = vadd.f32 %v191_v30, %v190_v33 }
  0x1d   : > { %v219_v42 = vadd.f32 %v218_v37, %v217_v39 }
  0x1e   : > { %v194_v41 = vadd.f32 %v193_v35, %v192_v38 }
  0x1f   : > { %v221_v45 = vadd.f32 %v220_v40, %v219_v42 }
  0x20   : > { %v195_v44 = vrot.slane %v194_v41, 4 }
  0x21   : > { %v223_v47 = vadd.f32 %v222_v43, %v221_v45 }
  0x22   : > { %v196_v46 = vadd.f32 %v195_v44, %v194_v41 }
  0x23   : > { %v224_v49 = vrot.slane %v223_v47, 4 }
  0x24   : > { %v197_v48 = vrot.slane %v196_v46, 2 }
  0x25   : > { %v225_v51 = vadd.f32 %v224_v49, %v223_v47 }
  0x26   : > { %v198_v50 = vadd.f32 %v197_v48, %v196_v46 }
  0x27   : > { %v226_v53 = vrot.slane %v225_v51, 2 }
  0x28   : > { %v199_v52 = vrot.slane %v198_v50, 1 }
  0x29   : > { %v227_v55 = vadd.f32 %v226_v53, %v225_v51 }
  0x2a   : > { %v200_v54 = vadd.f32 %v199_v52, %v198_v50 }
  0x2b   : > { %v228_v56 = vrot.slane %v227_v55, 1 }
  0x2c   : > { %v230_v57 = vmul.f32 0.015625, %v200_v54 }
  0x2d   : > { %v229_v58 = vadd.f32 %v228_v56, %v227_v55 }
  0x2e   : > { %v232_v59 = vmul.f32 %v230_v57, %v230_v57  ;;  %v237_v10 = vsub.f32 %v413_v0, %v230_v57  ;;  %v238_v12 = vsub.f32 %v415_v1, %v230_v57  ;;  %v239_v14 = vsub.f32 %v417_v2, %v230_v57  ;;  %v354_v0 = vld [vmem:[%s495_s2] ss:$0 sm:$0xff] }
  0x2f   : > { %v231_v60 = vmul.f32 0.015625, %v229_v58  ;;  %v240_v15 = vsub.f32 %v419_v3, %v230_v57  ;;  %v241_v16 = vsub.f32 %v429_v8, %v230_v57  ;;  %v242_v17 = vsub.f32 %v437_v13, %v230_v57 }
  0x30   : > { %v243_v18 = vsub.f32 %v447_v20, %v230_v57  ;;  %v244_v19 = vsub.f32 %v178_v27, %v230_v57 }
  0x31   : > { %v233_v61 = vsub.f32 %v231_v60, %v232_v59 }
  0x33   : > { %v234_v62 = vmax.f32 %v233_v61, 0.0 }
  0x35   : > { %v235_v63 = vadd.f32 1e-05, %v234_v62 }
  0x37   : > { %367 = vrsqrt.f32 %v235_v63 }
  0x41   : > { %v368_v9 = vpop.eup %367 }
  0x42   : > { %v246_v11 = vmul.f32 %v368_v9, %v245_v6 }
  0x44   : > { %v250_v21 = vrot.slane %v246_v11, %v249_v7 }
  0x46   : > { %v251_v22 = vmul.f32 %v250_v21, %v237_v10  ;;  %v252_v23 = vmul.f32 %v250_v21, %v238_v12  ;;  %v253_v1 = vmul.f32 %v250_v21, %v239_v14  ;;  %v254_v24 = vmul.f32 %v250_v21, %v240_v15 }
  0x47   : > { %v255_v2 = vmul.f32 %v250_v21, %v241_v16  ;;  %v256_v25 = vmul.f32 %v250_v21, %v242_v17  ;;  %v257_v3 = vmul.f32 %v250_v21, %v243_v18  ;;  %v258_v26 = vmul.f32 %v250_v21, %v244_v19 }
  0x48   : > { %v266_v8 = vadd.f32 %v354_v0, %v251_v22  ;;  %v267_v28 = vadd.f32 %v354_v0, %v252_v23  ;;  %v268_v13 = vadd.f32 %v354_v0, %v253_v1  ;;  %v269_v29 = vadd.f32 %v354_v0, %v254_v24 }
  0x49   : > { %v270_v20 = vadd.f32 %v354_v0, %v255_v2  ;;  %v271_v27 = vadd.f32 %v354_v0, %v256_v25  ;;  %v272_v30 = vadd.f32 %v354_v0, %v257_v3  ;;  %v273_v31 = vadd.f32 %v354_v0, %v258_v26 }
  0x4a   : > { %v274_v32 = vmax.f32 %v266_v8, 0.0  ;;  %v275_v33 = vmax.f32 %v267_v28, 0.0  ;;  %v276_v34 = vmax.f32 %v268_v13, 0.0  ;;  %v277_v35 = vmax.f32 %v269_v29, 0.0 }
  0x4b   : > { %v278_v36 = vmax.f32 %v270_v20, 0.0  ;;  %v279_v37 = vmax.f32 %v271_v27, 0.0  ;;  %v280_v38 = vmax.f32 %v272_v30, 0.0  ;;  %v281_v39 = vmax.f32 %v273_v31, 0.0 }
  0x4c   : > { %282 = vst.msk [vmem:[%s170_s24] sm:$0xff] %vm179_vm0, %v274_v32  ;;  %283 = vst.msk [vmem:[%s170_s24 + $0x8] sm:$0xff] %vm179_vm0, %v275_v33 }
  0x4d   : > { %284 = vst.msk [vmem:[%s170_s24 + $0x10] sm:$0xff] %vm179_vm0, %v276_v34  ;;  %285 = vst.msk [vmem:[%s170_s24 + $0x18] sm:$0xff] %vm179_vm0, %v277_v35 }
  0x4e   : > { %286 = vst.msk [vmem:[%s170_s24 + $0x20] sm:$0xff] %vm179_vm0, %v278_v36  ;;  %287 = vst.msk [vmem:[%s170_s24 + $0x28] sm:$0xff] %vm179_vm0, %v279_v37 }
  0x4f   : > { %288 = vst.msk [vmem:[%s170_s24 + $0x30] sm:$0xff] %vm179_vm0, %v280_v38  ;;  %289 = vst.msk [vmem:[%s170_s24 + $0x38] sm:$0xff] %vm179_vm0, %v281_v39 }
  0x50 PF: > { %s13_s12 = sadd.s32 1, %s375_s12  }
  0x51   : > { %p10_p4 = scmp.ge.s32.totalorder %s13_s12, 4  }
  0x53   :  { %12 = sbr.rel (!%p10_p4) target bundleno = 1 (0x1), region = 62 }

// kernel: custom_densenet_forward.14
= control target key start
LH: loop header
LB: loop body
LE: loop exit
PB: predicated region body
PF: predicated region fallthrough
CT: control target
= control target key end

     0   :  { %s380_s12 = smov 0   ;;  %s434_s0 = inlined_call_operand.vmem [shape: f32[2,64,128], index: 0, kind: input, shape index: {}]   ;;  %s435_s1 = inlined_call_operand.vmem [shape: f32[1,128], index: 1, kind: input, shape index: {}]   ;;  %s436_s2 = inlined_call_operand.vmem [shape: f32[1,128], index: 2, kind: input, shape index: {}]   ;;  %s437_s3 = inlined_call_operand.vmem [shape: f32[2,64,128], index: 3, kind: output, shape index: {}]  }
   0x1 LB: > { %s328_s13 = sadd.s32 4294967295, %s358_s12   ;;  %p332_p0 = scmp.ge.s32.totalorder %s358_s12, 1  ;;  %s358_s12 = sphi %s380_s12, %s13_s12  }
   0x2   : > { %p137_p1 = scmp.lt.s32.totalorder %s358_s12, 3 }
   0x4   : > { %p138_p2 = pnand %p332_p0, %p137_p1 }
   0x5   : > { %p161_p3 = scmp.lt.s32.totalorder (!%p138_p2), %s328_s13, 1  ;;  %v230_v48 = vlaneseq (!%p138_p2)  ;;  %v228_v50 = vld [vmem:[%s435_s1] sm:$0x1] (!%p138_p2) }
   0x6   : > { %141 = sbr.rel (%p138_p2) target bundleno = 78 (0x4e), region = 32  ;;  %v337_v63 = vld [vmem:[%s436_s2] ss:$0 sm:$0xff] (!%p138_p2) }
   0x7   : > { %v231_v49 = vshrl.u32 (!%p138_p2), %v230_v48, 7 }
   0x9   : > { %v232_v51 = vsub.s32 (!%p138_p2), 0, %v231_v49 }
   0xd   : > { %s439_s13 = smov (!%p161_p3, %s328_s13), 1 }
   0xe   : > { %s340_s14 = sshll.u32 %s439_s13, 6 }
   0xf   : > { %s165_s17 = scalar_lea.vmem %s434_s0, %s340_s14  ;;  %s170_s24 = scalar_lea.vmem %s437_s3, %s340_s14 }
  0x10   : > { %v396_v0 = vld [vmem:[%s165_s17] sm:$0xff]  ;;  %v398_v1 = vld [vmem:[%s165_s17 + $0x8] sm:$0xff]  ;;  %v400_v2 = vld [vmem:[%s165_s17 + $0x10] sm:$0xff] }
  0x11   : > { %v402_v3 = vld [vmem:[%s165_s17 + $0x18] sm:$0xff]  ;;  %v179_v4 = vadd.f32 %v398_v1, %v396_v0  ;;  %v192_v5 = vmul.f32 %v396_v0, %v396_v0  ;;  %v193_v6 = vmul.f32 %v398_v1, %v398_v1  ;;  %v194_v7 = vmul.f32 %v400_v2, %v400_v2  ;;  %v175_v8 = vld [vmem:[%s165_s17 + $0x20] sm:$0xff]  ;;  %v176_v12 = vld [vmem:[%s165_s17 + $0x28] sm:$0xff] }
  0x12   : > { %v195_v10 = vmul.f32 %v402_v3, %v402_v3  ;;  %v196_v14 = vmul.f32 %v175_v8, %v175_v8  ;;  %v177_v16 = vld [vmem:[%s165_s17 + $0x30] sm:$0xff]  ;;  %v197_v18 = vmul.f32 %v176_v12, %v176_v12  ;;  %v178_v20 = vld [vmem:[%s165_s17 + $0x38] sm:$0xff] }
  0x13   : > { %v180_v9 = vadd.f32 %v179_v4, %v400_v2  ;;  %v200_v11 = vadd.f32 %v193_v6, %v192_v5  ;;  %v198_v22 = vmul.f32 %v177_v16, %v177_v16  ;;  %v199_v25 = vmul.f32 %v178_v20, %v178_v20 }
  0x15   : > { %v181_v13 = vadd.f32 %v180_v9, %v402_v3  ;;  %v201_v15 = vadd.f32 %v200_v11, %v194_v7 }
  0x17   : > { %v182_v17 = vadd.f32 %v181_v13, %v175_v8  ;;  %v202_v19 = vadd.f32 %v201_v15, %v195_v10 }
  0x19   : > { %v183_v21 = vadd.f32 %v182_v17, %v176_v12  ;;  %v203_v23 = vadd.f32 %v202_v19, %v196_v14 }
  0x1b   : > { %v184_v24 = vadd.f32 %v183_v21, %v177_v16  ;;  %v204_v26 = vadd.f32 %v203_v23, %v197_v18 }
  0x1d   : > { %v185_v27 = vadd.f32 %v184_v24, %v178_v20  ;;  %v205_v28 = vadd.f32 %v204_v26, %v198_v22 }
  0x1f   : > { %v186_v29 = vrot.slane %v185_v27, 4  ;;  %v206_v30 = vadd.f32 %v205_v28, %v199_v25 }
  0x21   : > { %v187_v31 = vadd.f32 %v186_v29, %v185_v27  ;;  %v207_v32 = vrot.slane %v206_v30, 4 }
  0x23   : > { %v188_v33 = vrot.slane %v187_v31, 2  ;;  %v208_v34 = vadd.f32 %v207_v32, %v206_v30 }
  0x25   : > { %v189_v35 = vadd.f32 %v188_v33, %v187_v31  ;;  %v209_v36 = vrot.slane %v208_v34, 2 }
  0x27   : > { %v190_v37 = vrot.slane %v189_v35, 1  ;;  %v210_v38 = vadd.f32 %v209_v36, %v208_v34 }
  0x29   : > { %v191_v39 = vadd.f32 %v190_v37, %v189_v35  ;;  %v211_v40 = vrot.slane %v210_v38, 1 }
  0x2b   : > { %v212_v41 = vadd.f32 %v211_v40, %v210_v38  ;;  %v213_v42 = vmul.f32 0.015625, %v191_v39 }
  0x2d   : > { %v214_v43 = vmul.f32 0.015625, %v212_v41  ;;  %v215_v44 = vmul.f32 %v213_v42, %v213_v42  ;;  %v220_v53 = vsub.f32 %v396_v0, %v213_v42  ;;  %v221_v55 = vsub.f32 %v398_v1, %v213_v42 }
  0x2e   : > { %v222_v56 = vsub.f32 %v400_v2, %v213_v42  ;;  %v223_v57 = vsub.f32 %v402_v3, %v213_v42  ;;  %v224_v58 = vsub.f32 %v175_v8, %v213_v42  ;;  %v225_v59 = vsub.f32 %v176_v12, %v213_v42 }
  0x2f   : > { %v216_v45 = vsub.f32 %v214_v43, %v215_v44  ;;  %v226_v60 = vsub.f32 %v177_v16, %v213_v42  ;;  %v227_v61 = vsub.f32 %v178_v20, %v213_v42 }
  0x31   : > { %v217_v46 = vmax.f32 %v216_v45, 0.0 }
  0x33   : > { %v218_v47 = vadd.f32 1e-05, %v217_v46 }
  0x35   : > { %350 = vrsqrt.f32 %v218_v47 }
  0x3f   : > { %v351_v52 = vpop.eup %350 }
  0x40   : > { %v229_v54 = vmul.f32 %v351_v52, %v228_v50 }
  0x42   : > { %v233_v62 = vrot.slane %v229_v54, %v232_v51 }
  0x44   : > { %v234_v4 = vmul.f32 %v233_v62, %v220_v53  ;;  %v235_v5 = vmul.f32 %v233_v62, %v221_v55  ;;  %v236_v0 = vmul.f32 %v233_v62, %v222_v56  ;;  %v237_v6 = vmul.f32 %v233_v62, %v223_v57 }
  0x45   : > { %v238_v7 = vmul.f32 %v233_v62, %v224_v58  ;;  %v239_v1 = vmul.f32 %v233_v62, %v225_v59  ;;  %v240_v9 = vmul.f32 %v233_v62, %v226_v60  ;;  %v241_v2 = vmul.f32 %v233_v62, %v227_v61 }
  0x46   : > { %v249_v10 = vadd.f32 %v337_v63, %v234_v4  ;;  %v250_v3 = vadd.f32 %v337_v63, %v235_v5  ;;  %v251_v8 = vadd.f32 %v337_v63, %v236_v0  ;;  %v252_v11 = vadd.f32 %v337_v63, %v237_v6 }
  0x47   : > { %v253_v12 = vadd.f32 %v337_v63, %v238_v7  ;;  %v254_v13 = vadd.f32 %v337_v63, %v239_v1  ;;  %v255_v14 = vadd.f32 %v337_v63, %v240_v9  ;;  %v256_v15 = vadd.f32 %v337_v63, %v241_v2 }
  0x48   : > { %v257_v16 = vmax.f32 %v249_v10, 0.0  ;;  %v258_v17 = vmax.f32 %v250_v3, 0.0  ;;  %v259_v18 = vmax.f32 %v251_v8, 0.0  ;;  %v260_v19 = vmax.f32 %v252_v11, 0.0 }
  0x49   : > { %v261_v20 = vmax.f32 %v253_v12, 0.0  ;;  %v262_v21 = vmax.f32 %v254_v13, 0.0  ;;  %v263_v22 = vmax.f32 %v255_v14, 0.0  ;;  %v264_v23 = vmax.f32 %v256_v15, 0.0 }
  0x4a   : > { %265 = vst [vmem:[%s170_s24] sm:$0xff] %v257_v16  ;;  %266 = vst [vmem:[%s170_s24 + $0x8] sm:$0xff] %v258_v17 }
  0x4b   : > { %267 = vst [vmem:[%s170_s24 + $0x10] sm:$0xff] %v259_v18  ;;  %268 = vst [vmem:[%s170_s24 + $0x18] sm:$0xff] %v260_v19 }
  0x4c   : > { %269 = vst [vmem:[%s170_s24 + $0x20] sm:$0xff] %v261_v20  ;;  %270 = vst [vmem:[%s170_s24 + $0x28] sm:$0xff] %v262_v21 }
  0x4d   : > { %271 = vst [vmem:[%s170_s24 + $0x30] sm:$0xff] %v263_v22  ;;  %272 = vst [vmem:[%s170_s24 + $0x38] sm:$0xff] %v264_v23 }
  0x4e PF: > { %s13_s12 = sadd.s32 1, %s358_s12  }
  0x4f   : > { %p10_p4 = scmp.ge.s32.totalorder %s13_s12, 4  }
  0x51   :  { %12 = sbr.rel (!%p10_p4) target bundleno = 1 (0x1), region = 62 }

// kernel: custom_densenet_forward.13
= control target key start
LH: loop header
LB: loop body
LE: loop exit
PB: predicated region body
PF: predicated region fallthrough
CT: control target
= control target key end

     0   :  { %s551_s1 = inlined_call_operand.vmem [shape: bf16[128,128], index: 1, kind: input, shape index: {}]   ;;  %s552_s0 = inlined_call_operand.vmem [shape: bf16[128,128], index: 0, kind: input, shape index: {}]   ;;  %s553_s2 = inlined_call_operand.vmem [shape: f32[128,128], index: 2, kind: output, shape index: {}]  }
   0x1   :  { %v424_v0 = vld [vmem:[%s551_s1] sm:$0xff]   ;;  %v425_v1 = vld [vmem:[%s551_s1 + $0x8] sm:$0xff]   ;;  %v426_v2 = vld [vmem:[%s551_s1 + $0x10] sm:$0xff]  }
   0x2   :  { %376 = vmatprep.subr.bf16.mxu0 %v424_v0  ;;  %408 = vmatprep.subr.bf16.mxu1 %v424_v0  ;;  %v427_v3 = vld [vmem:[%s551_s1 + $0x18] sm:$0xff]   ;;  %v432_v4 = vld [vmem:[%s552_s0] sm:$0xff]   ;;  %v429_v7 = vld [vmem:[%s551_s1 + $0x28] sm:$0xff]  }
   0x3   :  { %377 = vmatpush3.bf16.msra.mxu0 %v424_v0  ;;  %416 = vmatpush3.bf16.msra.mxu1 %v424_v0  ;;  %v433_v5 = vld [vmem:[%s552_s0 + $0x20] sm:$0xff]   ;;  %v430_v8 = vld [vmem:[%s551_s1 + $0x30] sm:$0xff]   ;;  %v431_v9 = vld [vmem:[%s551_s1 + $0x38] sm:$0xff]  }
   0x4   :  { %378 = vmatprep.subr.bf16.mxu0 %v425_v1  ;;  %409 = vmatprep.subr.bf16.mxu1 %v425_v1  ;;  %v428_v6 = vld [vmem:[%s551_s1 + $0x20] sm:$0xff]   ;;  %v434_v10 = vld [vmem:[%s552_s0 + $0x8] sm:$0xff]   ;;  %v436_v12 = vld [vmem:[%s552_s0 + $0x10] sm:$0xff]  }
   0x5   :  { %392 = vmatprep.mubr.bf16.mxu0 %v432_v4  ;;  %400 = vmatprep.mubr.bf16.mxu1 %v433_v5  ;;  %v435_v11 = vld [vmem:[%s552_s0 + $0x28] sm:$0xff]   ;;  %v437_v13 = vld [vmem:[%s552_s0 + $0x30] sm:$0xff]   ;;  %v438_v14 = vld [vmem:[%s552_s0 + $0x18] sm:$0xff]  }
   0x6   :  { %v439_v15 = vld [vmem:[%s552_s0 + $0x38] sm:$0xff]  }
   0x7   :  { %379 = vmatpush3.bf16.msra.mxu0 %v425_v1  ;;  %417 = vmatpush3.bf16.msra.mxu1 %v425_v1 }
   0x8   :  { %380 = vmatprep.subr.bf16.mxu0 %v426_v2  ;;  %410 = vmatprep.subr.bf16.mxu1 %v426_v2 }
   0xb   :  { %381 = vmatpush3.bf16.msra.mxu0 %v426_v2  ;;  %418 = vmatpush3.bf16.msra.mxu1 %v426_v2 }
   0xc   :  { %382 = vmatprep.subr.bf16.mxu0 %v427_v3  ;;  %411 = vmatprep.subr.bf16.mxu1 %v427_v3 }
   0xf   :  { %383 = vmatpush3.bf16.msra.mxu0 %v427_v3  ;;  %419 = vmatpush3.bf16.msra.mxu1 %v427_v3 }
  0x10   :  { %384 = vmatprep.subr.bf16.mxu0 %v428_v6  ;;  %412 = vmatprep.subr.bf16.mxu1 %v428_v6 }
  0x13   :  { %385 = vmatpush3.bf16.msra.mxu0 %v428_v6  ;;  %420 = vmatpush3.bf16.msra.mxu1 %v428_v6 }
  0x14   :  { %386 = vmatprep.subr.bf16.mxu0 %v429_v7  ;;  %413 = vmatprep.subr.bf16.mxu1 %v429_v7 }
  0x17   :  { %387 = vmatpush3.bf16.msra.mxu0 %v429_v7  ;;  %421 = vmatpush3.bf16.msra.mxu1 %v429_v7 }
  0x18   :  { %388 = vmatprep.subr.bf16.mxu0 %v430_v8  ;;  %414 = vmatprep.subr.bf16.mxu1 %v430_v8 }
  0x1b   :  { %389 = vmatpush3.bf16.msra.mxu0 %v430_v8  ;;  %422 = vmatpush3.bf16.msra.mxu1 %v430_v8 }
  0x1c   :  { %390 = vmatprep.subr.bf16.mxu0 %v431_v9  ;;  %415 = vmatprep.subr.bf16.mxu1 %v431_v9 }
  0x1f   :  { %391 = vmatpush3.bf16.msra.mxu0 %v431_v9  ;;  %423 = vmatpush3.bf16.msra.mxu1 %v431_v9 }
  0x22   :  { %393 = vmatmul.mubr.bf16.vlgmr.msra.gmra.mrb[0].mxu0 %v434_v10  ;;  %401 = vmatmul.mubr.bf16.vlgmr.msra.gmra.mrb[0].mxu1 %v435_v11 }
  0x23   :  { %396 = vmatprep.mubr.bf16.mxu0 %v436_v12  ;;  %404 = vmatprep.mubr.bf16.mxu1 %v437_v13 }
  0x2a   :  { %397 = vmatmul.mubr.bf16.gmra.mrb[4].mxu0 %v438_v14  ;;  %405 = vmatmul.mubr.bf16.gmra.mrb[4].mxu1 %v439_v15 }
  0xf5   :  { %v394_v16 = vpop.f32.mrb[0].mxu0  ;;  %v402_v17 = vpop.f32.mrb[0].mxu1 }
  0xf6   :  { %326 = vst [vmem:[%s553_s2 + $0x10] sm:$0xff] %v394_v16  ;;  %334 = vst [vmem:[%s553_s2 + $0x50] sm:$0xff] %v402_v17  ;;  %v210_v18 = vpop.f32.mrb[1].mxu0  ;;  %v242_v19 = vpop.f32.mrb[1].mxu1 }
  0xf7   :  { %324 = vst [vmem:[%s553_s2] sm:$0xff] %v210_v18  ;;  %332 = vst [vmem:[%s553_s2 + $0x40] sm:$0xff] %v242_v19  ;;  %v395_v20 = vpop.f32.mrb[2].mxu0  ;;  %v403_v21 = vpop.f32.mrb[2].mxu1 }
  0xf8   :  { %327 = vst [vmem:[%s553_s2 + $0x18] sm:$0xff] %v395_v20  ;;  %335 = vst [vmem:[%s553_s2 + $0x58] sm:$0xff] %v403_v21  ;;  %v213_v22 = vpop.f32.mrb[3].mxu0  ;;  %v245_v23 = vpop.f32.mrb[3].mxu1 }
  0xf9   :  { %325 = vst [vmem:[%s553_s2 + $0x8] sm:$0xff] %v213_v22  ;;  %333 = vst [vmem:[%s553_s2 + $0x48] sm:$0xff] %v245_v23 }
  0xfd   :  { %v398_v24 = vpop.f32.mrb[4].mxu0  ;;  %v406_v25 = vpop.f32.mrb[4].mxu1 }
  0xfe   :  { %330 = vst [vmem:[%s553_s2 + $0x30] sm:$0xff] %v398_v24  ;;  %338 = vst [vmem:[%s553_s2 + $0x70] sm:$0xff] %v406_v25  ;;  %v226_v26 = vpop.f32.mrb[5].mxu0  ;;  %v258_v27 = vpop.f32.mrb[5].mxu1 }
  0xff   :  { %328 = vst [vmem:[%s553_s2 + $0x20] sm:$0xff] %v226_v26  ;;  %336 = vst [vmem:[%s553_s2 + $0x60] sm:$0xff] %v258_v27  ;;  %v399_v28 = vpop.f32.mrb[6].mxu0  ;;  %v407_v29 = vpop.f32.mrb[6].mxu1 }
 0x100   :  { %331 = vst [vmem:[%s553_s2 + $0x38] sm:$0xff] %v399_v28  ;;  %339 = vst [vmem:[%s553_s2 + $0x78] sm:$0xff] %v407_v29  ;;  %v229_v30 = vpop.f32.mrb[7].mxu0  ;;  %v261_v31 = vpop.f32.mrb[7].mxu1 }
 0x101   :  { %329 = vst [vmem:[%s553_s2 + $0x28] sm:$0xff] %v229_v30  ;;  %337 = vst [vmem:[%s553_s2 + $0x68] sm:$0xff] %v261_v31 }

// kernel: custom_densenet_forward.15
= control target key start
LH: loop header
LB: loop body
LE: loop exit
PB: predicated region body
PF: predicated region fallthrough
CT: control target
= control target key end

     0   :  { %s1417_s9 = smov 0   ;;  %s1419_s10 = smov 0   ;;  %s1652_s0 = inlined_call_operand.vmem [shape: bf16[128,1152], index: 0, kind: input, shape index: {}]   ;;  %s1653_s1 = inlined_call_operand.vmem [shape: bf16[1152,128], index: 1, kind: input, shape index: {}]   ;;  %s1654_s2 = inlined_call_operand.vmem [shape: f32[128,128], index: 2, kind: output, shape index: {}]  }
   0x1   :  { %s1421_s11 = smov 0   ;;  %s1423_s12 = smov 0  }
   0x2   :  { %s1425_s13 = smov 0  }
   0x3 LB: > { %s24_s14 = sadd.s32 1, %s1395_s12  ;;  %p47_p1 = scmp.ne.s32.totalorder %s1387_s10, %s1383_s9  ;;  %s1399_s13 = sphi %s1425_s13, %s12_s13   ;;  %s1395_s12 = sphi %s1423_s12, %s1658_s12   ;;  %s1391_s11 = sphi %s1421_s11, %s1657_s11   ;;  %s1387_s10 = sphi %s1419_s10, %s1656_s10   ;;  %s1383_s9 = sphi %s1417_s9, %s1655_s9  }
   0x4   : > { %p25_p0 = scmp.ge.s32.totalorder %s24_s14, 3  ;;  %p48_p2 = scmp.eq.s32.totalorder %s1399_s13, 0 }
   0x5   : > { %s40_s16 = sadd.s32 1, %s1387_s10  ;;  %p1059_p5 = scmp.ge.s32.totalorder %s1399_s13, 3 }
   0x6   : > { %s1660_s14 = smov (%p25_p0, %s24_s14), 0  ;;  %p49_p3 = por %p48_p2, %p47_p1 }
   0x7   : > { %s36_s15 = ssub.s32 %s1395_s12, %s1660_s14  ;;  %129 = sbr.rel (%p1059_p5) target bundleno = 37 (0x25), region = 16 }
   0x8   : > { %p38_p4 = scmp.eq.s32.totalorder %s36_s15, 0 }
   0xa   : > { %s1452_s17 = scalar_select %p38_p4, %s1387_s10, %s40_s16  }
   0xe   : > { %132 = sbr.rel (!%p49_p3) target bundleno = 37 (0x25), region = 20  ;;  %s134_s18 = sand.u32 (%p49_p3), 1, %s1387_s10  }
   0xf   : > { %s1149_s19 = smul.u32 (%p49_p3), 12, %s1395_s12 }
  0x10   : > { %s1262_s20 = smul.u32 (%p49_p3), 192, %s134_s18 }
  0x11   : > { %s1460_s23 = scalar_lea.vmem (%p49_p3), %s1652_s0, %s1149_s19 }
  0x12   : > { %v157_v0 = vld [vmem:[%s1460_s23] sm:$0xff] (%p49_p3)  ;;  %v161_v2 = vld [vmem:[%s1460_s23 + $0x48] sm:$0xff] (%p49_p3)  ;;  %s1465_s24 = scalar_lea.vmem (%p49_p3), [#allocation3], %s1262_s20  ;;  %v165_v4 = vld [vmem:[%s1460_s23 + $0x90] sm:$0xff] (%p49_p3) }
  0x13   : > { %v159_v1 = vld [vmem:[%s1460_s23 + $0x24] sm:$0xff] (%p49_p3)  ;;  %158 = vst [vmem:[%s1465_s24] sm:$0xff] (%p49_p3), %v157_v0  ;;  %162 = vst [vmem:[%s1465_s24 + $0x18] sm:$0xff] (%p49_p3), %v161_v2  ;;  %v163_v3 = vld [vmem:[%s1460_s23 + $0x6c] sm:$0xff] (%p49_p3) }
  0x14   : > { %160 = vst [vmem:[%s1465_s24 + $0xc] sm:$0xff] (%p49_p3), %v159_v1  ;;  %v167_v5 = vld [vmem:[%s1460_s23 + $0xb4] sm:$0xff] (%p49_p3)  ;;  %164 = vst [vmem:[%s1465_s24 + $0x24] sm:$0xff] (%p49_p3), %v163_v3  ;;  %v171_v7 = vld [vmem:[%s1460_s23 + $0xfc] sm:$0xff] (%p49_p3) }
  0x15   : > { %166 = vst [vmem:[%s1465_s24 + $0x30] sm:$0xff] %v165_v4  ;;  %168 = vst [vmem:[%s1465_s24 + $0x3c] sm:$0xff] %v167_v5  ;;  %v169_v6 = vld [vmem:[%s1460_s23 + $0xd8] sm:$0xff]  ;;  %v173_v8 = vld [vmem:[%s1460_s23 + $0x120] sm:$0xff] }
  0x16   : > { %170 = vst [vmem:[%s1465_s24 + $0x48] sm:$0xff] %v169_v6  ;;  %172 = vst [vmem:[%s1465_s24 + $0x54] sm:$0xff] %v171_v7  ;;  %v175_v9 = vld [vmem:[%s1460_s23 + $0x144] sm:$0xff]  ;;  %v179_v11 = vld [vmem:[%s1460_s23 + $0x18c] sm:$0xff] }
  0x17   : > { %174 = vst [vmem:[%s1465_s24 + $0x60] sm:$0xff] %v173_v8  ;;  %v177_v10 = vld [vmem:[%s1460_s23 + $0x168] sm:$0xff]  ;;  %176 = vst [vmem:[%s1465_s24 + $0x6c] sm:$0xff] %v175_v9  ;;  %v181_v12 = vld [vmem:[%s1460_s23 + $0x1b0] sm:$0xff] }
  0x18   : > { %178 = vst [vmem:[%s1465_s24 + $0x78] sm:$0xff] %v177_v10  ;;  %180 = vst [vmem:[%s1465_s24 + $0x84] sm:$0xff] %v179_v11  ;;  %v183_v13 = vld [vmem:[%s1460_s23 + $0x1d4] sm:$0xff]  ;;  %v187_v15 = vld [vmem:[%s1460_s23 + $0x21c] sm:$0xff] }
  0x19   : > { %v185_v14 = vld [vmem:[%s1460_s23 + $0x1f8] sm:$0xff]  ;;  %182 = vst [vmem:[%s1465_s24 + $0x90] sm:$0xff] %v181_v12  ;;  %184 = vst [vmem:[%s1465_s24 + $0x9c] sm:$0xff] %v183_v13  ;;  %v1061_v16 = vld [vmem:[%s1460_s23 + $0x8] sm:$0xf] }
  0x1a   : > { %186 = vst [vmem:[%s1465_s24 + $0xa8] sm:$0xff] %v185_v14  ;;  %v1063_v17 = vld [vmem:[%s1460_s23 + $0x2c] sm:$0xf]  ;;  %188 = vst [vmem:[%s1465_s24 + $0xb4] sm:$0xff] %v187_v15  ;;  %v1065_v18 = vld [vmem:[%s1460_s23 + $0x50] sm:$0xf] }
  0x1b   : > { %1062 = vst [vmem:[%s1465_s24 + $0x8] sm:$0xf] %v1061_v16  ;;  %1064 = vst [vmem:[%s1465_s24 + $0x14] sm:$0xf] %v1063_v17  ;;  %v1067_v19 = vld [vmem:[%s1460_s23 + $0x74] sm:$0xf] }
  0x1c   : > { %v1069_v20 = vld [vmem:[%s1460_s23 + $0x98] sm:$0xf]  ;;  %1066 = vst [vmem:[%s1465_s24 + $0x20] sm:$0xf] %v1065_v18  ;;  %1068 = vst [vmem:[%s1465_s24 + $0x2c] sm:$0xf] %v1067_v19 }
  0x1d   : > { %1070 = vst [vmem:[%s1465_s24 + $0x38] sm:$0xf] %v1069_v20  ;;  %v1071_v21 = vld [vmem:[%s1460_s23 + $0xbc] sm:$0xf]  ;;  %v1073_v22 = vld [vmem:[%s1460_s23 + $0xe0] sm:$0xf] }
  0x1e   : > { %v1075_v23 = vld [vmem:[%s1460_s23 + $0x104] sm:$0xf]  ;;  %1072 = vst [vmem:[%s1465_s24 + $0x44] sm:$0xf] %v1071_v21  ;;  %1074 = vst [vmem:[%s1465_s24 + $0x50] sm:$0xf] %v1073_v22 }
  0x1f   : > { %1076 = vst [vmem:[%s1465_s24 + $0x5c] sm:$0xf] %v1075_v23  ;;  %v1077_v24 = vld [vmem:[%s1460_s23 + $0x128] sm:$0xf]  ;;  %v1079_v25 = vld [vmem:[%s1460_s23 + $0x14c] sm:$0xf] }
  0x20   : > { %v1081_v26 = vld [vmem:[%s1460_s23 + $0x170] sm:$0xf]  ;;  %1078 = vst [vmem:[%s1465_s24 + $0x68] sm:$0xf] %v1077_v24  ;;  %1080 = vst [vmem:[%s1465_s24 + $0x74] sm:$0xf] %v1079_v25 }
  0x21   : > { %1082 = vst [vmem:[%s1465_s24 + $0x80] sm:$0xf] %v1081_v26  ;;  %v1083_v27 = vld [vmem:[%s1460_s23 + $0x194] sm:$0xf]  ;;  %v1085_v28 = vld [vmem:[%s1460_s23 + $0x1b8] sm:$0xf] }
  0x22   : > { %v1087_v29 = vld [vmem:[%s1460_s23 + $0x1dc] sm:$0xf]  ;;  %1084 = vst [vmem:[%s1465_s24 + $0x8c] sm:$0xf] %v1083_v27  ;;  %1086 = vst [vmem:[%s1465_s24 + $0x98] sm:$0xf] %v1085_v28 }
  0x23   : > { %1088 = vst [vmem:[%s1465_s24 + $0xa4] sm:$0xf] %v1087_v29  ;;  %v1089_v30 = vld [vmem:[%s1460_s23 + $0x200] sm:$0xf]  ;;  %v1091_v31 = vld [vmem:[%s1460_s23 + $0x224] sm:$0xf] }
  0x24   : > { %1090 = vst [vmem:[%s1465_s24 + $0xb0] sm:$0xf] %v1089_v30  ;;  %1092 = vst [vmem:[%s1465_s24 + $0xbc] sm:$0xf] %v1091_v31 }
  0x25 PF: > { %p1093_p6 = scmp.ge.s32.totalorder %s1399_s13, 1  ;;  %p244_p7 = scmp.lt.s32.totalorder %s1399_s13, 4 }
  0x27   : > { %p245_p8 = pnand %p1093_p6, %p244_p7 }
  0x28   : > { %s251_s25 = sand.u32 (!%p245_p8), 1, %s1383_s9   ;;  %s285_s26 = smul.u32 (!%p245_p8), 48, %s1391_s11 }
  0x29   : > { %248 = sbr.rel (%p245_p8) target bundleno = 377 (0x179), region = 50  ;;  %p1095_p10 = scmp.ne.s32.totalorder (!%p245_p8), %s1391_s11, 0 }
  0x2a   : > { %s1263_s27 = smul.u32 (!%p245_p8), 192, %s251_s25  ;;  %p286_p9 = scmp.lt.s32.totalorder (!%p245_p8), %s285_s26, 143 }
  0x2c   : > { %s1537_s4 = scalar_lea.vmem (!%p245_p8), [#allocation3], %s1263_s27 }
  0x30   : > { %s1662_s26 = smov (!%p286_p9, %s285_s26), 143  ;;  %307 = sbr.rel (%p1095_p10) target bundleno = 58 (0x3a), region = 58 }
  0x31   : > { %s1094_s28 = sshll.u32 %s1662_s26, 2  ;;  %v1401_v32 = vmov (!%p1095_p10), 0.0  }
  0x32   : > { %s1535_s3 = scalar_lea.vmem %s1653_s1, %s1094_s28  ;;  %308 = vst [vmem:[#allocation2] sm:$0xff] (!%p1095_p10), %v1401_v32  ;;  %309 = vst [vmem:[#allocation2 + $0x8] sm:$0xff] (!%p1095_p10), %v1401_v32 }
  0x33   : > { %310 = vst [vmem:[#allocation2 + $0x10] sm:$0xff] (!%p1095_p10), %v1401_v32  ;;  %311 = vst [vmem:[#allocation2 + $0x18] sm:$0xff] (!%p1095_p10), %v1401_v32 }
  0x34   : > { %312 = vst [vmem:[#allocation2 + $0x20] sm:$0xff] (!%p1095_p10), %v1401_v32  ;;  %313 = vst [vmem:[#allocation2 + $0x28] sm:$0xff] (!%p1095_p10), %v1401_v32 }
  0x35   : > { %314 = vst [vmem:[#allocation2 + $0x30] sm:$0xff] (!%p1095_p10), %v1401_v32  ;;  %315 = vst [vmem:[#allocation2 + $0x38] sm:$0xff] (!%p1095_p10), %v1401_v32 }
  0x36   : > { %316 = vst [vmem:[#allocation2 + $0x40] sm:$0xff] (!%p1095_p10), %v1401_v32  ;;  %317 = vst [vmem:[#allocation2 + $0x48] sm:$0xff] (!%p1095_p10), %v1401_v32 }
  0x37   : > { %318 = vst [vmem:[#allocation2 + $0x50] sm:$0xff] %v1401_v32  ;;  %319 = vst [vmem:[#allocation2 + $0x58] sm:$0xff] %v1401_v32 }
  0x38   : > { %320 = vst [vmem:[#allocation2 + $0x60] sm:$0xff] %v1401_v32  ;;  %321 = vst [vmem:[#allocation2 + $0x68] sm:$0xff] %v1401_v32 }
  0x39   : > { %322 = vst [vmem:[#allocation2 + $0x70] sm:$0xff] %v1401_v32  ;;  %323 = vst [vmem:[#allocation2 + $0x78] sm:$0xff] %v1401_v32 }
  0x3a PF: > { %v1305_v33 = vld [vmem:[%s1535_s3 + $0x40] sm:$0xff]   ;;  %v1308_v36 = vld [vmem:[%s1535_s3 + $0x48] sm:$0xff]   ;;  %v1311_v39 = vld [vmem:[%s1535_s3 + $0x50] sm:$0xff]   ;;  %p1144_p11 = scmp.ne.s32.totalorder %s1391_s11, 2 }
  0x3b   : > { %v1306_v34 = vld [vmem:[%s1535_s3] sm:$0xff]   ;;  %1150 = vmatprep.subr.bf16.mxu0 %v1305_v33  ;;  %v1309_v37 = vld [vmem:[%s1535_s3 + $0x8] sm:$0xff]   ;;  %v1312_v40 = vld [vmem:[%s1535_s3 + $0x10] sm:$0xff]  }
  0x3c   : > { %v1307_v35 = vld [vmem:[%s1535_s3 + $0x80] sm:$0xff]   ;;  %1151 = vmatpush3.bf16.msra.mxu0 %v1306_v34  ;;  %v1310_v38 = vld [vmem:[%s1535_s3 + $0x88] sm:$0xff]   ;;  %v1313_v41 = vld [vmem:[%s1535_s3 + $0x90] sm:$0xff]  }
  0x3d   : > { %1230 = vmatprep.subr.bf16.mxu1 %v1307_v35  ;;  %1152 = vmatprep.subr.bf16.mxu0 %v1308_v36  ;;  %v1314_v42 = vld [vmem:[%s1535_s3 + $0x58] sm:$0xff]   ;;  %v1317_v45 = vld [vmem:[%s1535_s3 + $0x60] sm:$0xff]   ;;  %v1320_v48 = vld [vmem:[%s1535_s3 + $0x68] sm:$0xff]  }
  0x3e   : > { %1231 = vmatpush3.bf16.msra.mxu1 %v1307_v35  ;;  %v1315_v43 = vld [vmem:[%s1535_s3 + $0x18] sm:$0xff]   ;;  %v1319_v46 = vld [vmem:[%s1535_s3 + $0xa0] sm:$0xff]   ;;  %v1322_v49 = vld [vmem:[%s1535_s3 + $0xa8] sm:$0xff]  }
  0x3f   : > { %1232 = vmatprep.subr.bf16.mxu1 %v1310_v38  ;;  %v1316_v44 = vld [vmem:[%s1535_s3 + $0x98] sm:$0xff]   ;;  %v1318_v47 = vld [vmem:[%s1535_s3 + $0x20] sm:$0xff]   ;;  %v1321_v50 = vld [vmem:[%s1535_s3 + $0x28] sm:$0xff]  }
  0x40   : > { %1153 = vmatpush3.bf16.msra.mxu0 %v1309_v37  ;;  %v1323_v51 = vld [vmem:[%s1535_s3 + $0x70] sm:$0xff]   ;;  %v1326_v54 = vld [vmem:[%s1535_s3 + $0x78] sm:$0xff]   ;;  %v1329_v59 = vld [vmem:[%s1537_s4] ss:$12 sps:$4 sm:$0xff]  }
  0x41   : > { %1154 = vmatprep.subr.bf16.mxu0 %v1311_v39  ;;  %v1324_v52 = vld [vmem:[%s1535_s3 + $0x30] sm:$0xff]   ;;  %v1328_v55 = vld [vmem:[%s1535_s3 + $0xb8] sm:$0xff]   ;;  %v1333_v61 = vld [vmem:[%s1537_s4 + $0x20] ss:$12 sps:$4 sm:$0xff]  }
  0x42   : > { %1233 = vmatpush3.bf16.msra.mxu1 %v1310_v38  ;;  %v1325_v53 = vld [vmem:[%s1535_s3 + $0xb0] sm:$0xff]   ;;  %v1327_v58 = vld [vmem:[%s1535_s3 + $0x38] sm:$0xff]   ;;  %v1349_v5 = vld [vmem:[%s1537_s4 + $0x80] ss:$12 sps:$4 sm:$0xff]  }
  0x43   : > { %1234 = vmatprep.subr.bf16.mxu1 %v1313_v41  ;;  %v1331_v56 = vld [vmem:[%s1537_s4 + $0x4] ss:$12 sps:$4 sm:$0xff]   ;;  %v1332_v57 = vld [vmem:[%s1537_s4 + $0x8] ss:$12 sps:$4 sm:$0xff]   ;;  %v1342_v4 = vld [vmem:[%s1537_s4 + $0x4c] ss:$12 sps:$4 sm:$0xff]  }
  0x44   : > { %1155 = vmatpush3.bf16.msra.mxu0 %v1312_v40  ;;  %724 = vmatprep.mubr.bf16.mxu0 %v1331_v56  ;;  %v1334_v60 = vld [vmem:[%s1537_s4 + $0x1c] ss:$12 sps:$4 sm:$0xff]   ;;  %v1340_v62 = vld [vmem:[%s1537_s4 + $0x38] ss:$12 sps:$4 sm:$0xff]   ;;  %v1337_v0 = vld [vmem:[%s1537_s4 + $0x34] ss:$12 sps:$4 sm:$0xff]  }
  0x45   : > { %1156 = vmatprep.subr.bf16.mxu0 %v1314_v42  ;;  %1246 = vmatprep.mubr.bf16.mxu1 %v1332_v57  ;;  %v1336_v63 = vld [vmem:[%s1537_s4 + $0x18] ss:$12 sps:$4 sm:$0xff]   ;;  %v1341_v1 = vld [vmem:[%s1537_s4 + $0x50] ss:$12 sps:$4 sm:$0xff]   ;;  %v1348_v2 = vld [vmem:[%s1537_s4 + $0x68] ss:$12 sps:$4 sm:$0xff]  }
  0x46   : > { %1235 = vmatpush3.bf16.msra.mxu1 %v1313_v41  ;;  %v1339_v3 = vld [vmem:[%s1537_s4 + $0x30] ss:$12 sps:$4 sm:$0xff]   ;;  %v1356_v6 = vld [vmem:[%s1537_s4 + $0x98] ss:$12 sps:$4 sm:$0xff]   ;;  %v1344_v7 = vld [vmem:[%s1537_s4 + $0x48] ss:$12 sps:$4 sm:$0xff]  }
  0x47   : > { %1236 = vmatprep.subr.bf16.mxu1 %v1316_v44  ;;  %v1345_v8 = vld [vmem:[%s1537_s4 + $0x64] ss:$12 sps:$4 sm:$0xff]   ;;  %v1347_v10 = vld [vmem:[%s1537_s4 + $0x60] ss:$12 sps:$4 sm:$0xff]   ;;  %v1350_v11 = vld [vmem:[%s1537_s4 + $0x7c] ss:$12 sps:$4 sm:$0xff]  }
  0x48   : > { %1157 = vmatpush3.bf16.msra.mxu0 %v1315_v43  ;;  %v1357_v9 = vld [vmem:[%s1537_s4 + $0xb0] ss:$12 sps:$4 sm:$0xff]   ;;  %v1352_v12 = vld [vmem:[%s1537_s4 + $0x78] ss:$12 sps:$4 sm:$0xff]   ;;  %v1353_v13 = vld [vmem:[%s1537_s4 + $0x94] ss:$12 sps:$4 sm:$0xff]  }
  0x49   : > { %1158 = vmatprep.subr.bf16.mxu0 %v1317_v45  ;;  %v1355_v14 = vld [vmem:[%s1537_s4 + $0x90] ss:$12 sps:$4 sm:$0xff]   ;;  %v1358_v15 = vld [vmem:[%s1537_s4 + $0xac] ss:$12 sps:$4 sm:$0xff]   ;;  %v1360_v16 = vld [vmem:[%s1537_s4 + $0xa8] ss:$12 sps:$4 sm:$0xff]  }
  0x4a   : > { %1237 = vmatpush3.bf16.msra.mxu1 %v1316_v44  ;;  %v324_v23 = vld [vmem:[#allocation2] sm:$0xff]  ;;  %v325_v28 = vld [vmem:[#allocation2 + $0x8] sm:$0xff]  ;;  %v326_v38 = vld [vmem:[#allocation2 + $0x10] sm:$0xff] }
  0x4b   : > { %1238 = vmatprep.subr.bf16.mxu1 %v1319_v46  ;;  %v327_v44 = vld [vmem:[#allocation2 + $0x18] sm:$0xff] }
  0x4c   : > { %1159 = vmatpush3.bf16.msra.mxu0 %v1318_v47 }
  0x4d   : > { %1160 = vmatprep.subr.bf16.mxu0 %v1320_v48 }
  0x4e   : > { %1239 = vmatpush3.bf16.msra.mxu1 %v1319_v46 }
  0x4f   : > { %1240 = vmatprep.subr.bf16.mxu1 %v1322_v49 }
  0x50   : > { %1161 = vmatpush3.bf16.msra.mxu0 %v1321_v50 }
  0x51   : > { %1162 = vmatprep.subr.bf16.mxu0 %v1323_v51 }
  0x52   : > { %1241 = vmatpush3.bf16.msra.mxu1 %v1322_v49 }
  0x53   : > { %1242 = vmatprep.subr.bf16.mxu1 %v1325_v53 }
  0x54   : > { %1163 = vmatpush3.bf16.msra.mxu0 %v1324_v52 }
  0x55   : > { %1164 = vmatprep.subr.bf16.mxu0 %v1326_v54 }
  0x56   : > { %1243 = vmatpush3.bf16.msra.mxu1 %v1325_v53 }
  0x57   : > { %1244 = vmatprep.subr.bf16.mxu1 %v1328_v55 }
  0x58   : > { %1165 = vmatpush3.bf16.msra.mxu0 %v1327_v58 }
  0x5a   : > { %1245 = vmatpush3.bf16.msra.mxu1 %v1328_v55  ;;  %v328_v55 = vld [vmem:[#allocation2 + $0x20] sm:$0xff] }
  0x5b   : > { %725 = vmatmul.mubr.bf16.vlgmr.msra.gmra.mrb[0].mxu0 %v1329_v59 }
  0x5c   : > { %732 = vmatprep.mubr.bf16.mxu0 %v1334_v60  ;;  %v329_v60 = vld [vmem:[#allocation2 + $0x28] sm:$0xff] }
  0x5d   : > { %1247 = vmatmul.mubr.bf16.vlgmr.msra.gmra.mrb[0].mxu1 %v1333_v61 }
  0x5e   : > { %1250 = vmatprep.mubr.bf16.mxu1 %v1340_v62 }
  0x63   : > { %733 = vmatmul.mubr.bf16.gmra.mrb[4].mxu0 %v1336_v63 }
  0x64   : > { %740 = vmatprep.mubr.bf16.mxu0 %v1337_v0 }
  0x65   : > { %1251 = vmatmul.mubr.bf16.gmra.mrb[4].mxu1 %v1341_v1 }
  0x66   : > { %1254 = vmatprep.mubr.bf16.mxu1 %v1348_v2 }
  0x6b   : > { %741 = vmatmul.mubr.bf16.gmra.mrb[8].mxu0 %v1339_v3 }
  0x6c   : > { %748 = vmatprep.mubr.bf16.mxu0 %v1342_v4 }
  0x6d   : > { %1255 = vmatmul.mubr.bf16.gmra.mrb[8].mxu1 %v1349_v5 }
  0x6e   : > { %1258 = vmatprep.mubr.bf16.mxu1 %v1356_v6  ;;  %v330_v6 = vld [vmem:[#allocation2 + $0x30] sm:$0xff] }
  0x73   : > { %749 = vmatmul.mubr.bf16.gmra.mrb[12].mxu0 %v1344_v7 }
  0x74   : > { %756 = vmatprep.mubr.bf16.mxu0 %v1345_v8 }
  0x75   : > { %1259 = vmatmul.mubr.bf16.gmra.mrb[12].mxu1 %v1357_v9 }
  0x7b   : > { %757 = vmatmul.mubr.bf16.gmra.mrb[16].mxu0 %v1347_v10 }
  0x7c   : > { %764 = vmatprep.mubr.bf16.mxu0 %v1350_v11 }
  0x83   : > { %765 = vmatmul.mubr.bf16.gmra.mrb[20].mxu0 %v1352_v12  ;;  %v331_v12 = vld [vmem:[#allocation2 + $0x38] sm:$0xff] }
  0x84   : > { %772 = vmatprep.mubr.bf16.mxu0 %v1353_v13 }
  0x8b   : > { %773 = vmatmul.mubr.bf16.gmra.mrb[24].mxu0 %v1355_v14 }
  0x8c   : > { %780 = vmatprep.mubr.bf16.mxu0 %v1358_v15 }
  0x93   : > { %781 = vmatmul.mubr.bf16.gmra.mrb[28].mxu0 %v1360_v16 }
 0x12e   : > { %v1166_v17 = vpop.f32.mrb[0].mxu0 }
 0x12f   : > { %v1167_v18 = vpop.f32.mrb[1].mxu0 }
 0x130   : > { %v1168_v19 = vadd.f32 %v1167_v18, %v1166_v17  ;;  %v1169_v20 = vpop.f32.mrb[2].mxu0  ;;  %v1248_v21 = vpop.f32.mrb[0].mxu1 }
 0x131   : > { %v1170_v22 = vpop.f32.mrb[3].mxu0  ;;  %v823_v24 = vpop.f32.mrb[1].mxu1 }
 0x132   : > { %v1171_v25 = vadd.f32 %v1170_v22, %v1169_v20  ;;  %v824_v26 = vadd.f32 %v1168_v19, %v823_v24  ;;  %v1249_v27 = vpop.f32.mrb[2].mxu1  ;;  %v332_v22 = vld [vmem:[#allocation2 + $0x40] sm:$0xff] }
 0x133   : > { %v826_v29 = vpop.f32.mrb[3].mxu1 }
 0x134   : > { %v886_v30 = vadd.f32 %v824_v26, %v324_v23  ;;  %v827_v31 = vadd.f32 %v1171_v25, %v826_v29  ;;  %v333_v25 = vld [vmem:[#allocation2 + $0x48] sm:$0xff] }
 0x136   : > { %902 = vst [vmem:[#allocation2] sm:$0xff] %v886_v30  ;;  %v887_v32 = vadd.f32 %v827_v31, %v325_v28  ;;  %v1172_v33 = vpop.f32.mrb[4].mxu0 }
 0x137   : > { %v1173_v34 = vpop.f32.mrb[5].mxu0 }
 0x138   : > { %903 = vst [vmem:[#allocation2 + $0x8] sm:$0xff] %v887_v32  ;;  %v1174_v35 = vadd.f32 %v1173_v34, %v1172_v33  ;;  %v1175_v36 = vpop.f32.mrb[6].mxu0  ;;  %v1252_v37 = vpop.f32.mrb[4].mxu1  ;;  %v334_v33 = vld [vmem:[#allocation2 + $0x50] sm:$0xff] }
 0x139   : > { %v1176_v39 = vpop.f32.mrb[7].mxu0  ;;  %v839_v40 = vpop.f32.mrb[5].mxu1 }
 0x13a   : > { %v832_v41 = vadd.f32 %v1248_v21, %v1174_v35  ;;  %v1177_v42 = vadd.f32 %v1176_v39, %v1175_v36  ;;  %v1253_v43 = vpop.f32.mrb[6].mxu1 }
 0x13b   : > { %v842_v45 = vpop.f32.mrb[7].mxu1 }
 0x13c   : > { %v888_v46 = vadd.f32 %v832_v41, %v326_v38  ;;  %v835_v47 = vadd.f32 %v1249_v27, %v1177_v42 }
 0x13e   : > { %904 = vst [vmem:[#allocation2 + $0x10] sm:$0xff] %v888_v46  ;;  %v889_v48 = vadd.f32 %v835_v47, %v327_v44  ;;  %v1178_v49 = vpop.f32.mrb[8].mxu0  ;;  %v336_v46 = vld [vmem:[#allocation2 + $0x60] sm:$0xff] }
 0x13f   : > { %v1179_v50 = vpop.f32.mrb[9].mxu0 }
 0x140   : > { %905 = vst [vmem:[#allocation2 + $0x18] sm:$0xff] %v889_v48  ;;  %v1180_v51 = vadd.f32 %v1179_v50, %v1178_v49  ;;  %v1181_v52 = vpop.f32.mrb[10].mxu0  ;;  %v1256_v53 = vpop.f32.mrb[8].mxu1  ;;  %v337_v49 = vld [vmem:[#allocation2 + $0x68] sm:$0xff] }
 0x141   : > { %v1182_v54 = vpop.f32.mrb[11].mxu0  ;;  %v855_v56 = vpop.f32.mrb[9].mxu1 }
 0x142   : > { %v1183_v57 = vadd.f32 %v1182_v54, %v1181_v52  ;;  %v840_v58 = vadd.f32 %v1180_v51, %v839_v40  ;;  %v1257_v59 = vpop.f32.mrb[10].mxu1 }
 0x143   : > { %v858_v61 = vpop.f32.mrb[11].mxu1 }
 0x144   : > { %v890_v62 = vadd.f32 %v840_v58, %v328_v55  ;;  %v843_v63 = vadd.f32 %v1183_v57, %v842_v45  ;;  %v338_v57 = vld [vmem:[#allocation2 + $0x70] sm:$0xff] }
 0x146   : > { %906 = vst [vmem:[#allocation2 + $0x20] sm:$0xff] %v890_v62  ;;  %v891_v0 = vadd.f32 %v843_v63, %v329_v60  ;;  %v1184_v1 = vpop.f32.mrb[12].mxu0 }
 0x147   : > { %v1185_v2 = vpop.f32.mrb[13].mxu0 }
 0x148   : > { %907 = vst [vmem:[#allocation2 + $0x28] sm:$0xff] %v891_v0  ;;  %v1186_v3 = vadd.f32 %v1185_v2, %v1184_v1  ;;  %v1187_v4 = vpop.f32.mrb[14].mxu0  ;;  %v1260_v5 = vpop.f32.mrb[12].mxu1  ;;  %v922_v1 = vld [vmem:[#allocation2] sm:$0xff] (!%p1144_p11)  ;;  %v923_v2 = vld [vmem:[#allocation2 + $0x8] sm:$0xff] (!%p1144_p11) }
 0x149   : > { %v1188_v7 = vpop.f32.mrb[15].mxu0  ;;  %v871_v8 = vpop.f32.mrb[13].mxu1  ;;  %938 = vst [vmem:[%s1654_s2] sm:$0xff] (!%p1144_p11), %v922_v1  ;;  %939 = vst [vmem:[%s1654_s2 + $0x8] sm:$0xff] (!%p1144_p11), %v923_v2 }
 0x14a   : > { %v848_v9 = vadd.f32 %v1252_v37, %v1186_v3  ;;  %v1189_v10 = vadd.f32 %v1188_v7, %v1187_v4  ;;  %v1261_v11 = vpop.f32.mrb[14].mxu1  ;;  %v335_v37 = vld [vmem:[#allocation2 + $0x58] sm:$0xff]  ;;  %v924_v3 = vld [vmem:[#allocation2 + $0x10] sm:$0xff] (!%p1144_p11) }
 0x14b   : > { %v874_v13 = vpop.f32.mrb[15].mxu1  ;;  %940 = vst [vmem:[%s1654_s2 + $0x10] sm:$0xff] (!%p1144_p11), %v924_v3  ;;  %v925_v4 = vld [vmem:[#allocation2 + $0x18] sm:$0xff] (!%p1144_p11) }
 0x14c   : > { %v892_v14 = vadd.f32 %v848_v9, %v330_v6  ;;  %v851_v15 = vadd.f32 %v1253_v43, %v1189_v10  ;;  %941 = vst [vmem:[%s1654_s2 + $0x18] sm:$0xff] (!%p1144_p11), %v925_v4 }
 0x14e   : > { %908 = vst [vmem:[#allocation2 + $0x30] sm:$0xff] %v892_v14  ;;  %v893_v16 = vadd.f32 %v851_v15, %v331_v12  ;;  %v1190_v17 = vpop.f32.mrb[16].mxu0 }
 0x14f   : > { %v1191_v18 = vpop.f32.mrb[17].mxu0  ;;  %v927_v6 = vld [vmem:[#allocation2 + $0x28] sm:$0xff] (!%p1144_p11) }
 0x150   : > { %909 = vst [vmem:[#allocation2 + $0x38] sm:$0xff] %v893_v16  ;;  %v1192_v19 = vadd.f32 %v1191_v18, %v1190_v17  ;;  %v1193_v20 = vpop.f32.mrb[18].mxu0  ;;  %943 = vst [vmem:[%s1654_s2 + $0x28] sm:$0xff] (!%p1144_p11), %v927_v6 }
 0x151   : > { %v1194_v21 = vpop.f32.mrb[19].mxu0 }
 0x152   : > { %v1195_v23 = vadd.f32 %v1194_v21, %v1193_v20  ;;  %v856_v24 = vadd.f32 %v1192_v19, %v855_v56 }
 0x154   : > { %v894_v26 = vadd.f32 %v856_v24, %v332_v22  ;;  %v859_v27 = vadd.f32 %v1195_v23, %v858_v61  ;;  %v339_v61 = vld [vmem:[#allocation2 + $0x78] sm:$0xff] }
 0x155   : > { %v928_v7 = vld [vmem:[#allocation2 + $0x30] sm:$0xff] (!%p1144_p11) }
 0x156   : > { %910 = vst [vmem:[#allocation2 + $0x40] sm:$0xff] %v894_v26  ;;  %v895_v28 = vadd.f32 %v859_v27, %v333_v25  ;;  %v1196_v29 = vpop.f32.mrb[20].mxu0  ;;  %944 = vst [vmem:[%s1654_s2 + $0x30] sm:$0xff] (!%p1144_p11), %v928_v7 }
 0x157   : > { %v1197_v30 = vpop.f32.mrb[21].mxu0 }
 0x158   : > { %911 = vst [vmem:[#allocation2 + $0x48] sm:$0xff] %v895_v28  ;;  %v1198_v31 = vadd.f32 %v1197_v30, %v1196_v29  ;;  %v1199_v32 = vpop.f32.mrb[22].mxu0 }
 0x159   : > { %v1200_v34 = vpop.f32.mrb[23].mxu0 }
 0x15a   : > { %v864_v35 = vadd.f32 %v1256_v53, %v1198_v31  ;;  %v1201_v36 = vadd.f32 %v1200_v34, %v1199_v32 }
 0x15c   : > { %v896_v38 = vadd.f32 %v864_v35, %v334_v33  ;;  %v867_v39 = vadd.f32 %v1257_v59, %v1201_v36 }
 0x15d   : > { %v930_v9 = vld [vmem:[#allocation2 + $0x40] sm:$0xff] (!%p1144_p11) }
 0x15e   : > { %912 = vst [vmem:[#allocation2 + $0x50] sm:$0xff] %v896_v38  ;;  %v897_v40 = vadd.f32 %v867_v39, %v335_v37  ;;  %v1202_v41 = vpop.f32.mrb[24].mxu0  ;;  %946 = vst [vmem:[%s1654_s2 + $0x40] sm:$0xff] (!%p1144_p11), %v930_v9 }
 0x15f   : > { %v1203_v42 = vpop.f32.mrb[25].mxu0  ;;  %v931_v10 = vld [vmem:[#allocation2 + $0x48] sm:$0xff] (!%p1144_p11) }
 0x160   : > { %913 = vst [vmem:[#allocation2 + $0x58] sm:$0xff] %v897_v40  ;;  %v1204_v43 = vadd.f32 %v1203_v42, %v1202_v41  ;;  %v1205_v44 = vpop.f32.mrb[26].mxu0  ;;  %947 = vst [vmem:[%s1654_s2 + $0x48] sm:$0xff] (!%p1144_p11), %v931_v10 }
 0x161   : > { %v1206_v45 = vpop.f32.mrb[27].mxu0 }
 0x162   : > { %v1207_v47 = vadd.f32 %v1206_v45, %v1205_v44  ;;  %v872_v48 = vadd.f32 %v1204_v43, %v871_v8  ;;  %v929_v8 = vld [vmem:[#allocation2 + $0x38] sm:$0xff] (!%p1144_p11) }
 0x163   : > { %945 = vst [vmem:[%s1654_s2 + $0x38] sm:$0xff] (!%p1144_p11), %v929_v8 }
 0x164   : > { %v898_v50 = vadd.f32 %v872_v48, %v336_v46  ;;  %v875_v51 = vadd.f32 %v1207_v47, %v874_v13 }
 0x166   : > { %914 = vst [vmem:[#allocation2 + $0x60] sm:$0xff] %v898_v50  ;;  %v899_v52 = vadd.f32 %v875_v51, %v337_v49  ;;  %v1208_v53 = vpop.f32.mrb[28].mxu0 }
 0x167   : > { %v1209_v54 = vpop.f32.mrb[29].mxu0  ;;  %v933_v12 = vld [vmem:[#allocation2 + $0x58] sm:$0xff] (!%p1144_p11) }
 0x168   : > { %915 = vst [vmem:[#allocation2 + $0x68] sm:$0xff] %v899_v52  ;;  %v1210_v55 = vadd.f32 %v1209_v54, %v1208_v53  ;;  %v1211_v56 = vpop.f32.mrb[30].mxu0  ;;  %949 = vst [vmem:[%s1654_s2 + $0x58] sm:$0xff] (!%p1144_p11), %v933_v12 }
 0x169   : > { %v1212_v58 = vpop.f32.mrb[31].mxu0 }
 0x16a   : > { %v880_v59 = vadd.f32 %v1260_v5, %v1210_v55  ;;  %v1213_v60 = vadd.f32 %v1212_v58, %v1211_v56  ;;  %921 = sbr.rel (%p1144_p11) target bundleno = 377 (0x179), region = 62  ;;  %v926_v5 = vld [vmem:[#allocation2 + $0x20] sm:$0xff] (!%p1144_p11) }
 0x16b   : > { %942 = vst [vmem:[%s1654_s2 + $0x20] sm:$0xff] (!%p1144_p11), %v926_v5 }
 0x16c   : > { %v900_v62 = vadd.f32 %v880_v59, %v338_v57  ;;  %v883_v63 = vadd.f32 %v1261_v11, %v1213_v60  ;;  %v932_v11 = vld [vmem:[#allocation2 + $0x50] sm:$0xff] (!%p1144_p11) }
 0x16d   : > { %948 = vst [vmem:[%s1654_s2 + $0x50] sm:$0xff] (!%p1144_p11), %v932_v11  ;;  %v934_v13 = vld [vmem:[#allocation2 + $0x60] sm:$0xff] (!%p1144_p11) }
 0x16e   : > { %916 = vst [vmem:[#allocation2 + $0x70] sm:$0xff] %v900_v62  ;;  %v901_v0 = vadd.f32 %v883_v63, %v339_v61  ;;  %950 = vst [vmem:[%s1654_s2 + $0x60] sm:$0xff] (!%p1144_p11), %v934_v13 }
 0x16f   : > { %v935_v14 = vld [vmem:[#allocation2 + $0x68] sm:$0xff] (!%p1144_p11) }
 0x170   : > { %917 = vst [vmem:[#allocation2 + $0x78] sm:$0xff] %v901_v0  ;;  %951 = vst [vmem:[%s1654_s2 + $0x68] sm:$0xff] (!%p1144_p11), %v935_v14 }
 0x175   : > { %v936_v15 = vld [vmem:[#allocation2 + $0x70] sm:$0xff] }
 0x176   : > { %952 = vst [vmem:[%s1654_s2 + $0x70] sm:$0xff] %v936_v15 }
 0x177   : > { %v937_v16 = vld [vmem:[#allocation2 + $0x78] sm:$0xff] }
 0x178   : > { %953 = vst [vmem:[%s1654_s2 + $0x78] sm:$0xff] %v937_v16 }
 0x179 PF: > { %s12_s13 = sadd.s32 1, %s1399_s13   ;;  %s1655_s9 = smov %s1387_s10 }
 0x17a   : > { %p9_p12 = scmp.ge.s32.totalorder %s12_s13, 5   ;;  %s1656_s10 = smov %s1452_s17 }
 0x17b   : > { %s1657_s11 = smov %s1395_s12  ;;  %s1658_s12 = smov %s1660_s14 }
 0x17c   :  { %11 = sbr.rel (!%p9_p12) target bundleno = 3 (0x3), region = 106 }

// kernel: custom_densenet_forward.16
= control target key start
LH: loop header
LB: loop body
LE: loop exit
PB: predicated region body
PF: predicated region fallthrough
CT: control target
= control target key end

     0   :  { %s1482_s9 = smov 0   ;;  %s2906_s0 = inlined_call_operand.vmem [shape: f32[2,1,6144], index: 0, kind: input, shape index: {}]   ;;  %s2907_s1 = inlined_call_operand.vmem [shape: f32[40,6144], index: 1, kind: input, shape index: {}]   ;;  %s2908_s2 = inlined_call_operand.vmem [shape: f32[2,1,40], index: 2, kind: output, shape index: {}]  }
   0x1 LB: > { %s1443_s10 = sadd.s32 4294967295, %s1465_s9   ;;  %p1447_p0 = scmp.ge.s32.totalorder %s1465_s9, 1  ;;  %s1465_s9 = sphi %s1482_s9, %s12_s9  }
   0x2   : > { %p111_p1 = scmp.lt.s32.totalorder %s1465_s9, 3 }
   0x4   : > { %p112_p2 = pnand %p1447_p0, %p111_p1 }
   0x6   : > { %115 = sbr.rel (%p112_p2) target bundleno = 414 (0x19e), region = 28 }
   0xd   : > { %p130_p3 = scmp.lt.s32.totalorder %s1443_s10, 1  ;;  %v2909_v0 = vlaneseq  ;;  %v137_v23 = vld [vmem:[%s2907_s1] sm:$0xff]  ;;  %v138_v24 = vld [vmem:[%s2907_s1 + $0x8] sm:$0xff]  ;;  %v139_v25 = vld [vmem:[%s2907_s1 + $0x10] sm:$0xff]  ;;  %vm1370_vm0 = vcmask 130112   ;;  %vm1377_vm1 = vcmask 195712  }
   0xe   : > { %v140_v27 = vld [vmem:[%s2907_s1 + $0x18] sm:$0xff]  ;;  %v141_v32 = vld [vmem:[%s2907_s1 + $0x20] sm:$0xff]  ;;  %v142_v35 = vld [vmem:[%s2907_s1 + $0x28] sm:$0xff]  ;;  %vm1384_vm2 = vcmask 261312   ;;  %vm1391_vm3 = vcmask 326912   ;;  %vm1394_vm4 = vcmask 319488  }
   0xf   : > { %s3158_s10 = smov (!%p130_p3, %s1443_s10), 1  ;;  %v1494_v1 = vshrl.u32 %v2909_v0, 7  ;;  %v143_v41 = vld [vmem:[%s2907_s1 + $0x30] sm:$0xff]  ;;  %v144_v47 = vld [vmem:[%s2907_s1 + $0x38] sm:$0xff]  ;;  %v145_v52 = vld [vmem:[%s2907_s1 + $0x40] sm:$0xff] }
  0x10   : > { %s1450_s11 = smul.u32 48, %s3158_s10  ;;  %v146_v57 = vld [vmem:[%s2907_s1 + $0x48] sm:$0xff]  ;;  %v147_v62 = vld [vmem:[%s2907_s1 + $0x50] sm:$0xff]  ;;  %s136_s3 = scalar_lea.vmem %s2908_s2, %s3158_s10 }
  0x11   : > { %3016 = vst [vmem:[#allocation2_spill] sm:$0xff] %v1494_v1  ;;  %v1503_v3 = vsub.s32 0, %v1494_v1  ;;  %v1506_v4 = vsub.s32 1, %v1494_v1  ;;  %v1509_v5 = vsub.s32 2, %v1494_v1  ;;  %v1512_v6 = vsub.s32 3, %v1494_v1 }
  0x12   : > { %s1499_s14 = scalar_lea.vmem %s2906_s0, %s1450_s11  ;;  %v1515_v7 = vsub.s32 4, %v1494_v1  ;;  %v1518_v8 = vsub.s32 5, %v1494_v1  ;;  %v1521_v9 = vsub.s32 6, %v1494_v1  ;;  %v1524_v10 = vsub.s32 7, %v1494_v1 }
  0x13   : > { %v382_v2 = vld [vmem:[%s1499_s14 + $0x28] sm:$0xff]  ;;  %v377_v19 = vld [vmem:[%s1499_s14] sm:$0xff] }
  0x14   : > { %v1527_v11 = vrot.slane %v382_v2, %v1503_v3  ;;  %v1530_v12 = vrot.slane %v382_v2, %v1506_v4  ;;  %v1533_v13 = vrot.slane %v382_v2, %v1509_v5  ;;  %v1536_v14 = vrot.slane %v382_v2, %v1512_v6  ;;  %v378_v42 = vld [vmem:[%s1499_s14 + $0x8] sm:$0xff] }
  0x15   : > { %v1539_v15 = vrot.slane %v382_v2, %v1515_v7  ;;  %v1542_v16 = vrot.slane %v382_v2, %v1518_v8  ;;  %v1545_v17 = vrot.slane %v382_v2, %v1521_v9  ;;  %v1548_v18 = vrot.slane %v382_v2, %v1524_v10 }
  0x16   : > { %3017 = vst [vmem:[#allocation3_spill] sm:$0xff] %v1530_v12  ;;  %3018 = vst [vmem:[#allocation4_spill] sm:$0xff] %v1533_v13  ;;  %v1552_v20 = vrot.slane %v377_v19, %v1503_v3  ;;  %v1555_v21 = vrot.slane %v377_v19, %v1506_v4  ;;  %v1558_v22 = vrot.slane %v377_v19, %v1509_v5 }
  0x17   : > { %v1570_v26 = vrot.slane %v377_v19, %v1512_v6  ;;  %v1576_v28 = vrot.slane %v377_v19, %v1515_v7  ;;  %v1585_v33 = vrot.slane %v377_v19, %v1518_v8  ;;  %v1592_v36 = vrot.slane %v377_v19, %v1521_v9 }
  0x18   : > { %3019 = vst [vmem:[#allocation5_spill] sm:$0xff] %v1552_v20  ;;  %3020 = vst [vmem:[#allocation6_spill] sm:$0xff] %v1555_v21  ;;  %v629_v29 = vsub.f32 %v137_v23, %v1552_v20  ;;  %v630_v30 = vsub.f32 %v138_v24, %v1555_v21  ;;  %v631_v31 = vsub.f32 %v139_v25, %v1558_v22  ;;  %v148_v24 = vld [vmem:[%s2907_s1 + $0x58] sm:$0xff] }
  0x19   : > { %3021 = vst [vmem:[#allocation7_spill] sm:$0xff] %v1558_v22  ;;  %3022 = vst [vmem:[#allocation8_spill] sm:$0xff] %v1570_v26  ;;  %v632_v34 = vsub.f32 %v140_v27, %v1570_v26  ;;  %v633_v37 = vsub.f32 %v141_v32, %v1576_v28  ;;  %v1600_v43 = vrot.slane %v377_v19, %v1524_v10 }
  0x1a   : > { %3023 = vst [vmem:[#allocation9_spill] sm:$0xff] %v1576_v28  ;;  %3024 = vst [vmem:[#allocation10_spill] sm:$0xff] %v1585_v33  ;;  %v869_v38 = vand.u32 2147483647, %v629_v29  ;;  %v870_v39 = vand.u32 2147483647, %v630_v30  ;;  %v634_v44 = vsub.f32 %v142_v35, %v1585_v33  ;;  %v1607_v48 = vrot.slane %v378_v42, %v1503_v3 }
  0x1b   : > { %3025 = vst [vmem:[#allocation11_spill] sm:$0xff] %v1592_v36  ;;  %v871_v40 = vand.u32 2147483647, %v631_v31  ;;  %3026 = vst [vmem:[#allocation12_spill] sm:$0xff] %v1600_v43  ;;  %v872_v45 = vand.u32 2147483647, %v632_v34  ;;  %v635_v49 = vsub.f32 %v143_v41, %v1592_v36  ;;  %v1614_v53 = vrot.slane %v378_v42, %v1506_v4 }
  0x1c   : > { %v1109_v46 = vadd.f32 %v870_v39, %v869_v38  ;;  %3027 = vst [vmem:[#allocation13_spill] sm:$0xff] %v1607_v48  ;;  %v873_v50 = vand.u32 2147483647, %v633_v37  ;;  %v636_v54 = vsub.f32 %v144_v47, %v1600_v43  ;;  %v874_v55 = vand.u32 2147483647, %v634_v44  ;;  %v149_v31 = vld [vmem:[%s2907_s1 + $0x60] sm:$0xff] }
  0x1d   : > { %3028 = vst [vmem:[#allocation14_spill] sm:$0xff] %v1614_v53  ;;  %v1621_v58 = vrot.slane %v378_v42, %v1509_v5  ;;  %v637_v59 = vsub.f32 %v145_v52, %v1607_v48  ;;  %v875_v60 = vand.u32 2147483647, %v635_v49  ;;  %v1628_v63 = vrot.slane %v378_v42, %v1512_v6  ;;  %v150_v38 = vld [vmem:[%s2907_s1 + $0x68] sm:$0xff]  ;;  %v152_v52 = vld [vmem:[%s2907_s1 + $0x78] sm:$0xff] }
  0x1e   : > { %v1110_v51 = vadd.f32 %v1109_v46, %v871_v40  ;;  %v638_v2 = vsub.f32 %v146_v57, %v1614_v53  ;;  %v876_v19 = vand.u32 2147483647, %v636_v54  ;;  %v1635_v25 = vrot.slane %v378_v42, %v1515_v7  ;;  %v379_v46 = vld [vmem:[%s1499_s14 + $0x10] sm:$0xff] }
  0x1f   : > { %3029 = vst [vmem:[#allocation15_spill] sm:$0xff] %v1621_v58  ;;  %3030 = vst [vmem:[#allocation16_spill] sm:$0xff] %v1628_v63  ;;  %v639_v27 = vsub.f32 %v147_v62, %v1621_v58  ;;  %v877_v29 = vand.u32 2147483647, %v637_v59  ;;  %v1642_v32 = vrot.slane %v378_v42, %v1518_v8  ;;  %v640_v34 = vsub.f32 %v148_v24, %v1628_v63  ;;  %v234_v59 = vld [vmem:[%s2907_s1 + $0x308] sm:$0xff]  ;;  %v236_v24 = vld [vmem:[%s2907_s1 + $0x318] sm:$0xff] }
  0x20   : > { %v1111_v56 = vadd.f32 %v1110_v51, %v872_v45  ;;  %3031 = vst [vmem:[#allocation17_spill] sm:$0xff] %v1635_v25  ;;  %v878_v35 = vand.u32 2147483647, %v638_v2  ;;  %v1649_v39 = vrot.slane %v378_v42, %v1521_v9  ;;  %v641_v40 = vsub.f32 %v149_v31, %v1635_v25  ;;  %v151_v45 = vld [vmem:[%s2907_s1 + $0x70] sm:$0xff] }
  0x21   : > { %3032 = vst [vmem:[#allocation18_spill] sm:$0xff] %v1642_v32  ;;  %v879_v41 = vand.u32 2147483647, %v639_v27  ;;  %v1657_v47 = vrot.slane %v378_v42, %v1524_v10  ;;  %v642_v49 = vsub.f32 %v150_v38, %v1642_v32  ;;  %v1664_v54 = vrot.slane %v379_v46, %v1503_v3  ;;  %v233_v42 = vld [vmem:[%s2907_s1 + $0x300] sm:$0xff]  ;;  %v154_v27 = vld [vmem:[%s2907_s1 + $0x88] sm:$0xff] }
  0x22   : > { %v1112_v61 = vadd.f32 %v1111_v56, %v873_v50  ;;  %3033 = vst [vmem:[#allocation19_spill] sm:$0xff] %v1649_v39  ;;  %v880_v50 = vand.u32 2147483647, %v640_v34  ;;  %v881_v56 = vand.u32 2147483647, %v641_v40  ;;  %v1680_v62 = vrot.slane %v379_v46, %v1506_v4 }
  0x23   : > { %3034 = vst [vmem:[#allocation20_spill] sm:$0xff] %v1657_v47  ;;  %3035 = vst [vmem:[#allocation21_spill] sm:$0xff] %v1664_v54  ;;  %v644_v2 = vsub.f32 %v152_v52, %v1657_v47  ;;  %v726_v31 = vsub.f32 %v234_v59, %v1555_v21  ;;  %v728_v52 = vsub.f32 %v236_v24, %v1570_v26  ;;  %v381_v21 = vld [vmem:[%s1499_s14 + $0x20] sm:$0xff] }
  0x24   : > { %v1113_v23 = vadd.f32 %v1112_v61, %v874_v55  ;;  %v643_v55 = vsub.f32 %v151_v45, %v1649_v39  ;;  %v153_v61 = vld [vmem:[%s2907_s1 + $0x80] sm:$0xff]  ;;  %3036 = vst [vmem:[#allocation22_spill] sm:$0xff] %v1680_v62  ;;  %v380_v45 = vld [vmem:[%s1499_s14 + $0x18] sm:$0xff] }
  0x25   : > { %v966_v0 = vand.u32 2147483647, %v726_v31  ;;  %v1728_v1 = vrot.slane %v380_v45, %v1503_v3  ;;  %v968_v31 = vand.u32 2147483647, %v728_v52 }
  0x26   : > { %v1114_v30 = vadd.f32 %v1113_v23, %v875_v60  ;;  %v235_v60 = vld [vmem:[%s2907_s1 + $0x310] sm:$0xff]  ;;  %v883_v38 = vand.u32 2147483647, %v643_v55  ;;  %v156_v55 = vld [vmem:[%s2907_s1 + $0x98] sm:$0xff] }
  0x27   : > { %v727_v34 = vsub.f32 %v235_v60, %v1558_v22  ;;  %v238_v60 = vld [vmem:[%s2907_s1 + $0x328] sm:$0xff]  ;;  %3043 = vst [vmem:[#allocation29_spill] sm:$0xff] %v1728_v1 }
  0x28   : > { %v1115_v37 = vadd.f32 %v1114_v30, %v876_v19  ;;  %v882_v19 = vand.u32 2147483647, %v642_v49  ;;  %v725_v30 = vsub.f32 %v233_v42, %v1552_v20  ;;  %v1707_v49 = vrot.slane %v379_v46, %v1515_v7  ;;  %v160_v20 = vld [vmem:[%s2907_s1 + $0xb8] sm:$0xff] }
  0x29   : > { %v884_v42 = vand.u32 2147483647, %v644_v2  ;;  %v967_v24 = vand.u32 2147483647, %v727_v34  ;;  %v239_v2 = vld [vmem:[%s2907_s1 + $0x330] sm:$0xff] }
  0x2a   : > { %v1116_v44 = vadd.f32 %v1115_v37, %v877_v29  ;;  %v1690_v29 = vrot.slane %v379_v46, %v1509_v5  ;;  %v645_v37 = vsub.f32 %v153_v61, %v1664_v54  ;;  %3039 = vst [vmem:[#allocation25_spill] sm:$0xff] %v1707_v49 }
  0x2c   : > { %v1117_v51 = vadd.f32 %v1116_v44, %v878_v35  ;;  %3037 = vst [vmem:[#allocation23_spill] sm:$0xff] %v1690_v29  ;;  %v1696_v35 = vrot.slane %v379_v46, %v1512_v6  ;;  %v155_v44 = vld [vmem:[%s2907_s1 + $0x90] sm:$0xff] }
  0x2d   : > { %v647_v26 = vsub.f32 %v155_v44, %v1690_v29  ;;  %v240_v44 = vld [vmem:[%s2907_s1 + $0x338] sm:$0xff] }
  0x2e   : > { %v1118_v57 = vadd.f32 %v1117_v51, %v879_v41  ;;  %3038 = vst [vmem:[#allocation24_spill] sm:$0xff] %v1696_v35  ;;  %v237_v41 = vld [vmem:[%s2907_s1 + $0x320] sm:$0xff]  ;;  %v1713_v51 = vrot.slane %v379_v46, %v1521_v9 }
  0x2f   : > { %v729_v61 = vsub.f32 %v237_v41, %v1576_v28  ;;  %v159_v28 = vld [vmem:[%s2907_s1 + $0xb0] sm:$0xff] }
  0x30   : > { %v1119_v23 = vadd.f32 %v1118_v57, %v880_v50  ;;  %v1710_v50 = vrot.slane %v379_v46, %v1518_v8  ;;  %3041 = vst [vmem:[#allocation27_spill] sm:$0xff] %v1713_v51  ;;  %v646_v57 = vsub.f32 %v154_v27, %v1680_v62  ;;  %v1738_v27 = vrot.slane %v380_v45, %v1506_v4 }
  0x31   : > { %v969_v52 = vand.u32 2147483647, %v729_v61  ;;  %v732_v61 = vsub.f32 %v240_v44, %v1600_v43  ;;  %v1795_v43 = vrot.slane %v381_v21, %v1506_v4  ;;  %v162_v4 = vld [vmem:[%s2907_s1 + $0xc8] sm:$0xff] }
  0x32   : > { %v1120_v40 = vadd.f32 %v1119_v23, %v881_v56  ;;  %3040 = vst [vmem:[#allocation26_spill] sm:$0xff] %v1710_v50  ;;  %v1720_v56 = vrot.slane %v379_v46, %v1524_v10  ;;  %v965_v23 = vand.u32 2147483647, %v725_v30  ;;  %v885_v46 = vand.u32 2147483647, %v645_v37  ;;  %3044 = vst [vmem:[#allocation30_spill] sm:$0xff] %v1738_v27 }
  0x33   : > { %v730_v30 = vsub.f32 %v238_v60, %v1585_v33  ;;  %v648_v37 = vsub.f32 %v156_v55, %v1696_v35  ;;  %v1752_v60 = vrot.slane %v380_v45, %v1512_v6  ;;  %v1756_v33 = vrot.slane %v380_v45, %v1515_v7 }
  0x34   : > { %3042 = vst [vmem:[#allocation28_spill] sm:$0xff] %v1720_v56  ;;  %v1121_v59 = vadd.f32 %v1120_v40, %v882_v19  ;;  %v157_v19 = vld [vmem:[%s2907_s1 + $0xa0] sm:$0xff]  ;;  %v1207_v34 = vadd.f32 %v966_v0, %v965_v23  ;;  %v1742_v40 = vrot.slane %v380_v45, %v1509_v5  ;;  %v731_v0 = vsub.f32 %v239_v2, %v1592_v36  ;;  %v242_v36 = vld [vmem:[%s2907_s1 + $0x348] sm:$0xff] }
  0x35   : > { %3046 = vst [vmem:[#allocation32_spill] sm:$0xff] %v1752_v60  ;;  %3047 = vst [vmem:[#allocation33_spill] sm:$0xff] %v1756_v33  ;;  %v887_v55 = vand.u32 2147483647, %v647_v26  ;;  %v1767_v2 = vrot.slane %v380_v45, %v1518_v8 }
  0x36   : > { %v1122_v22 = vadd.f32 %v1121_v59, %v883_v38  ;;  %3045 = vst [vmem:[#allocation31_spill] sm:$0xff] %v1742_v40  ;;  %v886_v38 = vand.u32 2147483647, %v646_v57  ;;  %v158_v59 = vld [vmem:[%s2907_s1 + $0xa8] sm:$0xff]  ;;  %v1208_v23 = vadd.f32 %v1207_v34, %v967_v24  ;;  %v970_v24 = vand.u32 2147483647, %v730_v30 }
  0x37   : > { %3048 = vst [vmem:[#allocation34_spill] sm:$0xff] %v1767_v2  ;;  %v650_v26 = vsub.f32 %v158_v59, %v1710_v50 }
  0x38   : > { %v1123_v41 = vadd.f32 %v1122_v22, %v884_v42  ;;  %v649_v22 = vsub.f32 %v157_v19, %v1707_v49  ;;  %v241_v42 = vld [vmem:[%s2907_s1 + $0x340] sm:$0xff]  ;;  %v1209_v34 = vadd.f32 %v1208_v23, %v968_v31  ;;  %v1771_v19 = vrot.slane %v380_v45, %v1521_v9 }
  0x39   : > { %v1781_v49 = vrot.slane %v380_v45, %v1524_v10  ;;  %v733_v30 = vsub.f32 %v241_v42, %v1607_v48  ;;  %v971_v31 = vand.u32 2147483647, %v731_v0  ;;  %v1785_v23 = vrot.slane %v381_v21, %v1503_v3  ;;  %v161_v45 = vld [vmem:[%s2907_s1 + $0xc0] sm:$0xff] }
  0x3a   : > { %v1124_v57 = vadd.f32 %v1123_v41, %v885_v46  ;;  %3049 = vst [vmem:[#allocation35_spill] sm:$0xff] %v1771_v19  ;;  %v888_v46 = vand.u32 2147483647, %v648_v37  ;;  %v1210_v44 = vadd.f32 %v1209_v34, %v969_v52  ;;  %v651_v37 = vsub.f32 %v159_v28, %v1713_v51  ;;  %v244_v34 = vld [vmem:[%s2907_s1 + $0x358] sm:$0xff] }
  0x3b   : > { %3050 = vst [vmem:[#allocation36_spill] sm:$0xff] %v1781_v49  ;;  %3051 = vst [vmem:[#allocation37_spill] sm:$0xff] %v1785_v23  ;;  %v734_v0 = vsub.f32 %v242_v36, %v1614_v53  ;;  %v972_v52 = vand.u32 2147483647, %v732_v61  ;;  %v1799_v42 = vrot.slane %v381_v21, %v1509_v5  ;;  %v652_v28 = vsub.f32 %v160_v20, %v1720_v56 }
  0x3c   : > { %v1125_v41 = vadd.f32 %v1124_v57, %v886_v38  ;;  %v889_v38 = vand.u32 2147483647, %v649_v22  ;;  %v243_v57 = vld [vmem:[%s2907_s1 + $0x350] sm:$0xff]  ;;  %v1211_v3 = vadd.f32 %v1210_v44, %v970_v24  ;;  %v890_v22 = vand.u32 2147483647, %v650_v26  ;;  %v245_v44 = vld [vmem:[%s2907_s1 + $0x360] sm:$0xff] }
  0x3d   : > { %3052 = vst [vmem:[#allocation38_spill] sm:$0xff] %v1799_v42  ;;  %v735_v36 = vsub.f32 %v243_v57, %v1621_v58  ;;  %v973_v61 = vand.u32 2147483647, %v733_v30  ;;  %v1813_v24 = vrot.slane %v381_v21, %v1515_v7  ;;  %v653_v20 = vsub.f32 %v161_v45, %v1728_v1  ;;  %v164_v30 = vld [vmem:[%s2907_s1 + $0xd8] sm:$0xff] }
  0x3e   : > { %v1126_v59 = vadd.f32 %v1125_v41, %v887_v55  ;;  %v1809_v41 = vrot.slane %v381_v21, %v1512_v6  ;;  %v1212_v5 = vadd.f32 %v1211_v3, %v971_v31  ;;  %v891_v26 = vand.u32 2147483647, %v651_v37  ;;  %v163_v6 = vld [vmem:[%s2907_s1 + $0xd0] sm:$0xff] }
  0x3f   : > { %3054 = vst [vmem:[#allocation40_spill] sm:$0xff] %v1813_v24  ;;  %v1826_v31 = vrot.slane %v381_v21, %v1518_v8  ;;  %v736_v7 = vsub.f32 %v244_v34, %v1628_v63  ;;  %v1835_v57 = vrot.slane %v381_v21, %v1521_v9  ;;  %v654_v45 = vsub.f32 %v162_v4, %v1738_v27  ;;  %v246_v8 = vld [vmem:[%s2907_s1 + $0x368] sm:$0xff]  ;;  %v1858_v4 = vld [vmem:[%s2907_s1 + $0xf8] sm:$0xff] }
  0x40   : > { %v1127_v55 = vadd.f32 %v1126_v59, %v888_v46  ;;  %3053 = vst [vmem:[#allocation39_spill] sm:$0xff] %v1809_v41  ;;  %v974_v59 = vand.u32 2147483647, %v734_v0  ;;  %v1213_v37 = vadd.f32 %v1212_v5, %v972_v52  ;;  %v892_v3 = vand.u32 2147483647, %v652_v28  ;;  %v1844_v0 = vld [vmem:[%s2907_s1 + $0xe8] sm:$0xff] }
  0x41   : > { %3055 = vst [vmem:[#allocation41_spill] sm:$0xff] %v1826_v31  ;;  %3056 = vst [vmem:[#allocation42_spill] sm:$0xff] %v1835_v57  ;;  %v1849_v52 = vld [vmem:[%s2907_s1 + $0xf0] sm:$0xff]  ;;  %v1852_v9 = vrot.slane %v381_v21, %v1524_v10  ;;  %v737_v28 = vsub.f32 %v245_v44, %v1635_v25  ;;  %v655_v5 = vsub.f32 %v163_v6, %v1742_v40  ;;  %v893_v63 = vand.u32 2147483647, %v653_v20  ;;  %v1868_v21 = vld [vmem:[%s2907_s1 + $0x100] sm:$0xff] }
  0x42   : > { %v1128_v46 = vadd.f32 %v1127_v55, %v889_v38  ;;  %v1832_v38 = vld [vmem:[%s2907_s1 + $0xe0] sm:$0xff]  ;;  %v1214_v34 = vadd.f32 %v1213_v37, %v973_v61  ;;  %v247_v10 = vld [vmem:[%s2907_s1 + $0x370] sm:$0xff]  ;;  %v738_v20 = vsub.f32 %v246_v8, %v1642_v32  ;;  %v659_v37 = vsub.f32 %v1849_v52, %v1771_v19 }
  0x43   : > { %3057 = vst [vmem:[#allocation43_spill] sm:$0xff] %v1852_v9  ;;  %v657_v61 = vsub.f32 %v1832_v38, %v1756_v33  ;;  %v1881_v6 = vld [vmem:[%s2907_s1 + $0x110] sm:$0xff]  ;;  %v248_v38 = vld [vmem:[%s2907_s1 + $0x378] sm:$0xff]  ;;  %v660_v8 = vsub.f32 %v1858_v4, %v1781_v49  ;;  %v661_v52 = vsub.f32 %v1868_v21, %v1785_v23  ;;  %v895_v32 = vand.u32 2147483647, %v655_v5  ;;  %v249_v4 = vld [vmem:[%s2907_s1 + $0x380] sm:$0xff] }
  0x44   : > { %v1129_v55 = vadd.f32 %v1128_v46, %v890_v22  ;;  %v975_v22 = vand.u32 2147483647, %v735_v36  ;;  %v656_v46 = vsub.f32 %v164_v30, %v1752_v60  ;;  %v1873_v36 = vld [vmem:[%s2907_s1 + $0x108] sm:$0xff]  ;;  %v1215_v44 = vadd.f32 %v1214_v34, %v974_v59  ;;  %v1898_v59 = vld [vmem:[%s2907_s1 + $0x120] sm:$0xff] }
  0x45   : > { %v658_v30 = vsub.f32 %v1844_v0, %v1767_v2  ;;  %v1906_v0 = vld [vmem:[%s2907_s1 + $0x128] sm:$0xff]  ;;  %v662_v34 = vsub.f32 %v1873_v36, %v1795_v43  ;;  %v740_v5 = vsub.f32 %v248_v38, %v1657_v47  ;;  %v1931_v21 = vld [vmem:[%s2907_s1 + $0x140] sm:$0xff]  ;;  %v897_v47 = vand.u32 2147483647, %v657_v61 }
  0x46   : > { %v1130_v58 = vadd.f32 %v1129_v55, %v891_v26  ;;  %v976_v26 = vand.u32 2147483647, %v736_v7  ;;  %v894_v55 = vand.u32 2147483647, %v654_v45  ;;  %v1893_v7 = vld [vmem:[%s2907_s1 + $0x118] sm:$0xff]  ;;  %v739_v45 = vsub.f32 %v247_v10, %v1649_v39 }
  0x47   : > { %v663_v10 = vsub.f32 %v1881_v6, %v1799_v42  ;;  %v664_v36 = vsub.f32 %v1893_v7, %v1809_v41  ;;  %v896_v39 = vand.u32 2147483647, %v656_v46  ;;  %v250_v6 = vld [vmem:[%s2907_s1 + $0x388] sm:$0xff]  ;;  %v666_v38 = vsub.f32 %v1906_v0, %v1826_v31  ;;  %v251_v0 = vld [vmem:[%s2907_s1 + $0x390] sm:$0xff] }
  0x48   : > { %v1131_v25 = vadd.f32 %v1130_v58, %v892_v3  ;;  %v977_v58 = vand.u32 2147483647, %v737_v28  ;;  %v1216_v3 = vadd.f32 %v1215_v44, %v975_v22  ;;  %v1918_v28 = vld [vmem:[%s2907_s1 + $0x130] sm:$0xff]  ;;  %v1923_v22 = vld [vmem:[%s2907_s1 + $0x138] sm:$0xff]  ;;  %v665_v44 = vsub.f32 %v1898_v59, %v1813_v24 }
  0x49   : > { %v741_v7 = vsub.f32 %v249_v4, %v1664_v54  ;;  %v979_v46 = vand.u32 2147483647, %v739_v45  ;;  %v667_v59 = vsub.f32 %v1918_v28, %v1835_v57  ;;  %v181_v45 = vld [vmem:[%s2907_s1 + $0x160] sm:$0xff]  ;;  %v669_v4 = vsub.f32 %v1931_v21, %v1527_v11  ;;  %v252_v57 = vld [vmem:[%s2907_s1 + $0x398] sm:$0xff] }
  0x4a   : > { %v1132_v53 = vadd.f32 %v1131_v25, %v893_v63  ;;  %v978_v63 = vand.u32 2147483647, %v738_v20  ;;  %v1217_v25 = vadd.f32 %v1216_v3, %v976_v26  ;;  %v178_v20 = vld [vmem:[%s2907_s1 + $0x148] sm:$0xff]  ;;  %v1946_v26 = vld [vmem:[%s2907_s1 + $0x150] sm:$0xff]  ;;  %v668_v3 = vsub.f32 %v1923_v22, %v1852_v9 }
  0x4b   : > { %v742_v28 = vsub.f32 %v250_v6, %v1680_v62  ;;  %v980_v22 = vand.u32 2147483647, %v740_v5  ;;  %v898_v54 = vand.u32 2147483647, %v658_v30  ;;  %v184_v5 = vld [vmem:[%s2907_s1 + $0x178] sm:$0xff]  ;;  %v743_v21 = vsub.f32 %v251_v0, %v1690_v29 }
  0x4c   : > { %v1133_v48 = vadd.f32 %v1132_v53, %v894_v55  ;;  %v1218_v53 = vadd.f32 %v1217_v25, %v977_v58  ;;  %v1954_v55 = vld [vmem:[%s2907_s1 + $0x158] sm:$0xff]  ;;  %v182_v58 = vld [vmem:[%s2907_s1 + $0x168] sm:$0xff]  ;;  %v671_v25 = vsub.f32 %v1946_v26, %v1533_v13  ;;  %v981_v6 = vand.u32 2147483647, %v741_v7  ;;  %v253_v26 = vld [vmem:[%s2907_s1 + $0x3a0] sm:$0xff] }
  0x4d   : > { %v674_v30 = vsub.f32 %v182_v58, %v1542_v16  ;;  %v744_v13 = vsub.f32 %v252_v57, %v1696_v35  ;;  %v676_v0 = vsub.f32 %v184_v5, %v1548_v18  ;;  %v900_v7 = vand.u32 2147483647, %v660_v8  ;;  %v192_v29 = vld [vmem:[%s2907_s1 + $0x1b8] sm:$0xff] }
  0x4e   : > { %v1134_v24 = vadd.f32 %v1133_v48, %v895_v32  ;;  %v1219_v61 = vadd.f32 %v1218_v53, %v978_v63  ;;  %v183_v48 = vld [vmem:[%s2907_s1 + $0x170] sm:$0xff]  ;;  %v670_v32 = vsub.f32 %v178_v20, %v1530_v12  ;;  %v672_v63 = vsub.f32 %v1954_v55, %v1536_v14 }
  0x4f   : > { %v673_v53 = vsub.f32 %v181_v45, %v1539_v15  ;;  %v675_v62 = vsub.f32 %v183_v48, %v1545_v17  ;;  %v982_v12 = vand.u32 2147483647, %v742_v28  ;;  %v3058_v45 = vld [vmem:[#allocation25_spill] sm:$0xff]  ;;  %v983_v48 = vand.u32 2147483647, %v743_v21 }
  0x50   : > { %v1135_v9 = vadd.f32 %v1134_v24, %v896_v39  ;;  %v1220_v20 = vadd.f32 %v1219_v61, %v979_v46  ;;  %v899_v39 = vand.u32 2147483647, %v659_v37  ;;  %v901_v46 = vand.u32 2147483647, %v661_v52  ;;  %v254_v37 = vld [vmem:[%s2907_s1 + $0x3a8] sm:$0xff] }
  0x51   : > { %v745_v58 = vsub.f32 %v253_v26, %v3058_v45  ;;  %v903_v28 = vand.u32 2147483647, %v663_v10  ;;  %v2004_v52 = vand.u32 2147483647, %v666_v38  ;;  %v746_v5 = vsub.f32 %v254_v37, %v1710_v50  ;;  %v259_v37 = vld [vmem:[%s2907_s1 + $0x3d0] sm:$0xff] }
  0x52   : > { %v1136_v24 = vadd.f32 %v1135_v9, %v897_v47  ;;  %v1221_v55 = vadd.f32 %v1220_v20, %v980_v22  ;;  %v902_v47 = vand.u32 2147483647, %v662_v34  ;;  %v255_v9 = vld [vmem:[%s2907_s1 + $0x3b0] sm:$0xff]  ;;  %v904_v22 = vand.u32 2147483647, %v664_v36  ;;  %v257_v34 = vld [vmem:[%s2907_s1 + $0x3c0] sm:$0xff] }
  0x53   : > { %v2002_v20 = vand.u32 2147483647, %v665_v44  ;;  %v2015_v10 = vand.u32 2147483647, %v668_v3  ;;  %v2017_v36 = vand.u32 2147483647, %v669_v4  ;;  %v747_v26 = vsub.f32 %v255_v9, %v1713_v51 }
  0x54   : > { %v1137_v61 = vadd.f32 %v1136_v24, %v898_v54  ;;  %v1222_v57 = vadd.f32 %v1221_v55, %v981_v6  ;;  %v256_v54 = vld [vmem:[%s2907_s1 + $0x3b8] sm:$0xff]  ;;  %v984_v24 = vand.u32 2147483647, %v744_v13  ;;  %v2013_v6 = vand.u32 2147483647, %v667_v59  ;;  %v186_v13 = vld [vmem:[%s2907_s1 + $0x188] sm:$0xff] }
  0x55   : > { %v2019_v38 = vand.u32 2147483647, %v670_v32  ;;  %v985_v55 = vand.u32 2147483647, %v745_v58  ;;  %v2031_v59 = vand.u32 2147483647, %v671_v25  ;;  %v748_v58 = vsub.f32 %v256_v54, %v1720_v56 }
  0x56   : > { %v1138_v8 = vadd.f32 %v1137_v61, %v899_v39  ;;  %v1223_v21 = vadd.f32 %v1222_v57, %v982_v12  ;;  %v258_v39 = vld [vmem:[%s2907_s1 + $0x3c8] sm:$0xff]  ;;  %v185_v12 = vld [vmem:[%s2907_s1 + $0x180] sm:$0xff]  ;;  %v2033_v3 = vand.u32 2147483647, %v672_v63  ;;  %v2035_v4 = vand.u32 2147483647, %v673_v53 }
  0x57   : > { %v2045_v9 = vld [vmem:[%s2907_s1 + $0x3d8] sm:$0xff]  ;;  %v986_v25 = vand.u32 2147483647, %v746_v5  ;;  %v2048_v63 = vand.u32 2147483647, %v675_v62  ;;  %v749_v57 = vsub.f32 %v257_v34, %v1728_v1  ;;  %v2064_v54 = vld [vmem:[%s2907_s1 + $0x3e8] sm:$0xff] }
  0x58   : > { %v1139_v44 = vadd.f32 %v1138_v8, %v900_v7  ;;  %v1224_v61 = vadd.f32 %v1223_v21, %v983_v48  ;;  %v2037_v7 = vand.u32 2147483647, %v674_v30  ;;  %v2050_v53 = vand.u32 2147483647, %v676_v0  ;;  %v2055_v30 = vld [vmem:[%s2907_s1 + $0x3e0] sm:$0xff]  ;;  %v187_v8 = vld [vmem:[%s2907_s1 + $0x190] sm:$0xff] }
  0x59   : > { %v2069_v62 = vld [vmem:[%s2907_s1 + $0x3f0] sm:$0xff]  ;;  %v987_v0 = vand.u32 2147483647, %v747_v26  ;;  %v3059_v5 = vld [vmem:[#allocation5_spill] sm:$0xff]  ;;  %v3060_v21 = vld [vmem:[#allocation6_spill] sm:$0xff]  ;;  %v752_v1 = vsub.f32 %v2045_v9, %v1752_v60 }
  0x5a   : > { %v1140_v32 = vadd.f32 %v1139_v44, %v901_v46  ;;  %v1225_v48 = vadd.f32 %v1224_v61, %v984_v24  ;;  %v677_v24 = vsub.f32 %v185_v12, %v3059_v5  ;;  %v678_v34 = vsub.f32 %v186_v13, %v3060_v21  ;;  %v188_v56 = vld [vmem:[%s2907_s1 + $0x198] sm:$0xff]  ;;  %v191_v50 = vld [vmem:[%s2907_s1 + $0x1b0] sm:$0xff] }
  0x5b   : > { %v750_v61 = vsub.f32 %v258_v39, %v1738_v27  ;;  %v2083_v26 = vld [vmem:[%s2907_s1 + $0x3f8] sm:$0xff]  ;;  %v2093_v39 = vld [vmem:[%s2907_s1 + $0x408] sm:$0xff]  ;;  %v988_v12 = vand.u32 2147483647, %v748_v58  ;;  %v189_v27 = vld [vmem:[%s2907_s1 + $0x1a0] sm:$0xff] }
  0x5c   : > { %v1141_v46 = vadd.f32 %v1140_v32, %v902_v47  ;;  %v1226_v47 = vadd.f32 %v1225_v48, %v985_v55  ;;  %v751_v32 = vsub.f32 %v259_v37, %v1742_v40  ;;  %v753_v55 = vsub.f32 %v2055_v30, %v1756_v33  ;;  %v3061_v37 = vld [vmem:[#allocation7_spill] sm:$0xff]  ;;  %v2108_v30 = vld [vmem:[%s2907_s1 + $0x410] sm:$0xff] }
  0x5d   : > { %v679_v9 = vsub.f32 %v187_v8, %v3061_v37  ;;  %v989_v40 = vand.u32 2147483647, %v749_v57  ;;  %v190_v33 = vld [vmem:[%s2907_s1 + $0x1a8] sm:$0xff]  ;;  %v992_v35 = vand.u32 2147483647, %v752_v1  ;;  %v3078_v45 = vsub.f32 %v2083_v26, %v1781_v49 }
  0x5e   : > { %v1142_v44 = vadd.f32 %v1141_v46, %v903_v28  ;;  %v2088_v28 = vld [vmem:[%s2907_s1 + $0x400] sm:$0xff]  ;;  %v1227_v13 = vadd.f32 %v1226_v47, %v986_v25  ;;  %v754_v46 = vsub.f32 %v2064_v54, %v1767_v2  ;;  %v3062_v25 = vld [vmem:[#allocation8_spill] sm:$0xff]  ;;  %v917_v54 = vand.u32 2147483647, %v677_v24 }
  0x5f   : > { %v680_v8 = vsub.f32 %v188_v56, %v3062_v25  ;;  %v918_v47 = vand.u32 2147483647, %v678_v34  ;;  %v2129_v56 = vld [vmem:[%s2907_s1 + $0x420] sm:$0xff]  ;;  %v3064_v34 = vld [vmem:[#allocation9_spill] sm:$0xff]  ;;  %v991_v51 = vand.u32 2147483647, %v751_v32 }
  0x60   : > { %v1143_v48 = vadd.f32 %v1142_v44, %v904_v22  ;;  %v2113_v22 = vld [vmem:[%s2907_s1 + $0x418] sm:$0xff]  ;;  %v1228_v58 = vadd.f32 %v1227_v13, %v987_v0  ;;  %v990_v0 = vand.u32 2147483647, %v750_v61  ;;  %v681_v13 = vsub.f32 %v189_v27, %v3064_v34  ;;  %v2148_v61 = vld [vmem:[%s2907_s1 + $0x430] sm:$0xff] }
  0x61   : > { %v2153_v27 = vld [vmem:[%s2907_s1 + $0x438] sm:$0xff]  ;;  %v3067_v44 = vld [vmem:[#allocation40_spill] sm:$0xff]  ;;  %v993_v31 = vand.u32 2147483647, %v753_v55  ;;  %v994_v60 = vand.u32 2147483647, %v754_v46 }
  0x62   : > { %v1144_v57 = vadd.f32 %v1143_v48, %v2002_v20  ;;  %v2134_v20 = vld [vmem:[%s2907_s1 + $0x428] sm:$0xff]  ;;  %v1229_v24 = vadd.f32 %v1228_v58, %v988_v12  ;;  %v919_v48 = vand.u32 2147483647, %v679_v9  ;;  %3065 = vst [vmem:[#allocation6_spill] sm:$0xff] %v2153_v27  ;;  %v3066_v12 = vld [vmem:[#allocation10_spill] sm:$0xff] }
  0x63   : > { %3063 = vst [vmem:[#allocation5_spill] sm:$0xff] %v2134_v20  ;;  %v682_v9 = vsub.f32 %v190_v33, %v3066_v12  ;;  %v920_v58 = vand.u32 2147483647, %v680_v8  ;;  %v2172_v33 = vld [vmem:[%s2907_s1 + $0x448] sm:$0xff]  ;;  %v193_v20 = vld [vmem:[%s2907_s1 + $0x1c0] sm:$0xff]  ;;  %v3076_v12 = vsub.f32 %v2069_v62, %v1771_v19 }
  0x64   : > { %v1145_v2 = vadd.f32 %v1144_v57, %v2004_v52  ;;  %v1230_v52 = vadd.f32 %v1229_v24, %v989_v40  ;;  %v1158_v57 = vadd.f32 %v918_v47, %v917_v54  ;;  %v2167_v40 = vld [vmem:[%s2907_s1 + $0x440] sm:$0xff]  ;;  %3068 = vst [vmem:[#allocation7_spill] sm:$0xff] %v2172_v33  ;;  %v921_v54 = vand.u32 2147483647, %v681_v13  ;;  %v3072_v13 = vld [vmem:[#allocation12_spill] sm:$0xff]  ;;  %v194_v27 = vld [vmem:[%s2907_s1 + $0x1c8] sm:$0xff] }
  0x65   : > { %v3070_v24 = vld [vmem:[#allocation42_spill] sm:$0xff]  ;;  %v995_v33 = vand.u32 2147483647, %v3076_v12  ;;  %v996_v19 = vand.u32 2147483647, %v3078_v45  ;;  %v3080_v45 = vsub.f32 %v2088_v28, %v1785_v23  ;;  %v282_v28 = vld [vmem:[%s2907_s1 + $0x488] sm:$0xff] }
  0x66   : > { %v1146_v32 = vadd.f32 %v1145_v2, %v2013_v6  ;;  %v1231_v2 = vadd.f32 %v1230_v52, %v990_v0  ;;  %v3069_v6 = vld [vmem:[#allocation11_spill] sm:$0xff]  ;;  %v1159_v47 = vadd.f32 %v1158_v57, %v919_v48  ;;  %v2186_v0 = vld [vmem:[%s2907_s1 + $0x450] sm:$0xff]  ;;  %v684_v48 = vsub.f32 %v192_v29, %v3072_v13  ;;  %v3085_v23 = vld [vmem:[#allocation17_spill] sm:$0xff] }
  0x67   : > { %v683_v8 = vsub.f32 %v191_v50, %v3069_v6  ;;  %v2191_v50 = vld [vmem:[%s2907_s1 + $0x458] sm:$0xff]  ;;  %v922_v52 = vand.u32 2147483647, %v682_v9  ;;  %v2210_v29 = vld [vmem:[%s2907_s1 + $0x468] sm:$0xff]  ;;  %v997_v26 = vand.u32 2147483647, %v3080_v45 }
  0x68   : > { %v1147_v1 = vadd.f32 %v1146_v32, %v2015_v10  ;;  %v1232_v10 = vadd.f32 %v1231_v2, %v991_v51  ;;  %v1160_v57 = vadd.f32 %v1159_v47, %v920_v58  ;;  %v2205_v51 = vld [vmem:[%s2907_s1 + $0x460] sm:$0xff]  ;;  %v3074_v9 = vld [vmem:[#allocation13_spill] sm:$0xff]  ;;  %v283_v45 = vld [vmem:[%s2907_s1 + $0x490] sm:$0xff] }
  0x69   : > { %v685_v58 = vsub.f32 %v193_v20, %v3074_v9  ;;  %v923_v2 = vand.u32 2147483647, %v683_v8  ;;  %v2227_v20 = vld [vmem:[%s2907_s1 + $0x470] sm:$0xff] }
  0x6a   : > { %v1148_v55 = vadd.f32 %v1147_v1, %v2017_v36  ;;  %v1233_v36 = vadd.f32 %v1232_v10, %v992_v35  ;;  %v1161_v47 = vadd.f32 %v1160_v57, %v921_v54  ;;  %v3075_v1 = vld [vmem:[#allocation4_spill] sm:$0xff]  ;;  %v3077_v54 = vld [vmem:[#allocation14_spill] sm:$0xff]  ;;  %v924_v57 = vand.u32 2147483647, %v684_v48 }
  0x6b   : > { %v195_v35 = vld [vmem:[%s2907_s1 + $0x1d0] sm:$0xff]  ;;  %v686_v10 = vsub.f32 %v194_v27, %v3077_v54  ;;  %v3079_v27 = vld [vmem:[#allocation15_spill] sm:$0xff] }
  0x6c   : > { %v1149_v46 = vadd.f32 %v1148_v55, %v2019_v38  ;;  %v2232_v38 = vld [vmem:[%s2907_s1 + $0x478] sm:$0xff]  ;;  %v1234_v8 = vadd.f32 %v1233_v36, %v993_v31  ;;  %v1162_v62 = vadd.f32 %v1161_v47, %v922_v52  ;;  %v687_v48 = vsub.f32 %v195_v35, %v3079_v27  ;;  %v199_v55 = vld [vmem:[%s2907_s1 + $0x1f0] sm:$0xff] }
  0x6d   : > { %v196_v31 = vld [vmem:[%s2907_s1 + $0x1d8] sm:$0xff]  ;;  %v925_v52 = vand.u32 2147483647, %v685_v58  ;;  %v198_v58 = vld [vmem:[%s2907_s1 + $0x1e8] sm:$0xff] }
  0x6e   : > { %v1150_v12 = vadd.f32 %v1149_v46, %v2031_v59  ;;  %v1235_v36 = vadd.f32 %v1234_v8, %v994_v60  ;;  %v1163_v47 = vadd.f32 %v1162_v62, %v923_v2  ;;  %v197_v60 = vld [vmem:[%s2907_s1 + $0x1e0] sm:$0xff]  ;;  %v926_v8 = vand.u32 2147483647, %v686_v10 }
  0x6f   : > { %v3083_v10 = vsub.f32 %v2108_v30, %v1799_v42  ;;  %v689_v49 = vsub.f32 %v197_v60, %v3085_v23 }
  0x70   : > { %v1151_v59 = vadd.f32 %v1150_v12, %v2033_v3  ;;  %v1236_v2 = vadd.f32 %v1235_v36, %v995_v33  ;;  %v3081_v3 = vld [vmem:[#allocation16_spill] sm:$0xff]  ;;  %v1164_v62 = vadd.f32 %v1163_v47, %v924_v57  ;;  %v281_v12 = vld [vmem:[%s2907_s1 + $0x480] sm:$0xff]  ;;  %v3082_v33 = vsub.f32 %v2093_v39, %v1795_v43  ;;  %v284_v39 = vld [vmem:[%s2907_s1 + $0x498] sm:$0xff] }
  0x71   : > { %v688_v35 = vsub.f32 %v196_v31, %v3081_v3  ;;  %v999_v57 = vand.u32 2147483647, %v3083_v10  ;;  %v3084_v36 = vsub.f32 %v2113_v22, %v1809_v41  ;;  %v200_v22 = vld [vmem:[%s2907_s1 + $0x1f8] sm:$0xff]  ;;  %v774_v10 = vsub.f32 %v282_v28, %v3060_v21 }
  0x72   : > { %v1152_v32 = vadd.f32 %v1151_v59, %v2035_v4  ;;  %v998_v31 = vand.u32 2147483647, %v3082_v33  ;;  %v1237_v46 = vadd.f32 %v1236_v2, %v996_v19  ;;  %v927_v4 = vand.u32 2147483647, %v687_v48  ;;  %v3086_v33 = vld [vmem:[#allocation18_spill] sm:$0xff] }
  0x73   : > { %v1000_v47 = vand.u32 2147483647, %v3084_v36  ;;  %v1165_v59 = vadd.f32 %v1164_v62, %v925_v52  ;;  %v690_v19 = vsub.f32 %v198_v58, %v3086_v33  ;;  %v773_v2 = vsub.f32 %v281_v12, %v3059_v5  ;;  %v285_v52 = vld [vmem:[%s2907_s1 + $0x4a0] sm:$0xff]  ;;  %v3088_v58 = vld [vmem:[#allocation19_spill] sm:$0xff] }
  0x74   : > { %v1153_v30 = vadd.f32 %v1152_v32, %v2037_v7  ;;  %v1238_v36 = vadd.f32 %v1237_v46, %v997_v26  ;;  %v928_v60 = vand.u32 2147483647, %v688_v35  ;;  %v775_v62 = vsub.f32 %v283_v45, %v3061_v37  ;;  %v3089_v46 = vld [vmem:[#allocation20_spill] sm:$0xff] }
  0x75   : > { %v1166_v48 = vadd.f32 %v1165_v59, %v926_v8  ;;  %v3087_v32 = vsub.f32 %v2129_v56, %v3067_v44  ;;  %v691_v42 = vsub.f32 %v199_v55, %v3088_v58  ;;  %v776_v12 = vsub.f32 %v284_v39, %v3062_v25  ;;  %v286_v59 = vld [vmem:[%s2907_s1 + $0x4a8] sm:$0xff]  ;;  %v204_v25 = vld [vmem:[%s2907_s1 + $0x218] sm:$0xff] }
  0x76   : > { %v1154_v7 = vadd.f32 %v1153_v30, %v2048_v63  ;;  %v1239_v28 = vadd.f32 %v1238_v36, %v998_v31  ;;  %v692_v26 = vsub.f32 %v200_v22, %v3089_v46  ;;  %v929_v35 = vand.u32 2147483647, %v689_v49  ;;  %v201_v63 = vld [vmem:[%s2907_s1 + $0x200] sm:$0xff]  ;;  %v287_v49 = vld [vmem:[%s2907_s1 + $0x4b0] sm:$0xff]  ;;  %v3090_v22 = vld [vmem:[#allocation5_spill] sm:$0xff] }
  0x77   : > { %v1001_v41 = vand.u32 2147483647, %v3087_v32  ;;  %v1167_v8 = vadd.f32 %v1166_v48, %v927_v4  ;;  %v777_v56 = vsub.f32 %v285_v52, %v3064_v34  ;;  %v1013_v55 = vand.u32 2147483647, %v773_v2  ;;  %v3091_v48 = vld [vmem:[#allocation41_spill] sm:$0xff]  ;;  %v202_v32 = vld [vmem:[%s2907_s1 + $0x208] sm:$0xff] }
  0x78   : > { %v1155_v45 = vadd.f32 %v1154_v7, %v2050_v53  ;;  %v1014_v30 = vand.u32 2147483647, %v774_v10  ;;  %v1240_v39 = vadd.f32 %v1239_v28, %v999_v57  ;;  %v930_v31 = vand.u32 2147483647, %v690_v19  ;;  %v3093_v52 = vld [vmem:[#allocation10_spill] sm:$0xff] }
  0x79   : > { %v1168_v36 = vadd.f32 %v1167_v8, %v928_v60  ;;  %v1015_v4 = vand.u32 2147483647, %v775_v62  ;;  %v3092_v53 = vsub.f32 %v3090_v22, %v3091_v48  ;;  %v778_v2 = vsub.f32 %v286_v59, %v3093_v52  ;;  %v3094_v60 = vld [vmem:[#allocation21_spill] sm:$0xff] }
  0x7a   : > { %1156 = vadd.xlane.f32.xlu0 %v1155_v45  ;;  %v1016_v10 = vand.u32 2147483647, %v776_v12  ;;  %v1256_v57 = vadd.f32 %v1014_v30, %v1013_v55  ;;  %v1241_v19 = vadd.f32 %v1240_v39, %v1000_v47  ;;  %v693_v28 = vsub.f32 %v201_v63, %v3094_v60  ;;  %v288_v62 = vld [vmem:[%s2907_s1 + $0x4b8] sm:$0xff]  ;;  %v3096_v63 = vld [vmem:[#allocation22_spill] sm:$0xff] }
  0x7b   : > { %v1002_v7 = vand.u32 2147483647, %v3092_v53  ;;  %v931_v8 = vand.u32 2147483647, %v691_v42  ;;  %v1169_v34 = vadd.f32 %v1168_v36, %v929_v35  ;;  %v3095_v45 = vsub.f32 %v2148_v61, %v3070_v24  ;;  %v203_v53 = vld [vmem:[%s2907_s1 + $0x210] sm:$0xff]  ;;  %v289_v39 = vld [vmem:[%s2907_s1 + $0x4c0] sm:$0xff] }
  0x7c   : > { %v779_v12 = vsub.f32 %v287_v49, %v3069_v6  ;;  %v1017_v59 = vand.u32 2147483647, %v777_v56  ;;  %v1257_v47 = vadd.f32 %v1256_v57, %v1015_v4  ;;  %v1242_v55 = vadd.f32 %v1241_v19, %v1001_v41  ;;  %v3097_v36 = vld [vmem:[#allocation6_spill] sm:$0xff]  ;;  %v3098_v61 = vld [vmem:[#allocation43_spill] sm:$0xff] }
  0x7d   : > { %v1003_v22 = vand.u32 2147483647, %v3095_v45  ;;  %v694_v42 = vsub.f32 %v202_v32, %v3096_v63  ;;  %v932_v35 = vand.u32 2147483647, %v692_v26  ;;  %v1170_v30 = vadd.f32 %v1169_v34, %v930_v31  ;;  %v3100_v32 = vld [vmem:[#allocation23_spill] sm:$0xff] }
  0x7e   : > { %v3099_v45 = vsub.f32 %v3097_v36, %v3098_v61  ;;  %v780_v56 = vsub.f32 %v288_v62, %v3072_v13  ;;  %v1018_v49 = vand.u32 2147483647, %v778_v2  ;;  %v1258_v41 = vadd.f32 %v1257_v47, %v1016_v10  ;;  %v290_v57 = vld [vmem:[%s2907_s1 + $0x4c8] sm:$0xff] }
  0x7f   : > { %v1243_v4 = vadd.f32 %v1242_v55, %v1002_v7  ;;  %v695_v26 = vsub.f32 %v203_v53, %v3100_v32  ;;  %v933_v34 = vand.u32 2147483647, %v693_v28  ;;  %v1171_v31 = vadd.f32 %v1170_v30, %v931_v8  ;;  %v3102_v53 = vld [vmem:[#allocation24_spill] sm:$0xff]  ;;  %v3103_v30 = vld [vmem:[#allocation7_spill] sm:$0xff] }
  0x80   : > { %v1004_v52 = vand.u32 2147483647, %v3099_v45  ;;  %v3101_v19 = vsub.f32 %v2167_v40, %v1527_v11  ;;  %v205_v45 = vld [vmem:[%s2907_s1 + $0x220] sm:$0xff]  ;;  %v781_v2 = vsub.f32 %v289_v39, %v3074_v9  ;;  %v1019_v10 = vand.u32 2147483647, %v779_v12  ;;  %v291_v55 = vld [vmem:[%s2907_s1 + $0x4d0] sm:$0xff] }
  0x81   : > { %v1259_v7 = vadd.f32 %v1258_v41, %v1017_v59  ;;  %v1244_v62 = vadd.f32 %v1243_v4, %v1003_v22  ;;  %v696_v28 = vsub.f32 %v204_v25, %v3102_v53  ;;  %v934_v8 = vand.u32 2147483647, %v694_v42  ;;  %v3104_v40 = vld [vmem:[#allocation3_spill] sm:$0xff]  ;;  %v3106_v25 = vld [vmem:[#allocation25_spill] sm:$0xff] }
  0x82   : > { %v1005_v36 = vand.u32 2147483647, %v3101_v19  ;;  %v1172_v47 = vadd.f32 %v1171_v31, %v932_v35  ;;  %v3105_v19 = vsub.f32 %v3103_v30, %v3104_v40  ;;  %v206_v6 = vld [vmem:[%s2907_s1 + $0x228] sm:$0xff]  ;;  %v782_v12 = vsub.f32 %v290_v57, %v3077_v54  ;;  %v292_v4 = vld [vmem:[%s2907_s1 + $0x4d8] sm:$0xff] }
  0x83   : > { %v1020_v59 = vand.u32 2147483647, %v780_v56  ;;  %v1260_v22 = vadd.f32 %v1259_v7, %v1018_v49  ;;  %v1245_v39 = vadd.f32 %v1244_v62, %v1004_v52  ;;  %v697_v42 = vsub.f32 %v205_v45, %v3106_v25  ;;  %v3108_v45 = vld [vmem:[#allocation26_spill] sm:$0xff] }
  0x84   : > { %v1006_v13 = vand.u32 2147483647, %v3105_v19  ;;  %v935_v35 = vand.u32 2147483647, %v695_v26  ;;  %v1173_v41 = vadd.f32 %v1172_v47, %v933_v34  ;;  %v3107_v31 = vsub.f32 %v2186_v0, %v3075_v1  ;;  %v207_v19 = vld [vmem:[%s2907_s1 + $0x230] sm:$0xff]  ;;  %v293_v62 = vld [vmem:[%s2907_s1 + $0x4e0] sm:$0xff] }
  0x85   : > { %v783_v56 = vsub.f32 %v291_v55, %v3079_v27  ;;  %v1021_v49 = vand.u32 2147483647, %v781_v2  ;;  %v1261_v52 = vadd.f32 %v1260_v22, %v1019_v10  ;;  %v1246_v57 = vadd.f32 %v1245_v39, %v1005_v36  ;;  %v294_v39 = vld [vmem:[%s2907_s1 + $0x4e8] sm:$0xff] }
  0x86   : > { %v1007_v30 = vand.u32 2147483647, %v3107_v31  ;;  %v698_v26 = vsub.f32 %v206_v6, %v3108_v45  ;;  %v936_v34 = vand.u32 2147483647, %v696_v28  ;;  %v1174_v7 = vadd.f32 %v1173_v41, %v934_v8  ;;  %v208_v31 = vld [vmem:[%s2907_s1 + $0x238] sm:$0xff]  ;;  %v3110_v6 = vld [vmem:[#allocation27_spill] sm:$0xff] }
  0x87   : > { %v3109_v0 = vsub.f32 %v2191_v50, %v1536_v14  ;;  %v784_v2 = vsub.f32 %v292_v4, %v3081_v3  ;;  %v1022_v10 = vand.u32 2147483647, %v782_v12  ;;  %v1262_v36 = vadd.f32 %v1261_v52, %v1020_v59 }
  0x88   : > { %v1247_v55 = vadd.f32 %v1246_v57, %v1006_v13  ;;  %v699_v28 = vsub.f32 %v207_v19, %v3110_v6  ;;  %v937_v8 = vand.u32 2147483647, %v697_v42  ;;  %v1175_v22 = vadd.f32 %v1174_v7, %v935_v35  ;;  %v3112_v19 = vld [vmem:[#allocation28_spill] sm:$0xff] }
  0x89   : > { %v1008_v47 = vand.u32 2147483647, %v3109_v0  ;;  %v3111_v50 = vsub.f32 %v2205_v51, %v1539_v15  ;;  %v209_v0 = vld [vmem:[%s2907_s1 + $0x240] sm:$0xff]  ;;  %v785_v12 = vsub.f32 %v293_v62, %v3085_v23  ;;  %v1023_v59 = vand.u32 2147483647, %v783_v56  ;;  %v295_v57 = vld [vmem:[%s2907_s1 + $0x4f0] sm:$0xff] }
  0x8a   : > { %v1263_v13 = vadd.f32 %v1262_v36, %v1021_v49  ;;  %v1248_v4 = vadd.f32 %v1247_v55, %v1007_v30  ;;  %v700_v42 = vsub.f32 %v208_v31, %v3112_v19  ;;  %v938_v35 = vand.u32 2147483647, %v698_v26  ;;  %v3114_v31 = vld [vmem:[#allocation29_spill] sm:$0xff] }
  0x8b   : > { %v1009_v41 = vand.u32 2147483647, %v3111_v50  ;;  %v1176_v52 = vadd.f32 %v1175_v22, %v936_v34  ;;  %v3113_v51 = vsub.f32 %v2210_v29, %v1542_v16  ;;  %v210_v50 = vld [vmem:[%s2907_s1 + $0x248] sm:$0xff]  ;;  %v786_v56 = vsub.f32 %v294_v39, %v3086_v33  ;;  %v296_v55 = vld [vmem:[%s2907_s1 + $0x4f8] sm:$0xff] }
  0x8c   : > { %v1024_v49 = vand.u32 2147483647, %v784_v2  ;;  %v1264_v30 = vadd.f32 %v1263_v13, %v1022_v10  ;;  %v1249_v62 = vadd.f32 %v1248_v4, %v1008_v47  ;;  %v701_v26 = vsub.f32 %v209_v0, %v3114_v31  ;;  %v3116_v0 = vld [vmem:[#allocation30_spill] sm:$0xff] }
  0x8d   : > { %v1010_v7 = vand.u32 2147483647, %v3113_v51  ;;  %v939_v34 = vand.u32 2147483647, %v699_v28  ;;  %v1177_v36 = vadd.f32 %v1176_v52, %v937_v8  ;;  %v3115_v29 = vsub.f32 %v2227_v20, %v1545_v17  ;;  %v211_v51 = vld [vmem:[%s2907_s1 + $0x250] sm:$0xff]  ;;  %v297_v4 = vld [vmem:[%s2907_s1 + $0x500] sm:$0xff] }
  0x8e   : > { %v787_v2 = vsub.f32 %v295_v57, %v3088_v58  ;;  %v1025_v10 = vand.u32 2147483647, %v785_v12  ;;  %v1265_v47 = vadd.f32 %v1264_v30, %v1023_v59  ;;  %v1250_v39 = vadd.f32 %v1249_v62, %v1009_v41  ;;  %v298_v62 = vld [vmem:[%s2907_s1 + $0x508] sm:$0xff] }
  0x8f   : > { %v1011_v22 = vand.u32 2147483647, %v3115_v29  ;;  %v702_v28 = vsub.f32 %v210_v50, %v3116_v0  ;;  %v940_v8 = vand.u32 2147483647, %v700_v42  ;;  %v1178_v13 = vadd.f32 %v1177_v36, %v938_v35  ;;  %v212_v29 = vld [vmem:[%s2907_s1 + $0x258] sm:$0xff]  ;;  %v3118_v50 = vld [vmem:[#allocation31_spill] sm:$0xff] }
  0x90   : > { %v3117_v20 = vsub.f32 %v2232_v38, %v1548_v18  ;;  %v788_v12 = vsub.f32 %v296_v55, %v3089_v46  ;;  %v1026_v59 = vand.u32 2147483647, %v786_v56  ;;  %v1266_v41 = vadd.f32 %v1265_v47, %v1024_v49  ;;  %v213_v38 = vld [vmem:[%s2907_s1 + $0x260] sm:$0xff]  ;;  %v3119_v56 = vld [vmem:[#allocation32_spill] sm:$0xff] }
  0x91   : > { %v1251_v57 = vadd.f32 %v1250_v39, %v1010_v7  ;;  %v703_v42 = vsub.f32 %v211_v51, %v3118_v50  ;;  %v941_v35 = vand.u32 2147483647, %v701_v26  ;;  %v1179_v30 = vadd.f32 %v1178_v13, %v939_v34  ;;  %v299_v26 = vld [vmem:[%s2907_s1 + $0x510] sm:$0xff]  ;;  %v214_v34 = vld [vmem:[%s2907_s1 + $0x268] sm:$0xff] }
  0x92   : > { %v1012_v52 = vand.u32 2147483647, %v3117_v20  ;;  %v789_v36 = vsub.f32 %v297_v4, %v3094_v60  ;;  %v1027_v20 = vand.u32 2147483647, %v787_v2  ;;  %v1267_v58 = vadd.f32 %v1266_v41, %v1025_v10  ;;  %v3120_v2 = vld [vmem:[#allocation33_spill] sm:$0xff] }
  0x93   : > { %v1252_v55 = vadd.f32 %v1251_v57, %v1011_v22  ;;  %v704_v49 = vsub.f32 %v212_v29, %v3119_v56  ;;  %v942_v7 = vand.u32 2147483647, %v702_v28  ;;  %v1180_v47 = vadd.f32 %v1179_v30, %v940_v8  ;;  %v300_v28 = vld [vmem:[%s2907_s1 + $0x518] sm:$0xff]  ;;  %v215_v8 = vld [vmem:[%s2907_s1 + $0x270] sm:$0xff] }
  0x94   : > { %v790_v51 = vsub.f32 %v298_v62, %v3096_v63  ;;  %v1028_v39 = vand.u32 2147483647, %v788_v12  ;;  %v1268_v13 = vadd.f32 %v1267_v58, %v1026_v59  ;;  %v705_v10 = vsub.f32 %v213_v38, %v3120_v2  ;;  %v3121_v12 = vld [vmem:[#allocation34_spill] sm:$0xff] }
  0x95   : > { %v1253_v4 = vadd.f32 %v1252_v55, %v1012_v52  ;;  %v943_v22 = vand.u32 2147483647, %v703_v42  ;;  %v1181_v41 = vadd.f32 %v1180_v47, %v941_v35  ;;  %v791_v29 = vsub.f32 %v299_v26, %v3100_v32  ;;  %v301_v42 = vld [vmem:[%s2907_s1 + $0x520] sm:$0xff]  ;;  %v216_v35 = vld [vmem:[%s2907_s1 + $0x278] sm:$0xff]  ;;  %v3122_v47 = vld [vmem:[#allocation35_spill] sm:$0xff] }
  0x96   : > { %v1029_v57 = vand.u32 2147483647, %v789_v36  ;;  %v1269_v30 = vadd.f32 %v1268_v13, %v1027_v20  ;;  %v706_v58 = vsub.f32 %v214_v34, %v3121_v12  ;;  %v944_v52 = vand.u32 2147483647, %v704_v49  ;;  %v302_v49 = vld [vmem:[%s2907_s1 + $0x528] sm:$0xff] }
  0x97   : > { %1254 = vadd.xlane.f32.xlu1 %v1253_v4  ;;  %v1182_v59 = vadd.f32 %v1181_v41, %v942_v7  ;;  %v792_v62 = vsub.f32 %v300_v28, %v3102_v53  ;;  %v1030_v38 = vand.u32 2147483647, %v790_v51  ;;  %v707_v36 = vsub.f32 %v215_v8, %v3122_v47  ;;  %v217_v7 = vld [vmem:[%s2907_s1 + $0x280] sm:$0xff]  ;;  %v3123_v41 = vld [vmem:[#allocation36_spill] sm:$0xff] }
  0x98   : > { %v1270_v55 = vadd.f32 %v1269_v30, %v1028_v39  ;;  %v945_v20 = vand.u32 2147483647, %v705_v10  ;;  %v793_v34 = vsub.f32 %v301_v42, %v3106_v25  ;;  %v1031_v13 = vand.u32 2147483647, %v791_v29  ;;  %v303_v10 = vld [vmem:[%s2907_s1 + $0x530] sm:$0xff]  ;;  %v305_v53 = vld [vmem:[%s2907_s1 + $0x540] sm:$0xff] }
  0x99   : > { %v1183_v26 = vadd.f32 %v1182_v59, %v943_v22  ;;  %v708_v28 = vsub.f32 %v216_v35, %v3123_v41  ;;  %v946_v51 = vand.u32 2147483647, %v706_v58  ;;  %v218_v22 = vld [vmem:[%s2907_s1 + $0x288] sm:$0xff]  ;;  %v219_v8 = vld [vmem:[%s2907_s1 + $0x290] sm:$0xff]  ;;  %v794_v30 = vsub.f32 %v302_v49, %v3108_v45  ;;  %v220_v58 = vld [vmem:[%s2907_s1 + $0x298] sm:$0xff] }
  0x9a   : > { %v1271_v4 = vadd.f32 %v1270_v55, %v1029_v57  ;;  %v1032_v29 = vand.u32 2147483647, %v792_v62  ;;  %v947_v42 = vand.u32 2147483647, %v707_v36  ;;  %v304_v55 = vld [vmem:[%s2907_s1 + $0x538] sm:$0xff]  ;;  %v2500_v62 = vld [vmem:[%s2907_s1 + $0x2a8] sm:$0xff] }
  0x9b   : > { %v1184_v39 = vadd.f32 %v1183_v26, %v944_v52  ;;  %v3124_v52 = vld [vmem:[#allocation37_spill] sm:$0xff]  ;;  %v2495_v26 = vld [vmem:[%s2907_s1 + $0x2a0] sm:$0xff]  ;;  %v1033_v49 = vand.u32 2147483647, %v793_v34  ;;  %v2506_v36 = vld [vmem:[%s2907_s1 + $0x2b0] sm:$0xff] }
  0x9c   : > { %v1272_v57 = vadd.f32 %v1271_v4, %v1030_v38  ;;  %v709_v59 = vsub.f32 %v217_v7, %v3124_v52  ;;  %v795_v38 = vsub.f32 %v303_v10, %v3110_v6  ;;  %v3125_v4 = vld [vmem:[#allocation38_spill] sm:$0xff]  ;;  %v948_v45 = vand.u32 2147483647, %v708_v28  ;;  %v2516_v34 = vld [vmem:[%s2907_s1 + $0x2b8] sm:$0xff]  ;;  %v3126_v10 = vld [vmem:[#allocation39_spill] sm:$0xff] }
  0x9d   : > { %v1185_v35 = vadd.f32 %v1184_v39, %v945_v20  ;;  %v710_v20 = vsub.f32 %v218_v22, %v1795_v43  ;;  %v711_v39 = vsub.f32 %v219_v8, %v3125_v4  ;;  %v712_v22 = vsub.f32 %v220_v58, %v3126_v10  ;;  %v306_v58 = vld [vmem:[%s2907_s1 + $0x548] sm:$0xff] }
  0x9e   : > { %v1273_v7 = vadd.f32 %v1272_v57, %v1031_v13  ;;  %v2521_v13 = vld [vmem:[%s2907_s1 + $0x2c0] sm:$0xff]  ;;  %v796_v8 = vsub.f32 %v304_v55, %v3112_v19  ;;  %v1034_v28 = vand.u32 2147483647, %v794_v30  ;;  %v2528_v57 = vld [vmem:[%s2907_s1 + $0x2c8] sm:$0xff]  ;;  %v714_v6 = vsub.f32 %v2500_v62, %v3091_v48  ;;  %v2540_v30 = vld [vmem:[%s2907_s1 + $0x2d0] sm:$0xff] }
  0x9f   : > { %v1186_v25 = vadd.f32 %v1185_v35, %v946_v51  ;;  %v713_v35 = vsub.f32 %v2495_v26, %v3067_v44  ;;  %v949_v32 = vand.u32 2147483647, %v709_v59  ;;  %v715_v55 = vsub.f32 %v2506_v36, %v3070_v24  ;;  %v2553_v26 = vld [vmem:[%s2907_s1 + $0x2e0] sm:$0xff]  ;;  %v307_v36 = vld [vmem:[%s2907_s1 + $0x550] sm:$0xff] }
  0xa0   : > { %v1274_v51 = vadd.f32 %v1273_v7, %v1032_v29  ;;  %v2545_v29 = vld [vmem:[%s2907_s1 + $0x2d8] sm:$0xff]  ;;  %v797_v59 = vsub.f32 %v305_v53, %v3114_v31  ;;  %v716_v62 = vsub.f32 %v2516_v34, %v3098_v61  ;;  %v950_v19 = vand.u32 2147483647, %v710_v20  ;;  %v329_v34 = vld [vmem:[%s2907_s1 + $0x600] sm:$0xff]  ;;  %v330_v20 = vld [vmem:[%s2907_s1 + $0x608] sm:$0xff] }
  0xa1   : > { %v1187_v63 = vadd.f32 %v1186_v25, %v947_v42  ;;  %v1035_v25 = vand.u32 2147483647, %v795_v38  ;;  %v798_v38 = vsub.f32 %v306_v58, %v3116_v0  ;;  %v2586_v53 = vld [vmem:[%s2907_s1 + $0x2f0] sm:$0xff]  ;;  %v799_v0 = vsub.f32 %v307_v36, %v3118_v50 }
  0xa2   : > { %v1275_v42 = vadd.f32 %v1274_v51, %v1033_v49  ;;  %v1036_v49 = vand.u32 2147483647, %v796_v8  ;;  %v309_v8 = vld [vmem:[%s2907_s1 + $0x560] sm:$0xff]  ;;  %v821_v46 = vsub.f32 %v329_v34, %v3059_v5  ;;  %v822_v61 = vsub.f32 %v330_v20, %v3060_v21  ;;  %v310_v34 = vld [vmem:[%s2907_s1 + $0x568] sm:$0xff] }
  0xa3   : > { %v1188_v60 = vadd.f32 %v1187_v63, %v948_v45  ;;  %v2574_v63 = vld [vmem:[%s2907_s1 + $0x2e8] sm:$0xff]  ;;  %v1037_v45 = vand.u32 2147483647, %v797_v59  ;;  %v953_v21 = vand.u32 2147483647, %v713_v35  ;;  %v311_v35 = vld [vmem:[%s2907_s1 + $0x570] sm:$0xff] }
  0xa4   : > { %v1276_v51 = vadd.f32 %v1275_v42, %v1034_v28  ;;  %v951_v28 = vand.u32 2147483647, %v711_v39  ;;  %v308_v42 = vld [vmem:[%s2907_s1 + $0x558] sm:$0xff]  ;;  %v1039_v20 = vand.u32 2147483647, %v799_v0 }
  0xa5   : > { %v1189_v58 = vadd.f32 %v1188_v60, %v949_v32  ;;  %v331_v60 = vld [vmem:[%s2907_s1 + $0x610] sm:$0xff]  ;;  %v952_v32 = vand.u32 2147483647, %v712_v22  ;;  %v800_v59 = vsub.f32 %v308_v42, %v3119_v56  ;;  %v332_v22 = vld [vmem:[%s2907_s1 + $0x618] sm:$0xff]  ;;  %v333_v42 = vld [vmem:[%s2907_s1 + $0x620] sm:$0xff] }
  0xa6   : > { %v1277_v31 = vadd.f32 %v1276_v51, %v1035_v25  ;;  %v1038_v25 = vand.u32 2147483647, %v798_v38  ;;  %v954_v38 = vand.u32 2147483647, %v714_v6  ;;  %v1061_v5 = vand.u32 2147483647, %v821_v46 }
  0xa7   : > { %v1190_v39 = vadd.f32 %v1189_v58, %v950_v19  ;;  %v2608_v19 = vld [vmem:[%s2907_s1 + $0x2f8] sm:$0xff]  ;;  %v1062_v56 = vand.u32 2147483647, %v822_v61  ;;  %v802_v6 = vsub.f32 %v310_v34, %v3121_v12  ;;  %v1040_v0 = vand.u32 2147483647, %v800_v59  ;;  %v335_v59 = vld [vmem:[%s2907_s1 + $0x630] sm:$0xff] }
  0xa8   : > { %v1278_v36 = vadd.f32 %v1277_v31, %v1036_v49  ;;  %v823_v31 = vsub.f32 %v331_v60, %v3061_v37  ;;  %v801_v49 = vsub.f32 %v309_v8, %v3120_v2  ;;  %v334_v8 = vld [vmem:[%s2907_s1 + $0x628] sm:$0xff]  ;;  %v955_v60 = vand.u32 2147483647, %v715_v55  ;;  %v313_v55 = vld [vmem:[%s2907_s1 + $0x580] sm:$0xff] }
  0xa9   : > { %v1191_v51 = vadd.f32 %v1190_v39, %v951_v28  ;;  %v3127_v28 = vld [vmem:[#allocation8_spill] sm:$0xff]  ;;  %v1305_v12 = vadd.f32 %v1062_v56, %v1061_v5 }
  0xaa   : > { %v1279_v58 = vadd.f32 %v1278_v36, %v1037_v45  ;;  %v824_v39 = vsub.f32 %v332_v22, %v3127_v28  ;;  %v312_v36 = vld [vmem:[%s2907_s1 + $0x578] sm:$0xff]  ;;  %v1063_v61 = vand.u32 2147483647, %v823_v31  ;;  %v803_v28 = vsub.f32 %v311_v35, %v3122_v47 }
  0xab   : > { %v1192_v7 = vadd.f32 %v1191_v51, %v952_v32  ;;  %v3128_v22 = vld [vmem:[#allocation9_spill] sm:$0xff]  ;;  %v956_v51 = vand.u32 2147483647, %v716_v62  ;;  %v1041_v37 = vand.u32 2147483647, %v801_v49  ;;  %v3130_v62 = vsub.f32 %v2521_v13, %v1527_v11 }
  0xac   : > { %v1280_v45 = vadd.f32 %v1279_v58, %v1038_v25  ;;  %v825_v46 = vsub.f32 %v333_v42, %v3128_v22  ;;  %v1064_v58 = vand.u32 2147483647, %v824_v39  ;;  %v804_v49 = vsub.f32 %v312_v36, %v3123_v41 }
  0xad   : > { %v1193_v32 = vadd.f32 %v1192_v7, %v953_v21  ;;  %v3129_v7 = vld [vmem:[#allocation10_spill] sm:$0xff]  ;;  %v957_v31 = vand.u32 2147483647, %v3130_v62  ;;  %v1306_v5 = vadd.f32 %v1305_v12, %v1063_v61  ;;  %v3132_v13 = vsub.f32 %v2528_v57, %v3104_v40  ;;  %v316_v62 = vld [vmem:[%s2907_s1 + $0x598] sm:$0xff] }
  0xae   : > { %v1281_v34 = vadd.f32 %v1280_v45, %v1039_v20  ;;  %v826_v21 = vsub.f32 %v334_v8, %v3129_v7  ;;  %v1042_v20 = vand.u32 2147483647, %v802_v6  ;;  %v314_v45 = vld [vmem:[%s2907_s1 + $0x588] sm:$0xff]  ;;  %v1065_v56 = vand.u32 2147483647, %v825_v46 }
  0xaf   : > { %v1194_v25 = vadd.f32 %v1193_v32, %v954_v38  ;;  %v336_v38 = vld [vmem:[%s2907_s1 + $0x638] sm:$0xff]  ;;  %v3131_v8 = vld [vmem:[#allocation11_spill] sm:$0xff]  ;;  %v958_v32 = vand.u32 2147483647, %v3132_v13  ;;  %v805_v6 = vsub.f32 %v313_v55, %v3124_v52  ;;  %v1307_v61 = vadd.f32 %v1306_v5, %v1064_v58 }
  0xb0   : > { %v1282_v42 = vadd.f32 %v1281_v34, %v1040_v0  ;;  %v827_v39 = vsub.f32 %v335_v59, %v3131_v8  ;;  %v1043_v0 = vand.u32 2147483647, %v803_v28  ;;  %v315_v34 = vld [vmem:[%s2907_s1 + $0x590] sm:$0xff]  ;;  %v1066_v12 = vand.u32 2147483647, %v826_v21  ;;  %v317_v8 = vld [vmem:[%s2907_s1 + $0x5a0] sm:$0xff] }
  0xb1   : > { %v1195_v35 = vadd.f32 %v1194_v25, %v955_v60  ;;  %v337_v60 = vld [vmem:[%s2907_s1 + $0x640] sm:$0xff]  ;;  %v3133_v59 = vld [vmem:[#allocation12_spill] sm:$0xff]  ;;  %v3134_v57 = vsub.f32 %v2540_v30, %v3075_v1  ;;  %v806_v28 = vsub.f32 %v314_v45, %v1795_v43  ;;  %v3135_v30 = vsub.f32 %v2545_v29, %v1536_v14 }
  0xb2   : > { %v1283_v36 = vadd.f32 %v1282_v42, %v1041_v37  ;;  %v828_v46 = vsub.f32 %v336_v38, %v3133_v59  ;;  %v1044_v37 = vand.u32 2147483647, %v804_v49  ;;  %v829_v21 = vsub.f32 %v337_v60, %v3074_v9  ;;  %v318_v60 = vld [vmem:[%s2907_s1 + $0x5a8] sm:$0xff] }
  0xb3   : > { %v1196_v22 = vadd.f32 %v1195_v35, %v956_v51  ;;  %v959_v25 = vand.u32 2147483647, %v3134_v57  ;;  %v338_v51 = vld [vmem:[%s2907_s1 + $0x648] sm:$0xff]  ;;  %v1067_v58 = vand.u32 2147483647, %v827_v39  ;;  %v1308_v42 = vadd.f32 %v1307_v61, %v1065_v56  ;;  %v341_v57 = vld [vmem:[%s2907_s1 + $0x660] sm:$0xff] }
  0xb4   : > { %v1284_v55 = vadd.f32 %v1283_v36, %v1042_v20  ;;  %v960_v38 = vand.u32 2147483647, %v3135_v30  ;;  %v807_v49 = vsub.f32 %v315_v34, %v3125_v4  ;;  %v1045_v20 = vand.u32 2147483647, %v805_v6  ;;  %v320_v30 = vld [vmem:[%s2907_s1 + $0x5b8] sm:$0xff] }
  0xb5   : > { %v1197_v7 = vadd.f32 %v1196_v22, %v957_v31  ;;  %v339_v31 = vld [vmem:[%s2907_s1 + $0x650] sm:$0xff]  ;;  %v830_v9 = vsub.f32 %v338_v51, %v3077_v54  ;;  %v1068_v39 = vand.u32 2147483647, %v828_v46  ;;  %v1309_v56 = vadd.f32 %v1308_v42, %v1066_v12 }
  0xb6   : > { %v1285_v35 = vadd.f32 %v1284_v55, %v1043_v0  ;;  %v3136_v29 = vsub.f32 %v2553_v26, %v1539_v15  ;;  %v808_v13 = vsub.f32 %v316_v62, %v3126_v10  ;;  %v1046_v6 = vand.u32 2147483647, %v806_v28  ;;  %v319_v28 = vld [vmem:[%s2907_s1 + $0x5b0] sm:$0xff] }
  0xb7   : > { %v1198_v45 = vadd.f32 %v1197_v7, %v958_v32  ;;  %v340_v32 = vld [vmem:[%s2907_s1 + $0x658] sm:$0xff]  ;;  %v831_v54 = vsub.f32 %v339_v31, %v3079_v27  ;;  %v1069_v22 = vand.u32 2147483647, %v829_v21  ;;  %v1310_v34 = vadd.f32 %v1309_v56, %v1067_v58  ;;  %v342_v58 = vld [vmem:[%s2907_s1 + $0x668] sm:$0xff] }
  0xb8   : > { %v961_v5 = vand.u32 2147483647, %v3136_v29  ;;  %v1286_v0 = vadd.f32 %v1285_v35, %v1044_v37  ;;  %v3137_v26 = vsub.f32 %v2574_v63, %v1542_v16  ;;  %v809_v46 = vsub.f32 %v317_v8, %v3067_v44  ;;  %v343_v8 = vld [vmem:[%s2907_s1 + $0x670] sm:$0xff] }
  0xb9   : > { %v1199_v36 = vadd.f32 %v1198_v45, %v959_v25  ;;  %v1047_v12 = vand.u32 2147483647, %v807_v49  ;;  %v832_v27 = vsub.f32 %v340_v32, %v3081_v3  ;;  %v1070_v37 = vand.u32 2147483647, %v830_v9 }
  0xba   : > { %v962_v59 = vand.u32 2147483647, %v3137_v26  ;;  %v1287_v61 = vadd.f32 %v1286_v0, %v1045_v20  ;;  %v1311_v55 = vadd.f32 %v1310_v34, %v1068_v39  ;;  %v3138_v63 = vsub.f32 %v2586_v53, %v1545_v17  ;;  %v321_v39 = vld [vmem:[%s2907_s1 + $0x5c0] sm:$0xff]  ;;  %v344_v0 = vld [vmem:[%s2907_s1 + $0x678] sm:$0xff] }
  0xbb   : > { %v1200_v25 = vadd.f32 %v1199_v36, %v960_v38  ;;  %v810_v7 = vsub.f32 %v318_v60, %v3091_v48  ;;  %v1048_v62 = vand.u32 2147483647, %v808_v13  ;;  %v833_v3 = vsub.f32 %v341_v57, %v3085_v23  ;;  %v322_v36 = vld [vmem:[%s2907_s1 + $0x5c8] sm:$0xff]  ;;  %v3142_v57 = vld [vmem:[#allocation20_spill] sm:$0xff] }
  0xbc   : > { %v963_v51 = vand.u32 2147483647, %v3138_v63  ;;  %v1288_v21 = vadd.f32 %v1287_v61, %v1046_v6  ;;  %v1071_v38 = vand.u32 2147483647, %v831_v54  ;;  %v1312_v49 = vadd.f32 %v1311_v55, %v1069_v22  ;;  %v3141_v60 = vld [vmem:[#allocation19_spill] sm:$0xff]  ;;  %v323_v61 = vld [vmem:[%s2907_s1 + $0x5d0] sm:$0xff] }
  0xbd   : > { %v1201_v42 = vadd.f32 %v1200_v25, %v961_v5  ;;  %v3139_v53 = vsub.f32 %v2608_v19, %v1548_v18  ;;  %v811_v35 = vsub.f32 %v319_v28, %v3070_v24  ;;  %v1049_v31 = vand.u32 2147483647, %v809_v46  ;;  %v3140_v5 = vld [vmem:[#allocation43_spill] sm:$0xff]  ;;  %v345_v46 = vld [vmem:[%s2907_s1 + $0x680] sm:$0xff] }
  0xbe   : > { %v1289_v45 = vadd.f32 %v1288_v21, %v1047_v12  ;;  %v834_v23 = vsub.f32 %v342_v58, %v3086_v33  ;;  %v1072_v56 = vand.u32 2147483647, %v832_v27  ;;  %v1313_v29 = vadd.f32 %v1312_v49, %v1070_v37  ;;  %v347_v49 = vld [vmem:[%s2907_s1 + $0x690] sm:$0xff] }
  0xbf   : > { %v964_v20 = vand.u32 2147483647, %v3139_v53  ;;  %v1202_v9 = vadd.f32 %v1201_v42, %v962_v59  ;;  %v812_v19 = vsub.f32 %v320_v30, %v3140_v5  ;;  %v1050_v13 = vand.u32 2147483647, %v810_v7  ;;  %v324_v7 = vld [vmem:[%s2907_s1 + $0x5d8] sm:$0xff]  ;;  %v325_v53 = vld [vmem:[%s2907_s1 + $0x5e0] sm:$0xff] }
  0xc0   : > { %v1290_v6 = vadd.f32 %v1289_v45, %v1048_v62  ;;  %v835_v54 = vsub.f32 %v343_v8, %v3141_v60  ;;  %v1073_v22 = vand.u32 2147483647, %v833_v3  ;;  %v1314_v34 = vadd.f32 %v1313_v29, %v1071_v38  ;;  %v3143_v62 = vld [vmem:[#allocation21_spill] sm:$0xff]  ;;  %v3145_v29 = vld [vmem:[#allocation23_spill] sm:$0xff]  ;;  %v349_v60 = vld [vmem:[%s2907_s1 + $0x6a0] sm:$0xff] }
  0xc1   : > { %v1203_v32 = vadd.f32 %v1202_v9, %v963_v51  ;;  %v813_v33 = vsub.f32 %v321_v39, %v1527_v11  ;;  %v1051_v26 = vand.u32 2147483647, %v811_v35  ;;  %v836_v25 = vsub.f32 %v344_v0, %v3142_v57  ;;  %v346_v51 = vld [vmem:[%s2907_s1 + $0x688] sm:$0xff]  ;;  %v328_v57 = vld [vmem:[%s2907_s1 + $0x5f8] sm:$0xff] }
  0xc2   : > { %v1291_v59 = vadd.f32 %v1290_v6, %v1049_v31  ;;  %v1074_v28 = vand.u32 2147483647, %v834_v23  ;;  %v1315_v27 = vadd.f32 %v1314_v34, %v1072_v56  ;;  %v814_v37 = vsub.f32 %v322_v36, %v3104_v40  ;;  %v348_v23 = vld [vmem:[%s2907_s1 + $0x698] sm:$0xff]  ;;  %v326_v56 = vld [vmem:[%s2907_s1 + $0x5e8] sm:$0xff] }
  0xc3   : > { %v1204_v12 = vadd.f32 %v1203_v32, %v964_v20  ;;  %v1052_v55 = vand.u32 2147483647, %v812_v19  ;;  %v837_v21 = vsub.f32 %v345_v46, %v3143_v62  ;;  %v1075_v58 = vand.u32 2147483647, %v835_v54  ;;  %v3144_v20 = vld [vmem:[#allocation22_spill] sm:$0xff]  ;;  %v327_v54 = vld [vmem:[%s2907_s1 + $0x5f0] sm:$0xff] }
  0xc4   : > { %v1292_v63 = vadd.f32 %v1291_v59, %v1050_v13  ;;  %v1316_v42 = vadd.f32 %v1315_v27, %v1073_v22  ;;  %v815_v30 = vsub.f32 %v323_v61, %v3075_v1  ;;  %v1053_v3 = vand.u32 2147483647, %v813_v33  ;;  %v3146_v22 = vld [vmem:[#allocation24_spill] sm:$0xff]  ;;  %v350_v61 = vld [vmem:[%s2907_s1 + $0x6a8] sm:$0xff]  ;;  %v3148_v62 = vld [vmem:[#allocation26_spill] sm:$0xff] }
  0xc5   : > { %1205 = vadd.xlane.f32.xlu0 %v1204_v12  ;;  %v838_v35 = vsub.f32 %v346_v51, %v3144_v20  ;;  %v1076_v31 = vand.u32 2147483647, %v836_v25  ;;  %v816_v8 = vsub.f32 %v324_v7, %v1536_v14  ;;  %v1054_v9 = vand.u32 2147483647, %v814_v37  ;;  %v3147_v25 = vld [vmem:[#allocation25_spill] sm:$0xff]  ;;  %v351_v7 = vld [vmem:[%s2907_s1 + $0x6b0] sm:$0xff] }
  0xc6   : > { %v1293_v38 = vadd.f32 %v1292_v63, %v1051_v26  ;;  %v1317_v45 = vadd.f32 %v1316_v42, %v1074_v28  ;;  %v839_v19 = vsub.f32 %v347_v49, %v3145_v29  ;;  %v1077_v13 = vand.u32 2147483647, %v837_v21  ;;  %v352_v49 = vld [vmem:[%s2907_s1 + $0x6b8] sm:$0xff] }
  0xc7   : > { %v817_v0 = vsub.f32 %v325_v53, %v1539_v15  ;;  %v1055_v32 = vand.u32 2147483647, %v815_v30  ;;  %v840_v34 = vsub.f32 %v348_v23, %v3146_v22  ;;  %v1078_v33 = vand.u32 2147483647, %v838_v35  ;;  %v3149_v53 = vld [vmem:[#allocation27_spill] sm:$0xff]  ;;  %v355_v22 = vld [vmem:[%s2907_s1 + $0x6d0] sm:$0xff] }
  0xc8   : > { %v1294_v39 = vadd.f32 %v1293_v38, %v1052_v55  ;;  %v1318_v6 = vadd.f32 %v1317_v45, %v1075_v58  ;;  %v818_v59 = vsub.f32 %v326_v56, %v1542_v16  ;;  %v1056_v46 = vand.u32 2147483647, %v816_v8 }
  0xc9   : > { %v841_v28 = vsub.f32 %v349_v60, %v3147_v25  ;;  %v1079_v27 = vand.u32 2147483647, %v839_v19  ;;  %v819_v55 = vsub.f32 %v327_v54, %v1545_v17  ;;  %v1057_v63 = vand.u32 2147483647, %v817_v0  ;;  %v3151_v0 = vld [vmem:[#allocation29_spill] sm:$0xff] }
  0xca   : > { %v1295_v36 = vadd.f32 %v1294_v39, %v1053_v3  ;;  %v1319_v26 = vadd.f32 %v1318_v6, %v1076_v31  ;;  %v842_v21 = vsub.f32 %v350_v61, %v3148_v62  ;;  %v1080_v58 = vand.u32 2147483647, %v840_v34  ;;  %v3150_v39 = vld [vmem:[#allocation28_spill] sm:$0xff]  ;;  %v354_v6 = vld [vmem:[%s2907_s1 + $0x6c8] sm:$0xff]  ;;  %v3152_v34 = vld [vmem:[#allocation30_spill] sm:$0xff] }
  0xcb   : > { %v820_v30 = vsub.f32 %v328_v57, %v1548_v18  ;;  %v1058_v3 = vand.u32 2147483647, %v818_v59  ;;  %v843_v20 = vsub.f32 %v351_v7, %v3149_v53  ;;  %v1081_v35 = vand.u32 2147483647, %v841_v28  ;;  %v357_v28 = vld [vmem:[%s2907_s1 + $0x6e0] sm:$0xff] }
  0xcc   : > { %v1296_v12 = vadd.f32 %v1295_v36, %v1054_v9  ;;  %v1320_v37 = vadd.f32 %v1319_v26, %v1077_v13  ;;  %v1059_v45 = vand.u32 2147483647, %v819_v55  ;;  %v353_v9 = vld [vmem:[%s2907_s1 + $0x6c0] sm:$0xff]  ;;  %v844_v23 = vsub.f32 %v352_v49, %v3150_v39 }
  0xcd   : > { %v1082_v56 = vand.u32 2147483647, %v842_v21  ;;  %v1060_v19 = vand.u32 2147483647, %v820_v30  ;;  %v1083_v36 = vand.u32 2147483647, %v843_v20  ;;  %v847_v61 = vsub.f32 %v355_v22, %v3118_v50 }
  0xce   : > { %v1297_v51 = vadd.f32 %v1296_v12, %v1055_v32  ;;  %v1321_v42 = vadd.f32 %v1320_v37, %v1078_v33  ;;  %v845_v32 = vsub.f32 %v353_v9, %v3151_v0  ;;  %v846_v33 = vsub.f32 %v354_v6, %v3152_v34  ;;  %v356_v12 = vld [vmem:[%s2907_s1 + $0x6d8] sm:$0xff]  ;;  %v359_v50 = vld [vmem:[%s2907_s1 + $0x6f0] sm:$0xff] }
  0xcf   : > { %v1084_v26 = vand.u32 2147483647, %v844_v23  ;;  %v849_v7 = vsub.f32 %v357_v28, %v3120_v2  ;;  %v1087_v62 = vand.u32 2147483647, %v847_v61  ;;  %v851_v49 = vsub.f32 %v359_v50, %v3122_v47  ;;  %v361_v2 = vld [vmem:[%s2907_s1 + $0x700] sm:$0xff]  ;;  %v363_v47 = vld [vmem:[%s2907_s1 + $0x710] sm:$0xff] }
  0xd0   : > { %v1298_v38 = vadd.f32 %v1297_v51, %v1056_v46  ;;  %v1322_v31 = vadd.f32 %v1321_v42, %v1079_v27  ;;  %v1085_v57 = vand.u32 2147483647, %v845_v32  ;;  %v3153_v27 = vld [vmem:[#allocation32_spill] sm:$0xff]  ;;  %v1086_v55 = vand.u32 2147483647, %v846_v33  ;;  %v358_v51 = vld [vmem:[%s2907_s1 + $0x6e8] sm:$0xff] }
  0xd1   : > { %v848_v37 = vsub.f32 %v356_v12, %v3153_v27  ;;  %v1089_v53 = vand.u32 2147483647, %v849_v7  ;;  %v853_v9 = vsub.f32 %v361_v2, %v3124_v52  ;;  %v1091_v39 = vand.u32 2147483647, %v851_v49  ;;  %v365_v52 = vld [vmem:[%s2907_s1 + $0x720] sm:$0xff] }
  0xd2   : > { %v1299_v8 = vadd.f32 %v1298_v38, %v1057_v63  ;;  %v1323_v29 = vadd.f32 %v1322_v31, %v1080_v58  ;;  %v3154_v58 = vld [vmem:[#allocation34_spill] sm:$0xff]  ;;  %v360_v38 = vld [vmem:[%s2907_s1 + $0x6f8] sm:$0xff] }
  0xd3   : > { %v850_v42 = vsub.f32 %v358_v51, %v3154_v58  ;;  %v1088_v30 = vand.u32 2147483647, %v848_v37  ;;  %v1093_v6 = vand.u32 2147483647, %v853_v9 }
  0xd4   : > { %v1300_v13 = vadd.f32 %v1299_v8, %v1058_v3  ;;  %v1324_v60 = vadd.f32 %v1323_v29, %v1081_v35  ;;  %v852_v35 = vsub.f32 %v360_v38, %v3123_v41  ;;  %v362_v8 = vld [vmem:[%s2907_s1 + $0x708] sm:$0xff]  ;;  %v364_v41 = vld [vmem:[%s2907_s1 + $0x718] sm:$0xff] }
  0xd5   : > { %v1090_v31 = vand.u32 2147483647, %v850_v42  ;;  %v856_v32 = vsub.f32 %v364_v41, %v3126_v10  ;;  %v368_v10 = vld [vmem:[%s2907_s1 + $0x738] sm:$0xff] }
  0xd6   : > { %v1301_v54 = vadd.f32 %v1300_v13, %v1059_v45  ;;  %v1325_v59 = vadd.f32 %v1324_v60, %v1082_v56  ;;  %v854_v56 = vsub.f32 %v362_v8, %v1795_v43  ;;  %v1092_v29 = vand.u32 2147483647, %v852_v35  ;;  %v366_v43 = vld [vmem:[%s2907_s1 + $0x728] sm:$0xff] }
  0xd7   : > { %v855_v13 = vsub.f32 %v363_v47, %v3125_v4  ;;  %v367_v4 = vld [vmem:[%s2907_s1 + $0x730] sm:$0xff]  ;;  %v858_v33 = vsub.f32 %v366_v43, %v3091_v48  ;;  %v370_v48 = vld [vmem:[%s2907_s1 + $0x748] sm:$0xff] }
  0xd8   : > { %v1302_v46 = vadd.f32 %v1301_v54, %v1060_v19  ;;  %v1326_v25 = vadd.f32 %v1325_v59, %v1083_v36  ;;  %v1094_v36 = vand.u32 2147483647, %v854_v56  ;;  %v857_v54 = vsub.f32 %v365_v52, %v3067_v44  ;;  %v369_v44 = vld [vmem:[%s2907_s1 + $0x740] sm:$0xff] }
  0xd9   : > { %v1095_v22 = vand.u32 2147483647, %v855_v13  ;;  %v861_v27 = vsub.f32 %v369_v44, %v1527_v11  ;;  %v373_v11 = vld [vmem:[%s2907_s1 + $0x760] sm:$0xff] }
  0xda   : > { %1303 = vadd.xlane.f32.xlu1 %v1302_v46  ;;  %v1327_v63 = vadd.f32 %v1326_v25, %v1084_v26  ;;  %v1096_v26 = vand.u32 2147483647, %v856_v32  ;;  %v859_v46 = vsub.f32 %v367_v4, %v3070_v24  ;;  %v1097_v12 = vand.u32 2147483647, %v857_v54  ;;  %v371_v24 = vld [vmem:[%s2907_s1 + $0x750] sm:$0xff] }
  0xdb   : > { %v1098_v25 = vand.u32 2147483647, %v858_v33 }
  0xdc   : > { %v1328_v21 = vadd.f32 %v1327_v63, %v1085_v57  ;;  %v860_v57 = vsub.f32 %v368_v10, %v3140_v5  ;;  %v1099_v37 = vand.u32 2147483647, %v859_v46  ;;  %v862_v63 = vsub.f32 %v370_v48, %v3104_v40  ;;  %v372_v5 = vld [vmem:[%s2907_s1 + $0x758] sm:$0xff]  ;;  %v374_v40 = vld [vmem:[%s2907_s1 + $0x768] sm:$0xff] }
  0xdd   : > { %v864_v58 = vsub.f32 %v372_v5, %v1536_v14  ;;  %v376_v14 = vld [vmem:[%s2907_s1 + $0x778] sm:$0xff] }
  0xde   : > { %v1329_v3 = vadd.f32 %v1328_v21, %v1086_v55  ;;  %v1100_v51 = vand.u32 2147483647, %v860_v57  ;;  %v1101_v21 = vand.u32 2147483647, %v861_v27  ;;  %v1102_v42 = vand.u32 2147483647, %v862_v63 }
  0xe0   : > { %v1330_v20 = vadd.f32 %v1329_v3, %v1087_v62  ;;  %v863_v62 = vsub.f32 %v371_v24, %v3075_v1  ;;  %v865_v3 = vsub.f32 %v373_v11, %v1539_v15  ;;  %v375_v1 = vld [vmem:[%s2907_s1 + $0x770] sm:$0xff]  ;;  %v868_v15 = vsub.f32 %v376_v14, %v1548_v18 }
  0xe1   : > { %v867_v35 = vsub.f32 %v375_v1, %v1545_v17 }
  0xe2   : > { %v1331_v45 = vadd.f32 %v1330_v20, %v1088_v30  ;;  %v1103_v38 = vand.u32 2147483647, %v863_v62  ;;  %v1104_v20 = vand.u32 2147483647, %v864_v58  ;;  %v1108_v47 = vand.u32 2147483647, %v868_v15 }
  0xe4   : > { %v1332_v23 = vadd.f32 %v1331_v45, %v1089_v53  ;;  %v866_v53 = vsub.f32 %v374_v40, %v1542_v16 }
  0xe6   : > { %v1333_v19 = vadd.f32 %v1332_v23, %v1090_v31  ;;  %v1105_v31 = vand.u32 2147483647, %v865_v3  ;;  %v1106_v8 = vand.u32 2147483647, %v866_v53 }
  0xe8   : > { %v1334_v0 = vadd.f32 %v1333_v19, %v1091_v39  ;;  %v1107_v39 = vand.u32 2147483647, %v867_v35  ;;  %v3155_v19 = vlaneseq }
  0xea   : > { %v1335_v60 = vadd.f32 %v1334_v0, %v1092_v29  ;;  %v1360_v41 = vand.u32 127, %v3155_v19  ;;  %v3156_v0 = vld [vmem:[#allocation2_spill] sm:$0xff] }
  0xec   : > { %v1336_v34 = vadd.f32 %v1335_v60, %v1093_v6  ;;  %v1365_v6 = vadd.s32 4294967288, %v1360_v41  ;;  %v1363_v18 = vsub.s32 %v1360_v41, %v3156_v0  ;;  %v1379_v60 = vadd.s32 4294967272, %v1360_v41 }
  0xed   : > { %v1386_v33 = vadd.s32 4294967264, %v1360_v41 }
  0xee   : > { %v1337_v59 = vadd.f32 %v1336_v34, %v1094_v36  ;;  %v1368_v52 = vsub.s32 %v1365_v6, %v3156_v0  ;;  %v1372_v36 = vadd.s32 4294967280, %v1360_v41  ;;  %v1382_v34 = vsub.s32 %v1379_v60, %v3156_v0 }
  0xf0   : > { %v1338_v61 = vadd.f32 %v1337_v59, %v1095_v22  ;;  %v1375_v54 = vsub.s32 %v1372_v36, %v3156_v0 }
  0xf2   : > { %v1339_v28 = vadd.f32 %v1338_v61, %v1096_v26 }
  0xf4   : > { %v1340_v55 = vadd.f32 %v1339_v28, %v1097_v12  ;;  %v1389_v12 = vsub.s32 %v1386_v33, %v3156_v0 }
  0xf6   : > { %v1341_v7 = vadd.f32 %v1340_v55, %v1098_v25 }
  0xf8   : > { %v1342_v50 = vadd.f32 %v1341_v7, %v1099_v37 }
  0xfa   : > { %v1343_v30 = vadd.f32 %v1342_v50, %v1100_v51 }
  0xfc   : > { %v1344_v49 = vadd.f32 %v1343_v30, %v1101_v21 }
  0xfe   : > { %v1345_v2 = vadd.f32 %v1344_v49, %v1102_v42 }
 0x100   : > { %v1346_v45 = vadd.f32 %v1345_v2, %v1103_v38 }
 0x102   : > { %v1347_v9 = vadd.f32 %v1346_v45, %v1104_v20 }
 0x104   : > { %v1348_v23 = vadd.f32 %v1347_v9, %v1105_v31 }
 0x106   : > { %v1349_v56 = vadd.f32 %v1348_v23, %v1106_v8 }
 0x107   : > { %v1157_v13 = vpop.xlane.xlu0 %1156 }
 0x108   : > { %v1350_v29 = vadd.f32 %v1349_v56, %v1107_v39  ;;  %v1364_v22 = vrot.slane %v1157_v13, %v1363_v18 }
 0x10a   : > { %v1351_v16 = vadd.f32 %v1350_v29, %v1108_v47 }
 0x10c   : > { %1352 = vadd.xlane.f32.xlu0 %v1351_v16 }
 0x124   : > { %v1255_v17 = vpop.xlane.xlu1 %1254 }
 0x125   : > { %v1376_v59 = vrot.slane %v1255_v17, %v1375_v54 }
 0x152   : > { %v1206_v32 = vpop.xlane.xlu0 %1205 }
 0x153   : > { %v1369_v43 = vrot.slane %v1206_v32, %v1368_v52 }
 0x155   : > { %v1371_v26 = vsel %vm1370_vm0, %v1369_v43, %v1364_v22 }
 0x156   : > { %v1378_v46 = vsel %vm1377_vm1, %v1376_v59, %v1371_v26 }
 0x167   : > { %v1304_v4 = vpop.xlane.xlu1 %1303 }
 0x168   : > { %v1383_v10 = vrot.slane %v1304_v4, %v1382_v34 }
 0x16a   : > { %v1385_v44 = vsel %vm1384_vm2, %v1383_v10, %v1378_v46 }
 0x199   : > { %v1353_v61 = vpop.xlane.xlu0 %1352 }
 0x19a   : > { %v1390_v57 = vrot.slane %v1353_v61, %v1389_v12 }
 0x19c   : > { %v1392_v25 = vsel %vm1391_vm3, %v1390_v57, %v1385_v44 }
 0x19d   : > { %1395 = vst.msk [vmem:[%s136_s3] sm:$0x1] %vm1394_vm4, %v1392_v25 }
 0x19e PF: > { %s12_s9 = sadd.s32 1, %s1465_s9  }
 0x19f   : > { %p9_p4 = scmp.ge.s32.totalorder %s12_s9, 4  }
 0x1a1   :  { %11 = sbr.rel (!%p9_p4) target bundleno = 1 (0x1), region = 58 }

// kernel: neg.0
= control target key start
LH: loop header
LB: loop body
LE: loop exit
PB: predicated region body
PF: predicated region fallthrough
CT: control target
= control target key end

     0   :  { %s40_s0 = inlined_call_operand.vmem [shape: f32[2,1,40], index: 0, kind: input, shape index: {}]   ;;  %s41_s1 = inlined_call_operand.vmem [shape: f32[2,1,40], index: 1, kind: output, shape index: {}]  }
   0x1   :  { %v2_v0 = vld [vmem:[%s40_s0] sm:$0x1]  ;;  %v16_v1 = vld [vmem:[%s40_s0 + $0x1] sm:$0x1] }
   0x2   :  { %v5_v2 = vxor.u32 2147483648, %v2_v0  ;;  %v12_v3 = vxor.u32 2147483648, %v16_v1 }
   0x4   :  { %7 = vst [vmem:[%s41_s1] sm:$0x1] %v5_v2  ;;  %17 = vst [vmem:[%s41_s1 + $0x1] sm:$0x1] %v12_v3 }

// kernel: custom_densenet_forward.17
= control target key start
LH: loop header
LB: loop body
LE: loop exit
PB: predicated region body
PF: predicated region fallthrough
CT: control target
= control target key end

     0   :  { %v48_v0 = vmov 0   ;;  %vm27_vm0 = vcmask 230400   ;;  %vm36_vm1 = vcmask 1024   ;;  %s81_s2 = inlined_call_operand.vmem [shape: f32[2,1], index: 2, kind: input, shape index: {}]   ;;  %s82_s0 = inlined_call_operand.vmem [shape: f32[2,29], index: 0, kind: input, shape index: {}]   ;;  %s83_s1 = inlined_call_operand.vmem [shape: f32[2,29], index: 1, kind: input, shape index: {}]   ;;  %s84_s3 = inlined_call_operand.vmem [shape: f32[2,1], index: 3, kind: output, shape index: {}]  }
   0x1   :  { %43 = vset.pattern.permute.xlu0 %v48_v0  ;;  %v16_v1 = vld [vmem:[%s81_s2] sm:$0x3] }
   0x2   :  { %19 = vperm.xlu0 %43, %v16_v1   ;;  %v14_v2 = vld [vmem:[%s82_s0] sm:$0x3] }
   0x3   :  { %v15_v3 = vsub.f32 0.0, %v14_v2  ;;  %v25_v7 = vld [vmem:[%s83_s1] sm:$0x3] }
  0x81   :  { %v20_v4 = vpop.permute.xlu0 %19 }
  0x82   :  { %v22_v5 = vmul.f32 %v20_v4, %v15_v3 }
  0x84   :  { %v23_v6 = vmul.f32 1.442695, %v22_v5 }
  0x86   :  { %44 = vpow2.f32 %v23_v6 }
  0x90   :  { %v45_v8 = vpop.eup %44 }
  0x91   :  { %v31_v9 = vsel %vm27_vm0, %v45_v8, 0.0  ;;  %v26_v10 = vmul.f32 %v45_v8, %v25_v7 }
  0x92   :  { %32 = vadd.xlane.f32.xlu0 %v31_v9 }
  0x93   :  { %v28_v11 = vsel %vm27_vm0, %v26_v10, 0.0 }
  0x94   :  { %29 = vadd.xlane.f32.xlu1 %v28_v11 }
 0x11f   :  { %v33_v12 = vpop.xlane.xlu0 %32 }
 0x120   :  { %46 = vrcp.f32 %v33_v12 }
 0x121   :  { %v30_v14 = vpop.xlane.xlu1 %29 }
 0x12a   :  { %v47_v13 = vpop.eup %46 }
 0x12b   :  { %v35_v15 = vmul.f32 %v47_v13, %v30_v14 }
 0x12d   :  { %37 = vst.msk [vmem:[%s84_s3] sm:$0x3] %vm36_vm1, %v35_v15 }

</bundles_post_ra>
